<compile_context>
chip_gen: v7x
topology: tpu7x:2x2x1
jax: 0.10.0
libtpu: 0.0.40
codegen_flags: <defaults>
</compile_context>

<pallas_src>
import functools
import math

import jax
import jax.numpy as jnp
from jax import lax
from jax.experimental import pallas as pl
from jax.experimental.pallas import tpu as pltpu


LN_EPS = 1e-5            # torch.nn.LayerNorm default
NEG_INF = -1e9
PAD_BIAS = -1e30         # logits bias for padded vocab lanes (softmax-neutral)
BF16 = jnp.bfloat16
F32 = jnp.float32


# ---------------------------------------------------------------------------
# In-kernel math helpers (f32 activations, bf16 MXU operands, f32 accumulate)
# ---------------------------------------------------------------------------

def _layer_norm(x, gb, eps=LN_EPS):
    """x: (S, D) f32; gb: (2, D) f32 packed as [gamma; beta]."""
    gamma = gb[0:1, :]
    beta = gb[1:2, :]
    mu = jnp.mean(x, axis=-1, keepdims=True)
    xc = x - mu
    var = jnp.mean(xc * xc, axis=-1, keepdims=True)
    return xc * lax.rsqrt(var + eps) * gamma + beta


def _bf16_dot(x, w, b=None):
    """(M, K) f32 x (K, N) bf16 -> (M, N) f32 (+ optional f32 bias row)."""
    y = jnp.dot(x.astype(BF16), w, preferred_element_type=F32)
    return y if b is None else y + b


def _split_heads(x, heads):
    """(S, H*dh) -> (H, S, dh) via static lane slices + leading-dim concat."""
    S, D = x.shape
    dh = D // heads
    if heads == 1:
        return x[None]
    return jnp.concatenate(
        [x[None, :, h * dh:(h + 1) * dh] for h in range(heads)], axis=0)


def _mha_batched(q3, k3, v3, *, causal):
    """q3: (H, Sq, dh), k3/v3: (H, Sk, dh) f32 -> (H, Sq, dh) f32."""
    H, Sq, dh = q3.shape
    Sk = k3.shape[1]
    scale = 1.0 / math.sqrt(dh)
    # Batched over heads, contracting dh on both sides (no K transpose needed).
    s = lax.dot_general(q3.astype(BF16), k3.astype(BF16),
                        (((2,), (2,)), ((0,), (0,))),
                        preferred_element_type=F32) * scale        # (H, Sq, Sk)
    if causal:
        row = lax.broadcasted_iota(jnp.int32, (Sq, Sk), 0)
        col = lax.broadcasted_iota(jnp.int32, (Sq, Sk), 1)
        keep = (col <= row)[None, :, :]
        s = jnp.where(keep, s, NEG_INF)
    m = jnp.max(s, axis=-1, keepdims=True)
    p = jnp.exp(s - m)
    if causal:
        p = jnp.where(keep, p, 0.0)          # masked probs exactly zero
    p = p * pl.reciprocal(jnp.sum(p, axis=-1, keepdims=True), approx=True)
    return lax.dot_general(p.astype(BF16), v3.astype(BF16),
                           (((2,), (1,)), ((0,), (0,))),
                           preferred_element_type=F32)              # (H, Sq, dh)


def _attn_out_proj(ah, woh, bo):
    """ah: (H, Sq, dh) f32, woh: (H, dh, D) bf16, bo: (1, D) f32 -> (Sq, D)."""
    proj = lax.dot_general(ah.astype(BF16), woh,
                           (((2,), (1,)), ((0,), (0,))),
                           preferred_element_type=F32)              # (H, Sq, D)
    return jnp.sum(proj, axis=0) + bo


def _self_attention(x, ln, wqkv, bqkv, woh, bo, *, heads, causal):
    D = x.shape[-1]
    xn = _layer_norm(x, ln)
    qkv = _bf16_dot(xn, wqkv, bqkv)                                 # (S, 3D)
    q3 = _split_heads(qkv[:, 0:D], heads)
    k3 = _split_heads(qkv[:, D:2 * D], heads)
    v3 = _split_heads(qkv[:, 2 * D:3 * D], heads)
    ah = _mha_batched(q3, k3, v3, causal=causal)
    return x + _attn_out_proj(ah, woh, bo)


def _feed_forward(x, ln, w1, b1, w2, b2):
    xn = _layer_norm(x, ln)
    h = jnp.maximum(_bf16_dot(xn, w1, b1), 0.0)
    return x + _bf16_dot(h, w2, b2)


# ---------------------------------------------------------------------------
# Fused stack kernels
# ---------------------------------------------------------------------------

def _encoder_stack_kernel(cols_ref, conv_w_ref, conv_b_ref, pe_ref,
                          ln1_ref, wqkv_ref, bqkv_ref, woh_ref, bo_ref,
                          ln2_ref, w1_ref, b1_ref, w2_ref, b2_ref, lnf_ref,
                          o_ref, *, heads, embed_scale):
    l = pl.program_id(1)

    @pl.when(l == 0)
    def _():
        # Conv1d(F->D, k=3, same pad) as im2col matmul + sqrt(d_model) scale + PE.
        y = _bf16_dot(cols_ref[0], conv_w_ref[...], conv_b_ref[...])
        o_ref[0] = y * embed_scale + pe_ref[...]

    x = o_ref[0]                                                    # (T, D) carry
    x = _self_attention(x, ln1_ref[0], wqkv_ref[0], bqkv_ref[0],
                        woh_ref[0], bo_ref[0], heads=heads, causal=False)
    x = _feed_forward(x, ln2_ref[0], w1_ref[0], b1_ref[0], w2_ref[0], b2_ref[0])
    o_ref[0] = x

    @pl.when(l == pl.num_programs(1) - 1)
    def _():
        o_ref[0] = _layer_norm(x, lnf_ref[...])                     # encoder final LN


def _decoder_stack_kernel(emb_ref, pe_ref, e_ref,
                          ln1_ref, sa_wqkv_ref, sa_bqkv_ref, sa_woh_ref, sa_bo_ref,
                          ln2_ref, ca_wq_ref, ca_bq_ref, ca_wkv_ref, ca_bkv_ref,
                          ca_woh_ref, ca_bo_ref,
                          ln3_ref, w1_ref, b1_ref, w2_ref, b2_ref,
                          o_ref, *, heads, embed_scale):
    l = pl.program_id(1)

    @pl.when(l == 0)
    def _():
        o_ref[0] = emb_ref[0] * embed_scale + pe_ref[...]

    x = o_ref[0]                                                    # (S, D) carry
    D = x.shape[-1]

    # masked (causal) self-attention
    x = _self_attention(x, ln1_ref[0], sa_wqkv_ref[0], sa_bqkv_ref[0],
                        sa_woh_ref[0], sa_bo_ref[0], heads=heads, causal=True)

    # cross-attention over encoder outputs (src_mask is all-ones -> no bias)
    xn = _layer_norm(x, ln2_ref[0])
    q = _bf16_dot(xn, ca_wq_ref[0], ca_bq_ref[0])                   # (S, D)
    kv = _bf16_dot(e_ref[0], ca_wkv_ref[0], ca_bkv_ref[0])          # (T, 2D)
    q3 = _split_heads(q, heads)
    k3 = _split_heads(kv[:, 0:D], heads)
    v3 = _split_heads(kv[:, D:2 * D], heads)
    ah = _mha_batched(q3, k3, v3, causal=False)
    x = x + _attn_out_proj(ah, ca_woh_ref[0], ca_bo_ref[0])

    # feed-forward
    x = _feed_forward(x, ln3_ref[0], w1_ref[0], b1_ref[0], w2_ref[0], b2_ref[0])
    o_ref[0] = x


def _output_head_kernel(x_ref, lnf_ref, w_ref, b_ref, logits_ref, prob_ref):
    # fused: final decoder LayerNorm -> vocab projection -> softmax (dim=-1)
    xn = _layer_norm(x_ref[0], lnf_ref[...])
    logits = _bf16_dot(xn, w_ref[...], b_ref[...])
    logits_ref[0] = logits
    m = jnp.max(logits, axis=-1, keepdims=True)
    e = jnp.exp(logits - m)
    prob_ref[0] = e / jnp.sum(e, axis=-1, keepdims=True)            # exact div


# ---------------------------------------------------------------------------
# BlockSpec / compiler-param helpers
# ---------------------------------------------------------------------------

def _const_spec(shape, grid_rank):
    zeros = (0,) * len(shape)
    if grid_rank == 1:
        return pl.BlockSpec(shape, lambda b: zeros)
    return pl.BlockSpec(shape, lambda b, l: zeros)


def _batch_spec(shape):      # (1, ...) block of a (B, ...) array, constant in l
    zeros = (0,) * (len(shape) - 1)
    return pl.BlockSpec((1,) + tuple(shape[1:]), lambda b, l: (b,) + zeros)


def _layer_spec(shape):      # (1, ...) block of an (N, ...) stacked weight
    zeros = (0,) * (len(shape) - 1)
    return pl.BlockSpec((1,) + tuple(shape[1:]), lambda b, l: (l,) + zeros)


def _vmem_limit(operands, divisors, out_block_bytes):
    """Scoped-VMEM request sized to the resident blocks, with headroom."""
    total = out_block_bytes
    for a, d in zip(operands, divisors):
        total += (a.size * a.dtype.itemsize) // d
    # 2x for double-buffered pipeline blocks + headroom for kernel temporaries;
    # cap below v7x's 64 MiB physical VMEM.
    return int(min(2 * total + (16 << 20), 64 << 20))


# ---------------------------------------------------------------------------
# pallas_call wrappers
# ---------------------------------------------------------------------------

def encoder_stack(p, cols, heads):
    B, T, K = cols.shape
    D = p["conv_w"].shape[1]
    N = p["wqkv"].shape[0]
    d_ff = p["w1"].shape[2]
    dh = D // heads

    ops = (cols, p["conv_w"], p["conv_b"], p["pe"],
           p["ln1"], p["wqkv"], p["bqkv"], p["woh"], p["bo"],
           p["ln2"], p["w1"], p["b1"], p["w2"], p["b2"], p["lnf"])
    divs = (B, 1, 1, 1) + (N,) * 10 + (1,)
    vmem = _vmem_limit(ops, divs, T * D * 4)

    return pl.pallas_call(
        functools.partial(_encoder_stack_kernel, heads=heads,
                          embed_scale=math.sqrt(D)),
        out_shape=jax.ShapeDtypeStruct((B, T, D), F32),
        grid=(B, N),
        in_specs=[
            _batch_spec((B, T, K)),
            _const_spec((K, D), 2), _const_spec((1, D), 2), _const_spec((T, D), 2),
            _layer_spec((N, 2, D)),
            _layer_spec((N, D, 3 * D)), _layer_spec((N, 1, 3 * D)),
            _layer_spec((N, heads, dh, D)), _layer_spec((N, 1, D)),
            _layer_spec((N, 2, D)),
            _layer_spec((N, D, d_ff)), _layer_spec((N, 1, d_ff)),
            _layer_spec((N, d_ff, D)), _layer_spec((N, 1, D)),
            _const_spec((2, D), 2),
        ],
        out_specs=pl.BlockSpec((1, T, D), lambda b, l: (b, 0, 0)),
        compiler_params=pltpu.CompilerParams(
            dimension_semantics=("parallel", "arbitrary"),
            vmem_limit_bytes=vmem),
    )(*ops)


def decoder_stack(p, emb, pe, e_out, heads):
    B, S, D = emb.shape
    T = e_out.shape[1]
    N = p["sa_wqkv"].shape[0]
    d_ff = p["w1"].shape[2]
    dh = D // heads

    ops = (emb, pe, e_out,
           p["ln1"], p["sa_wqkv"], p["sa_bqkv"], p["sa_woh"], p["sa_bo"],
           p["ln2"], p["ca_wq"], p["ca_bq"], p["ca_wkv"], p["ca_bkv"],
           p["ca_woh"], p["ca_bo"],
           p["ln3"], p["w1"], p["b1"], p["w2"], p["b2"])
    divs = (B, 1, B) + (N,) * 17
    vmem = _vmem_limit(ops, divs, S * D * 4)

    return pl.pallas_call(
        functools.partial(_decoder_stack_kernel, heads=heads,
                          embed_scale=math.sqrt(D)),
        out_shape=jax.ShapeDtypeStruct((B, S, D), F32),
        grid=(B, N),
        in_specs=[
            _batch_spec((B, S, D)),
            _const_spec((S, D), 2),
            _batch_spec((B, T, D)),
            _layer_spec((N, 2, D)),
            _layer_spec((N, D, 3 * D)), _layer_spec((N, 1, 3 * D)),
            _layer_spec((N, heads, dh, D)), _layer_spec((N, 1, D)),
            _layer_spec((N, 2, D)),
            _layer_spec((N, D, D)), _layer_spec((N, 1, D)),
            _layer_spec((N, D, 2 * D)), _layer_spec((N, 1, 2 * D)),
            _layer_spec((N, heads, dh, D)), _layer_spec((N, 1, D)),
            _layer_spec((N, 2, D)),
            _layer_spec((N, D, d_ff)), _layer_spec((N, 1, d_ff)),
            _layer_spec((N, d_ff, D)), _layer_spec((N, 1, D)),
        ],
        out_specs=pl.BlockSpec((1, S, D), lambda b, l: (b, 0, 0)),
        compiler_params=pltpu.CompilerParams(
            dimension_semantics=("parallel", "arbitrary"),
            vmem_limit_bytes=vmem),
    )(*ops)


def output_head(x, lnf, w_pad, b_pad):
    B, S, D = x.shape
    Vp = w_pad.shape[1]
    ops = (x, lnf, w_pad, b_pad)
    vmem = _vmem_limit(ops, (B, 1, 1, 1), 2 * S * Vp * 4)
    # TODO(synk): for realistic vocab sizes, tile the vocab axis (grid over
    # ceil(Vp/1024) with an online-softmax scratch); the demo vocab fits whole.
    return pl.pallas_call(
        _output_head_kernel,
        out_shape=(jax.ShapeDtypeStruct((B, S, Vp), F32),
                   jax.ShapeDtypeStruct((B, S, Vp), F32)),
        grid=(B,),
        in_specs=[pl.BlockSpec((1, S, D), lambda b: (b, 0, 0)),
                  _const_spec((2, D), 1),
                  _const_spec((D, Vp), 1),
                  _const_spec((1, Vp), 1)],
        out_specs=(pl.BlockSpec((1, S, Vp), lambda b: (b, 0, 0)),
                   pl.BlockSpec((1, S, Vp), lambda b: (b, 0, 0))),
        compiler_params=pltpu.CompilerParams(
            dimension_semantics=("parallel",),
            vmem_limit_bytes=vmem),
    )(*ops)


# ---------------------------------------------------------------------------
# Model forward (plain-JAX glue around the three fused kernels)
# ---------------------------------------------------------------------------

def encoder_forward(p, src, heads):
    B, T, nfeat = src.shape
    # im2col for Conv1d(F -> d_model, k=3, padding=same); tiny temp kept in
    # plain JAX (XLA fuses pad+concat); the conv matmul is fused into the stack.
    padded = jnp.pad(src, ((0, 0), (1, 1), (0, 0)))
    cols = jnp.concatenate(
        [padded[:, 0:T], padded[:, 1:T + 1], padded[:, 2:T + 2]], axis=-1)
    x = encoder_stack(p, cols, heads)
    src_mask = jnp.ones((B, 1, T), F32)          # fMRI input: no padding
    return x, src_mask


def decoder_forward(p, trg, e_out, heads):
    B, S = trg.shape
    # TODO(synk): token-embedding gather stays in plain JAX (no clean
    # small-scale Pallas gather); everything after it is fused.
    emb = jnp.take(p["embed"], trg, axis=0)       # (B, S, D) f32
    pe = p["pe"][:S]
    return decoder_stack(p, emb, pe, e_out, heads)


@functools.partial(jax.jit, static_argnames=("heads", "trg_vocab"))
def duplex_transformer_conv_forward(params, src, trg, *, heads, trg_vocab):
    e_outputs, _src_mask = encoder_forward(params["encoder"], src, heads)
    d_output = decoder_forward(params["decoder"], trg, e_outputs, heads)
    logits_pad, prob_pad = output_head(d_output, params["decoder"]["lnf"],
                                       params["out_w_pad"], params["out_b_pad"])
    # slice away lane padding (padded logits carry -1e30, probs are 0)
    output = logits_pad[:, :, :trg_vocab]
    output_prob = prob_pad[:, :, :trg_vocab]      # == F.softmax(output, dim=2)
    return output, output_prob


# ---------------------------------------------------------------------------
# Deterministic parameter init (stacked / fused / bf16 layouts hoisted here)
# ---------------------------------------------------------------------------

def _dense(key, k_in, k_out):
    w = jax.random.normal(key, (k_in, k_out), F32) * 0.02
    return w, jnp.zeros((1, k_out), F32)


def _ln_params(d):
    return jnp.concatenate([jnp.ones((1, d), F32), jnp.zeros((1, d), F32)], axis=0)


def positional_encoding(seq_len, d_model):
    pos = jnp.arange(seq_len, dtype=F32)[:, None]
    i = jnp.arange(d_model // 2, dtype=F32)[None, :]
    angle = pos / jnp.power(10000.0, (2.0 * i) / d_model)
    pe = jnp.zeros((seq_len, d_model), F32)
    pe = pe.at[:, 0::2].set(jnp.sin(angle))
    pe = pe.at[:, 1::2].set(jnp.cos(angle))
    return pe


def _stack(layers, bf16_keys):
    out = {}
    for k in layers[0]:
        v = jnp.stack([lp[k] for lp in layers], axis=0)
        out[k] = v.astype(BF16) if k in bf16_keys else v
    return out


def _enc_layer(key, d_model, d_ff, heads):
    dh = d_model // heads
    ks = jax.random.split(key, 6)
    wq, bq = _dense(ks[0], d_model, d_model)
    wk, bk = _dense(ks[1], d_model, d_model)
    wv, bv = _dense(ks[2], d_model, d_model)
    wo, bo = _dense(ks[3], d_model, d_model)
    w1, b1 = _dense(ks[4], d_model, d_ff)
    w2, b2 = _dense(ks[5], d_ff, d_model)
    return dict(ln1=_ln_params(d_model), ln2=_ln_params(d_model),
                wqkv=jnp.concatenate([wq, wk, wv], axis=1),
                bqkv=jnp.concatenate([bq, bk, bv], axis=1),
                woh=wo.reshape(heads, dh, d_model), bo=bo,
                w1=w1, b1=b1, w2=w2, b2=b2)


def _dec_layer(key, d_model, d_ff, heads):
    dh = d_model // heads
    ks = jax.random.split(key, 10)
    wq, bq = _dense(ks[0], d_model, d_model)
    wk, bk = _dense(ks[1], d_model, d_model)
    wv, bv = _dense(ks[2], d_model, d_model)
    wo, bo = _dense(ks[3], d_model, d_model)
    cq, cbq = _dense(ks[4], d_model, d_model)
    ck, cbk = _dense(ks[5], d_model, d_model)
    cv, cbv = _dense(ks[6], d_model, d_model)
    co, cbo = _dense(ks[7], d_model, d_model)
    w1, b1 = _dense(ks[8], d_model, d_ff)
    w2, b2 = _dense(ks[9], d_ff, d_model)
    return dict(ln1=_ln_params(d_model), ln2=_ln_params(d_model),
                ln3=_ln_params(d_model),
                sa_wqkv=jnp.concatenate([wq, wk, wv], axis=1),
                sa_bqkv=jnp.concatenate([bq, bk, bv], axis=1),
                sa_woh=wo.reshape(heads, dh, d_model), sa_bo=bo,
                ca_wq=cq, ca_bq=cbq,
                ca_wkv=jnp.concatenate([ck, cv], axis=1),
                ca_bkv=jnp.concatenate([cbk, cbv], axis=1),
                ca_woh=co.reshape(heads, dh, d_model), ca_bo=cbo,
                w1=w1, b1=b1, w2=w2, b2=b2)


_ENC_BF16 = ("wqkv", "woh", "w1", "w2")
_DEC_BF16 = ("sa_wqkv", "sa_woh", "ca_wq", "ca_wkv", "ca_woh", "w1", "w2")


def init_params(key, *, time_steps, src_fmri_features, max_seq_length,
                trg_vocab, d_model, d_ff, N, heads):
    assert d_model % heads == 0 and d_model % 2 == 0
    k_enc, k_dec, k_out = jax.random.split(key, 3)

    # Encoder: conv embed (bf16) + PE + stacked layers + final LN.
    ks = jax.random.split(k_enc, N + 1)
    conv_w, conv_b = _dense(ks[0], 3 * src_fmri_features, d_model)
    enc_layers = [_enc_layer(ks[i + 1], d_model, d_ff, heads) for i in range(N)]
    encoder = dict(conv_w=conv_w.astype(BF16), conv_b=conv_b,
                   pe=positional_encoding(time_steps, d_model),
                   lnf=_ln_params(d_model),
                   **_stack(enc_layers, _ENC_BF16))

    # Decoder: token embed + PE + stacked layers; final LN consumed by head.
    ks = jax.random.split(k_dec, N + 1)
    embed = jax.random.normal(ks[0], (trg_vocab, d_model), F32) * 0.02
    dec_layers = [_dec_layer(ks[i + 1], d_model, d_ff, heads) for i in range(N)]
    decoder = dict(embed=embed,
                   pe=positional_encoding(max_seq_length, d_model),
                   lnf=_ln_params(d_model),
                   **_stack(dec_layers, _DEC_BF16))

    # Vocab projection padded to a lane-dense multiple of 128 (bias -1e30 on pad).
    out_w, out_b = _dense(k_out, d_model, trg_vocab)
    v_pad = ((trg_vocab + 127) // 128) * 128
    out_w_pad = jnp.zeros((d_model, v_pad), F32).at[:, :trg_vocab].set(out_w)
    out_b_pad = jnp.full((1, v_pad), PAD_BIAS, F32).at[:, :trg_vocab].set(out_b)

    return dict(encoder=encoder, decoder=decoder,
                out_w_pad=out_w_pad.astype(BF16), out_b_pad=out_b_pad)


# ---------------------------------------------------------------------------
# Main
# ---------------------------------------------------------------------------

if __name__ == "__main__":
    # Small, forward-consistent, lane-dense hyperparameters.
    batch = 2
    time_steps = 16
    src_fmri_features = 8
    max_seq_length = 16
    trg_seq = 16
    trg_vocab = 12
    d_model = 128        # multiple of 128 -> unmasked lane-dense stores
    d_ff = 256
    N = 2
    heads = 4

    key = jax.random.PRNGKey(0)
    k_params, k_src, k_trg = jax.random.split(key, 3)

    params = init_params(k_params, time_steps=time_steps,
                         src_fmri_features=src_fmri_features,
                         max_seq_length=max_seq_length, trg_vocab=trg_vocab,
                         d_model=d_model, d_ff=d_ff, N=N, heads=heads)

    src = jax.random.normal(k_src, (batch, time_steps, src_fmri_features), F32)
    trg = jax.random.randint(k_trg, (batch, trg_seq), 0, trg_vocab, jnp.int32)

    output, output_prob = duplex_transformer_conv_forward(
        params, src, trg, heads=heads, trg_vocab=trg_vocab)
    jax.block_until_ready((output, output_prob))

    assert output.shape == (batch, trg_seq, trg_vocab)
    assert output_prob.shape == (batch, trg_seq, trg_vocab)
    # softmax over dim=2 sums to 1 (padded lanes contribute exactly 0)
    assert jnp.allclose(jnp.sum(output_prob, axis=2), 1.0, atol=1e-4)
    assert bool(jnp.all(jnp.isfinite(output)))
    assert bool(jnp.all(jnp.isfinite(output_prob)))

    print("KERNEL_OK")
</pallas_src>

<mosaic_0001>
module attributes {stable_mosaic.version = 11 : i64} {
  func.func @_encoder_stack_kernel(%arg0: i32, %arg1: i32, %arg2: memref<1x16x24xf32, #tpu.memory_space<vmem>>, %arg3: memref<24x128xbf16, #tpu.memory_space<vmem>>, %arg4: memref<1x128xf32, #tpu.memory_space<vmem>>, %arg5: memref<16x128xf32, #tpu.memory_space<vmem>>, %arg6: memref<1x2x128xf32, #tpu.memory_space<vmem>>, %arg7: memref<1x128x384xbf16, #tpu.memory_space<vmem>>, %arg8: memref<1x1x384xf32, #tpu.memory_space<vmem>>, %arg9: memref<1x4x32x128xbf16, #tpu.memory_space<vmem>>, %arg10: memref<1x1x128xf32, #tpu.memory_space<vmem>>, %arg11: memref<1x2x128xf32, #tpu.memory_space<vmem>>, %arg12: memref<1x128x256xbf16, #tpu.memory_space<vmem>>, %arg13: memref<1x1x256xf32, #tpu.memory_space<vmem>>, %arg14: memref<1x256x128xbf16, #tpu.memory_space<vmem>>, %arg15: memref<1x1x128xf32, #tpu.memory_space<vmem>>, %arg16: memref<2x128xf32, #tpu.memory_space<vmem>>, %arg17: memref<1x16x128xf32, #tpu.memory_space<vmem>>) attributes {dimension_semantics = [#tpu.dimension_semantics<parallel>, #tpu.dimension_semantics<arbitrary>], iteration_bounds = array<i64: 2, 2>, scalar_prefetch = 0 : i64, scratch_operands = 0 : i64, tpu.core_type = #tpu.core_type<tc>, window_params = [{transform_indices = @transform_0, window_bounds = array<i64: 1, 16, 24>}, {pipeline_mode = #tpu.pipeline_mode<synchronous>, transform_indices = @transform_1, window_bounds = array<i64: 24, 128>}, {pipeline_mode = #tpu.pipeline_mode<synchronous>, transform_indices = @transform_2, window_bounds = array<i64: 1, 128>}, {pipeline_mode = #tpu.pipeline_mode<synchronous>, transform_indices = @transform_3, window_bounds = array<i64: 16, 128>}, {transform_indices = @transform_4, window_bounds = array<i64: 1, 2, 128>}, {transform_indices = @transform_5, window_bounds = array<i64: 1, 128, 384>}, {transform_indices = @transform_6, window_bounds = array<i64: 1, 1, 384>}, {transform_indices = @transform_7, window_bounds = array<i64: 1, 4, 32, 128>}, {transform_indices = @transform_8, window_bounds = array<i64: 1, 1, 128>}, {transform_indices = @transform_9, window_bounds = array<i64: 1, 2, 128>}, {transform_indices = @transform_10, window_bounds = array<i64: 1, 128, 256>}, {transform_indices = @transform_11, window_bounds = array<i64: 1, 1, 256>}, {transform_indices = @transform_12, window_bounds = array<i64: 1, 256, 128>}, {transform_indices = @transform_13, window_bounds = array<i64: 1, 1, 128>}, {pipeline_mode = #tpu.pipeline_mode<synchronous>, transform_indices = @transform_14, window_bounds = array<i64: 2, 128>}, {transform_indices = @transform_15, window_bounds = array<i64: 1, 16, 128>}]} {
    %c0_i32 = arith.constant 0 : i32
    %0 = arith.cmpi eq, %arg1, %c0_i32 : i32
    %1 = arith.extui %0 : i1 to i32
    %c0_i32_0 = arith.constant 0 : i32
    %2 = arith.cmpi ne, %1, %c0_i32_0 : i32
    scf.if %2 {
      %c0_58 = arith.constant 0 : index
      %c0_59 = arith.constant 0 : index
      %c0_60 = arith.constant 0 : index
      %144 = vector.load %arg2[%c0_58, %c0_59, %c0_60] : memref<1x16x24xf32, #tpu.memory_space<vmem>>, vector<1x16x24xf32>
      %145 = vector.shape_cast %144 : vector<1x16x24xf32> to vector<16x24xf32>
      %c0_61 = arith.constant 0 : index
      %c0_62 = arith.constant 0 : index
      %146 = vector.load %arg3[%c0_61, %c0_62] : memref<24x128xbf16, #tpu.memory_space<vmem>>, vector<24x128xbf16>
      %c0_63 = arith.constant 0 : index
      %c0_64 = arith.constant 0 : index
      %147 = vector.load %arg4[%c0_63, %c0_64] : memref<1x128xf32, #tpu.memory_space<vmem>>, vector<1x128xf32>
      %148 = arith.truncf %145 : vector<16x24xf32> to vector<16x24xbf16>
      %cst_65 = arith.constant dense<0.000000e+00> : vector<16x128xf32>
      %149 = tpu.matmul %148, %146, %cst_65 {dimension_numbers = #tpu.dot_dimension_numbers<[1], [0], [0], [1], [0, 0, 1, 1], [], []>} : vector<16x24xbf16>, vector<24x128xbf16>, vector<16x128xf32> -> vector<16x128xf32>
      %150 = vector.broadcast %147 : vector<1x128xf32> to vector<16x128xf32>
      %151 = arith.addf %149, %150 : vector<16x128xf32>
      %cst_66 = arith.constant 11.3137083 : f32
      %152 = vector.broadcast %cst_66 : f32 to vector<16x128xf32>
      %153 = arith.mulf %151, %152 : vector<16x128xf32>
      %c0_67 = arith.constant 0 : index
      %c0_68 = arith.constant 0 : index
      %154 = vector.load %arg5[%c0_67, %c0_68] : memref<16x128xf32, #tpu.memory_space<vmem>>, vector<16x128xf32>
      %155 = arith.addf %153, %154 : vector<16x128xf32>
      %c0_69 = arith.constant 0 : index
      %c0_70 = arith.constant 0 : index
      %c0_71 = arith.constant 0 : index
      %156 = vector.load %arg17[%c0_69, %c0_70, %c0_71] : memref<1x16x128xf32, #tpu.memory_space<vmem>>, vector<1x16x128xf32>
      %157 = vector.shape_cast %156 : vector<1x16x128xf32> to vector<16x128xf32>
      %158 = vector.shape_cast %155 : vector<16x128xf32> to vector<1x16x128xf32>
      tpu.vector_store %arg17[%c0_69, %c0_70, %c0_71], %158 {strides = array<i32>} : memref<1x16x128xf32, #tpu.memory_space<vmem>>, vector<1x16x128xf32>,
    } else {
    }
    %c0 = arith.constant 0 : index
    %c0_1 = arith.constant 0 : index
    %c0_2 = arith.constant 0 : index
    %3 = vector.load %arg17[%c0, %c0_1, %c0_2] : memref<1x16x128xf32, #tpu.memory_space<vmem>>, vector<1x16x128xf32>
    %4 = vector.shape_cast %3 : vector<1x16x128xf32> to vector<16x128xf32>
    %c0_3 = arith.constant 0 : index
    %c0_4 = arith.constant 0 : index
    %c0_5 = arith.constant 0 : index
    %5 = vector.load %arg6[%c0_3, %c0_4, %c0_5] : memref<1x2x128xf32, #tpu.memory_space<vmem>>, vector<1x2x128xf32>
    %6 = vector.shape_cast %5 : vector<1x2x128xf32> to vector<2x128xf32>
    %c0_6 = arith.constant 0 : index
    %c0_7 = arith.constant 0 : index
    %c0_8 = arith.constant 0 : index
    %7 = vector.load %arg7[%c0_6, %c0_7, %c0_8] : memref<1x128x384xbf16, #tpu.memory_space<vmem>>, vector<1x128x384xbf16>
    %8 = vector.shape_cast %7 : vector<1x128x384xbf16> to vector<128x384xbf16>
    %c0_9 = arith.constant 0 : index
    %c0_10 = arith.constant 0 : index
    %c0_11 = arith.constant 0 : index
    %9 = vector.load %arg8[%c0_9, %c0_10, %c0_11] : memref<1x1x384xf32, #tpu.memory_space<vmem>>, vector<1x1x384xf32>
    %10 = vector.shape_cast %9 : vector<1x1x384xf32> to vector<1x384xf32>
    %c0_12 = arith.constant 0 : index
    %c0_13 = arith.constant 0 : index
    %c0_14 = arith.constant 0 : index
    %c0_15 = arith.constant 0 : index
    %11 = vector.load %arg9[%c0_12, %c0_13, %c0_14, %c0_15] : memref<1x4x32x128xbf16, #tpu.memory_space<vmem>>, vector<1x4x32x128xbf16>
    %12 = vector.shape_cast %11 : vector<1x4x32x128xbf16> to vector<4x32x128xbf16>
    %c0_16 = arith.constant 0 : index
    %c0_17 = arith.constant 0 : index
    %c0_18 = arith.constant 0 : index
    %13 = vector.load %arg10[%c0_16, %c0_17, %c0_18] : memref<1x1x128xf32, #tpu.memory_space<vmem>>, vector<1x1x128xf32>
    %14 = vector.shape_cast %13 : vector<1x1x128xf32> to vector<1x128xf32>
    %15 = vector.extract_strided_slice %6 {offsets = [0, 0], sizes = [1, 128], strides = [1, 1]} : vector<2x128xf32> to vector<1x128xf32>
    %16 = vector.extract_strided_slice %6 {offsets = [1, 0], sizes = [1, 128], strides = [1, 1]} : vector<2x128xf32> to vector<1x128xf32>
    %cst = arith.constant dense<0.000000e+00> : vector<16xf32>
    %17 = vector.multi_reduction <add>, %4, %cst [1] : vector<16x128xf32> to vector<16xf32>
    %18 = vector.shape_cast %17 : vector<16xf32> to vector<16x1xf32>
    %cst_19 = arith.constant 1.280000e+02 : f32
    %19 = vector.broadcast %cst_19 : f32 to vector<16x1xf32>
    %20 = arith.divf %18, %19 : vector<16x1xf32>
    %21 = vector.broadcast %20 : vector<16x1xf32> to vector<16x128xf32>
    %22 = arith.subf %4, %21 : vector<16x128xf32>
    %23 = arith.mulf %22, %22 : vector<16x128xf32>
    %cst_20 = arith.constant dense<0.000000e+00> : vector<16xf32>
    %24 = vector.multi_reduction <add>, %23, %cst_20 [1] : vector<16x128xf32> to vector<16xf32>
    %25 = vector.shape_cast %24 : vector<16xf32> to vector<16x1xf32>
    %cst_21 = arith.constant 1.280000e+02 : f32
    %26 = vector.broadcast %cst_21 : f32 to vector<16x1xf32>
    %27 = arith.divf %25, %26 : vector<16x1xf32>
    %cst_22 = arith.constant 9.99999974E-6 : f32
    %28 = vector.broadcast %cst_22 : f32 to vector<16x1xf32>
    %29 = arith.addf %27, %28 : vector<16x1xf32>
    %30 = math.rsqrt %29 : vector<16x1xf32>
    %31 = vector.broadcast %30 : vector<16x1xf32> to vector<16x128xf32>
    %32 = arith.mulf %22, %31 : vector<16x128xf32>
    %33 = vector.broadcast %15 : vector<1x128xf32> to vector<16x128xf32>
    %34 = arith.mulf %32, %33 : vector<16x128xf32>
    %35 = vector.broadcast %16 : vector<1x128xf32> to vector<16x128xf32>
    %36 = arith.addf %34, %35 : vector<16x128xf32>
    %37 = arith.truncf %36 : vector<16x128xf32> to vector<16x128xbf16>
    %cst_23 = arith.constant dense<0.000000e+00> : vector<16x384xf32>
    %38 = tpu.matmul %37, %8, %cst_23 {dimension_numbers = #tpu.dot_dimension_numbers<[1], [0], [0], [1], [0, 0, 1, 1], [], []>} : vector<16x128xbf16>, vector<128x384xbf16>, vector<16x384xf32> -> vector<16x384xf32>
    %39 = vector.broadcast %10 : vector<1x384xf32> to vector<16x384xf32>
    %40 = arith.addf %38, %39 : vector<16x384xf32>
    %41 = vector.extract_strided_slice %40 {offsets = [0, 0], sizes = [16, 128], strides = [1, 1]} : vector<16x384xf32> to vector<16x128xf32>
    %42 = vector.extract_strided_slice %41 {offsets = [0, 0], sizes = [16, 32], strides = [1, 1]} : vector<16x128xf32> to vector<16x32xf32>
    %43 = vector.shape_cast %42 : vector<16x32xf32> to vector<1x16x32xf32>
    %44 = vector.extract_strided_slice %41 {offsets = [0, 32], sizes = [16, 32], strides = [1, 1]} : vector<16x128xf32> to vector<16x32xf32>
    %45 = vector.shape_cast %44 : vector<16x32xf32> to vector<1x16x32xf32>
    %46 = vector.extract_strided_slice %41 {offsets = [0, 64], sizes = [16, 32], strides = [1, 1]} : vector<16x128xf32> to vector<16x32xf32>
    %47 = vector.shape_cast %46 : vector<16x32xf32> to vector<1x16x32xf32>
    %48 = vector.extract_strided_slice %41 {offsets = [0, 96], sizes = [16, 32], strides = [1, 1]} : vector<16x128xf32> to vector<16x32xf32>
    %49 = vector.shape_cast %48 : vector<16x32xf32> to vector<1x16x32xf32>
    %50 = tpu.concatenate %43, %45, %47, %49 in 0 : vector<1x16x32xf32>, vector<1x16x32xf32>, vector<1x16x32xf32>, vector<1x16x32xf32> -> vector<4x16x32xf32>
    %51 = vector.extract_strided_slice %40 {offsets = [0, 128], sizes = [16, 128], strides = [1, 1]} : vector<16x384xf32> to vector<16x128xf32>
    %52 = vector.extract_strided_slice %51 {offsets = [0, 0], sizes = [16, 32], strides = [1, 1]} : vector<16x128xf32> to vector<16x32xf32>
    %53 = vector.shape_cast %52 : vector<16x32xf32> to vector<1x16x32xf32>
    %54 = vector.extract_strided_slice %51 {offsets = [0, 32], sizes = [16, 32], strides = [1, 1]} : vector<16x128xf32> to vector<16x32xf32>
    %55 = vector.shape_cast %54 : vector<16x32xf32> to vector<1x16x32xf32>
    %56 = vector.extract_strided_slice %51 {offsets = [0, 64], sizes = [16, 32], strides = [1, 1]} : vector<16x128xf32> to vector<16x32xf32>
    %57 = vector.shape_cast %56 : vector<16x32xf32> to vector<1x16x32xf32>
    %58 = vector.extract_strided_slice %51 {offsets = [0, 96], sizes = [16, 32], strides = [1, 1]} : vector<16x128xf32> to vector<16x32xf32>
    %59 = vector.shape_cast %58 : vector<16x32xf32> to vector<1x16x32xf32>
    %60 = tpu.concatenate %53, %55, %57, %59 in 0 : vector<1x16x32xf32>, vector<1x16x32xf32>, vector<1x16x32xf32>, vector<1x16x32xf32> -> vector<4x16x32xf32>
    %61 = vector.extract_strided_slice %40 {offsets = [0, 256], sizes = [16, 128], strides = [1, 1]} : vector<16x384xf32> to vector<16x128xf32>
    %62 = vector.extract_strided_slice %61 {offsets = [0, 0], sizes = [16, 32], strides = [1, 1]} : vector<16x128xf32> to vector<16x32xf32>
    %63 = vector.shape_cast %62 : vector<16x32xf32> to vector<1x16x32xf32>
    %64 = vector.extract_strided_slice %61 {offsets = [0, 32], sizes = [16, 32], strides = [1, 1]} : vector<16x128xf32> to vector<16x32xf32>
    %65 = vector.shape_cast %64 : vector<16x32xf32> to vector<1x16x32xf32>
    %66 = vector.extract_strided_slice %61 {offsets = [0, 64], sizes = [16, 32], strides = [1, 1]} : vector<16x128xf32> to vector<16x32xf32>
    %67 = vector.shape_cast %66 : vector<16x32xf32> to vector<1x16x32xf32>
    %68 = vector.extract_strided_slice %61 {offsets = [0, 96], sizes = [16, 32], strides = [1, 1]} : vector<16x128xf32> to vector<16x32xf32>
    %69 = vector.shape_cast %68 : vector<16x32xf32> to vector<1x16x32xf32>
    %70 = tpu.concatenate %63, %65, %67, %69 in 0 : vector<1x16x32xf32>, vector<1x16x32xf32>, vector<1x16x32xf32>, vector<1x16x32xf32> -> vector<4x16x32xf32>
    %71 = arith.truncf %50 : vector<4x16x32xf32> to vector<4x16x32xbf16>
    %72 = arith.truncf %60 : vector<4x16x32xf32> to vector<4x16x32xbf16>
    %cst_24 = arith.constant dense<0.000000e+00> : vector<4x16x16xf32>
    %73 = tpu.matmul %71, %72, %cst_24 {dimension_numbers = #tpu.dot_dimension_numbers<[2], [2], [1], [1], [0, 0, 0, 1, 1, 1], [0], [0]>} : vector<4x16x32xbf16>, vector<4x16x32xbf16>, vector<4x16x16xf32> -> vector<4x16x16xf32>
    %cst_25 = arith.constant 0.176776692 : f32
    %74 = vector.broadcast %cst_25 : f32 to vector<4x16x16xf32>
    %75 = arith.mulf %73, %74 : vector<4x16x16xf32>
    %cst_26 = arith.constant dense<0xFF800000> : vector<4x16xf32>
    %76 = vector.multi_reduction <maximumf>, %75, %cst_26 [2] : vector<4x16x16xf32> to vector<4x16xf32>
    %77 = vector.shape_cast %76 : vector<4x16xf32> to vector<4x16x1xf32>
    %78 = vector.broadcast %77 : vector<4x16x1xf32> to vector<4x16x16xf32>
    %79 = arith.subf %75, %78 : vector<4x16x16xf32>
    %80 = math.exp %79 : vector<4x16x16xf32>
    %cst_27 = arith.constant dense<0.000000e+00> : vector<4x16xf32>
    %81 = vector.multi_reduction <add>, %80, %cst_27 [2] : vector<4x16x16xf32> to vector<4x16xf32>
    %82 = vector.shape_cast %81 : vector<4x16xf32> to vector<4x16x1xf32>
    %83 = tpu.reciprocal %82 {approx = true} : vector<4x16x1xf32> -> vector<4x16x1xf32>
    %84 = vector.broadcast %83 : vector<4x16x1xf32> to vector<4x16x16xf32>
    %85 = arith.mulf %80, %84 : vector<4x16x16xf32>
    %86 = arith.truncf %85 : vector<4x16x16xf32> to vector<4x16x16xbf16>
    %87 = arith.truncf %70 : vector<4x16x32xf32> to vector<4x16x32xbf16>
    %cst_28 = arith.constant dense<0.000000e+00> : vector<4x16x32xf32>
    %88 = tpu.matmul %86, %87, %cst_28 {dimension_numbers = #tpu.dot_dimension_numbers<[2], [1], [1], [2], [0, 0, 0, 1, 1, 2], [0], [0]>} : vector<4x16x16xbf16>, vector<4x16x32xbf16>, vector<4x16x32xf32> -> vector<4x16x32xf32>
    %89 = arith.truncf %88 : vector<4x16x32xf32> to vector<4x16x32xbf16>
    %cst_29 = arith.constant dense<0.000000e+00> : vector<4x16x128xf32>
    %90 = tpu.matmul %89, %12, %cst_29 {dimension_numbers = #tpu.dot_dimension_numbers<[2], [1], [1], [2], [0, 0, 0, 1, 1, 2], [0], [0]>} : vector<4x16x32xbf16>, vector<4x32x128xbf16>, vector<4x16x128xf32> -> vector<4x16x128xf32>
    %cst_30 = arith.constant dense<0.000000e+00> : vector<16x128xf32>
    %91 = vector.multi_reduction <add>, %90, %cst_30 [0] : vector<4x16x128xf32> to vector<16x128xf32>
    %92 = vector.broadcast %14 : vector<1x128xf32> to vector<16x128xf32>
    %93 = arith.addf %91, %92 : vector<16x128xf32>
    %94 = arith.addf %4, %93 : vector<16x128xf32>
    %c0_31 = arith.constant 0 : index
    %c0_32 = arith.constant 0 : index
    %c0_33 = arith.constant 0 : index
    %95 = vector.load %arg11[%c0_31, %c0_32, %c0_33] : memref<1x2x128xf32, #tpu.memory_space<vmem>>, vector<1x2x128xf32>
    %96 = vector.shape_cast %95 : vector<1x2x128xf32> to vector<2x128xf32>
    %c0_34 = arith.constant 0 : index
    %c0_35 = arith.constant 0 : index
    %c0_36 = arith.constant 0 : index
    %97 = vector.load %arg12[%c0_34, %c0_35, %c0_36] : memref<1x128x256xbf16, #tpu.memory_space<vmem>>, vector<1x128x256xbf16>
    %98 = vector.shape_cast %97 : vector<1x128x256xbf16> to vector<128x256xbf16>
    %c0_37 = arith.constant 0 : index
    %c0_38 = arith.constant 0 : index
    %c0_39 = arith.constant 0 : index
    %99 = vector.load %arg13[%c0_37, %c0_38, %c0_39] : memref<1x1x256xf32, #tpu.memory_space<vmem>>, vector<1x1x256xf32>
    %100 = vector.shape_cast %99 : vector<1x1x256xf32> to vector<1x256xf32>
    %c0_40 = arith.constant 0 : index
    %c0_41 = arith.constant 0 : index
    %c0_42 = arith.constant 0 : index
    %101 = vector.load %arg14[%c0_40, %c0_41, %c0_42] : memref<1x256x128xbf16, #tpu.memory_space<vmem>>, vector<1x256x128xbf16>
    %102 = vector.shape_cast %101 : vector<1x256x128xbf16> to vector<256x128xbf16>
    %c0_43 = arith.constant 0 : index
    %c0_44 = arith.constant 0 : index
    %c0_45 = arith.constant 0 : index
    %103 = vector.load %arg15[%c0_43, %c0_44, %c0_45] : memref<1x1x128xf32, #tpu.memory_space<vmem>>, vector<1x1x128xf32>
    %104 = vector.shape_cast %103 : vector<1x1x128xf32> to vector<1x128xf32>
    %105 = vector.extract_strided_slice %96 {offsets = [0, 0], sizes = [1, 128], strides = [1, 1]} : vector<2x128xf32> to vector<1x128xf32>
    %106 = vector.extract_strided_slice %96 {offsets = [1, 0], sizes = [1, 128], strides = [1, 1]} : vector<2x128xf32> to vector<1x128xf32>
    %cst_46 = arith.constant dense<0.000000e+00> : vector<16xf32>
    %107 = vector.multi_reduction <add>, %94, %cst_46 [1] : vector<16x128xf32> to vector<16xf32>
    %108 = vector.shape_cast %107 : vector<16xf32> to vector<16x1xf32>
    %cst_47 = arith.constant 1.280000e+02 : f32
    %109 = vector.broadcast %cst_47 : f32 to vector<16x1xf32>
    %110 = arith.divf %108, %109 : vector<16x1xf32>
    %111 = vector.broadcast %110 : vector<16x1xf32> to vector<16x128xf32>
    %112 = arith.subf %94, %111 : vector<16x128xf32>
    %113 = arith.mulf %112, %112 : vector<16x128xf32>
    %cst_48 = arith.constant dense<0.000000e+00> : vector<16xf32>
    %114 = vector.multi_reduction <add>, %113, %cst_48 [1] : vector<16x128xf32> to vector<16xf32>
    %115 = vector.shape_cast %114 : vector<16xf32> to vector<16x1xf32>
    %cst_49 = arith.constant 1.280000e+02 : f32
    %116 = vector.broadcast %cst_49 : f32 to vector<16x1xf32>
    %117 = arith.divf %115, %116 : vector<16x1xf32>
    %cst_50 = arith.constant 9.99999974E-6 : f32
    %118 = vector.broadcast %cst_50 : f32 to vector<16x1xf32>
    %119 = arith.addf %117, %118 : vector<16x1xf32>
    %120 = math.rsqrt %119 : vector<16x1xf32>
    %121 = vector.broadcast %120 : vector<16x1xf32> to vector<16x128xf32>
    %122 = arith.mulf %112, %121 : vector<16x128xf32>
    %123 = vector.broadcast %105 : vector<1x128xf32> to vector<16x128xf32>
    %124 = arith.mulf %122, %123 : vector<16x128xf32>
    %125 = vector.broadcast %106 : vector<1x128xf32> to vector<16x128xf32>
    %126 = arith.addf %124, %125 : vector<16x128xf32>
    %127 = arith.truncf %126 : vector<16x128xf32> to vector<16x128xbf16>
    %cst_51 = arith.constant dense<0.000000e+00> : vector<16x256xf32>
    %128 = tpu.matmul %127, %98, %cst_51 {dimension_numbers = #tpu.dot_dimension_numbers<[1], [0], [0], [1], [0, 0, 1, 1], [], []>} : vector<16x128xbf16>, vector<128x256xbf16>, vector<16x256xf32> -> vector<16x256xf32>
    %129 = vector.broadcast %100 : vector<1x256xf32> to vector<16x256xf32>
    %130 = arith.addf %128, %129 : vector<16x256xf32>
    %cst_52 = arith.constant 0.000000e+00 : f32
    %131 = vector.broadcast %cst_52 : f32 to vector<16x256xf32>
    %132 = arith.maximumf %130, %131 : vector<16x256xf32>
    %133 = arith.truncf %132 : vector<16x256xf32> to vector<16x256xbf16>
    %cst_53 = arith.constant dense<0.000000e+00> : vector<16x128xf32>
    %134 = tpu.matmul %133, %102, %cst_53 {dimension_numbers = #tpu.dot_dimension_numbers<[1], [0], [0], [1], [0, 0, 1, 1], [], []>} : vector<16x256xbf16>, vector<256x128xbf16>, vector<16x128xf32> -> vector<16x128xf32>
    %135 = vector.broadcast %104 : vector<1x128xf32> to vector<16x128xf32>
    %136 = arith.addf %134, %135 : vector<16x128xf32>
    %137 = arith.addf %94, %136 : vector<16x128xf32>
    %c0_54 = arith.constant 0 : index
    %c0_55 = arith.constant 0 : index
    %c0_56 = arith.constant 0 : index
    %138 = vector.load %arg17[%c0_54, %c0_55, %c0_56] : memref<1x16x128xf32, #tpu.memory_space<vmem>>, vector<1x16x128xf32>
    %139 = vector.shape_cast %138 : vector<1x16x128xf32> to vector<16x128xf32>
    %140 = vector.shape_cast %137 : vector<16x128xf32> to vector<1x16x128xf32>
    tpu.vector_store %arg17[%c0_54, %c0_55, %c0_56], %140 {strides = array<i32>} : memref<1x16x128xf32, #tpu.memory_space<vmem>>, vector<1x16x128xf32>,
    %c1_i32 = arith.constant 1 : i32
    %141 = arith.cmpi eq, %arg1, %c1_i32 : i32
    %142 = arith.extui %141 : i1 to i32
    %c0_i32_57 = arith.constant 0 : i32
    %143 = arith.cmpi ne, %142, %c0_i32_57 : i32
    scf.if %143 {
      %c0_58 = arith.constant 0 : index
      %c0_59 = arith.constant 0 : index
      %144 = vector.load %arg16[%c0_58, %c0_59] : memref<2x128xf32, #tpu.memory_space<vmem>>, vector<2x128xf32>
      %145 = vector.extract_strided_slice %144 {offsets = [0, 0], sizes = [1, 128], strides = [1, 1]} : vector<2x128xf32> to vector<1x128xf32>
      %146 = vector.extract_strided_slice %144 {offsets = [1, 0], sizes = [1, 128], strides = [1, 1]} : vector<2x128xf32> to vector<1x128xf32>
      %cst_60 = arith.constant dense<0.000000e+00> : vector<16xf32>
      %147 = vector.multi_reduction <add>, %137, %cst_60 [1] : vector<16x128xf32> to vector<16xf32>
      %148 = vector.shape_cast %147 : vector<16xf32> to vector<16x1xf32>
      %cst_61 = arith.constant 1.280000e+02 : f32
      %149 = vector.broadcast %cst_61 : f32 to vector<16x1xf32>
      %150 = arith.divf %148, %149 : vector<16x1xf32>
      %151 = vector.broadcast %150 : vector<16x1xf32> to vector<16x128xf32>
      %152 = arith.subf %137, %151 : vector<16x128xf32>
      %153 = arith.mulf %152, %152 : vector<16x128xf32>
      %cst_62 = arith.constant dense<0.000000e+00> : vector<16xf32>
      %154 = vector.multi_reduction <add>, %153, %cst_62 [1] : vector<16x128xf32> to vector<16xf32>
      %155 = vector.shape_cast %154 : vector<16xf32> to vector<16x1xf32>
      %cst_63 = arith.constant 1.280000e+02 : f32
      %156 = vector.broadcast %cst_63 : f32 to vector<16x1xf32>
      %157 = arith.divf %155, %156 : vector<16x1xf32>
      %cst_64 = arith.constant 9.99999974E-6 : f32
      %158 = vector.broadcast %cst_64 : f32 to vector<16x1xf32>
      %159 = arith.addf %157, %158 : vector<16x1xf32>
      %160 = math.rsqrt %159 : vector<16x1xf32>
      %161 = vector.broadcast %160 : vector<16x1xf32> to vector<16x128xf32>
      %162 = arith.mulf %152, %161 : vector<16x128xf32>
      %163 = vector.broadcast %145 : vector<1x128xf32> to vector<16x128xf32>
      %164 = arith.mulf %162, %163 : vector<16x128xf32>
      %165 = vector.broadcast %146 : vector<1x128xf32> to vector<16x128xf32>
      %166 = arith.addf %164, %165 : vector<16x128xf32>
      %c0_65 = arith.constant 0 : index
      %c0_66 = arith.constant 0 : index
      %c0_67 = arith.constant 0 : index
      %167 = vector.load %arg17[%c0_65, %c0_66, %c0_67] : memref<1x16x128xf32, #tpu.memory_space<vmem>>, vector<1x16x128xf32>
      %168 = vector.shape_cast %167 : vector<1x16x128xf32> to vector<16x128xf32>
      %169 = vector.shape_cast %166 : vector<16x128xf32> to vector<1x16x128xf32>
      tpu.vector_store %arg17[%c0_65, %c0_66, %c0_67], %169 {strides = array<i32>} : memref<1x16x128xf32, #tpu.memory_space<vmem>>, vector<1x16x128xf32>,
    } else {
    }
    return
  }
  func.func @transform_0(%arg0: i32, %arg1: i32) -> (i32, i32, i32) {
    %c0_i32 = arith.constant 0 : i32
    %c0_i32_0 = arith.constant 0 : i32
    %c0_i32_1 = arith.constant 0 : i32
    return %arg0, %c0_i32, %c0_i32_0 : i32, i32, i32
  }
  func.func @transform_1(%arg0: i32, %arg1: i32) -> (i32, i32) {
    %c0_i32 = arith.constant 0 : i32
    %c0_i32_0 = arith.constant 0 : i32
    %c0_i32_1 = arith.constant 0 : i32
    return %c0_i32, %c0_i32_0 : i32, i32
  }
  func.func @transform_2(%arg0: i32, %arg1: i32) -> (i32, i32) {
    %c0_i32 = arith.constant 0 : i32
    %c0_i32_0 = arith.constant 0 : i32
    %c0_i32_1 = arith.constant 0 : i32
    return %c0_i32, %c0_i32_0 : i32, i32
  }
  func.func @transform_3(%arg0: i32, %arg1: i32) -> (i32, i32) {
    %c0_i32 = arith.constant 0 : i32
    %c0_i32_0 = arith.constant 0 : i32
    %c0_i32_1 = arith.constant 0 : i32
    return %c0_i32, %c0_i32_0 : i32, i32
  }
  func.func @transform_4(%arg0: i32, %arg1: i32) -> (i32, i32, i32) {
    %c0_i32 = arith.constant 0 : i32
    %c0_i32_0 = arith.constant 0 : i32
    %c0_i32_1 = arith.constant 0 : i32
    return %arg1, %c0_i32, %c0_i32_0 : i32, i32, i32
  }
  func.func @transform_5(%arg0: i32, %arg1: i32) -> (i32, i32, i32) {
    %c0_i32 = arith.constant 0 : i32
    %c0_i32_0 = arith.constant 0 : i32
    %c0_i32_1 = arith.constant 0 : i32
    return %arg1, %c0_i32, %c0_i32_0 : i32, i32, i32
  }
  func.func @transform_6(%arg0: i32, %arg1: i32) -> (i32, i32, i32) {
    %c0_i32 = arith.constant 0 : i32
    %c0_i32_0 = arith.constant 0 : i32
    %c0_i32_1 = arith.constant 0 : i32
    return %arg1, %c0_i32, %c0_i32_0 : i32, i32, i32
  }
  func.func @transform_7(%arg0: i32, %arg1: i32) -> (i32, i32, i32, i32) {
    %c0_i32 = arith.constant 0 : i32
    %c0_i32_0 = arith.constant 0 : i32
    %c0_i32_1 = arith.constant 0 : i32
    %c0_i32_2 = arith.constant 0 : i32
    return %arg1, %c0_i32, %c0_i32_0, %c0_i32_1 : i32, i32, i32, i32
  }
  func.func @transform_8(%arg0: i32, %arg1: i32) -> (i32, i32, i32) {
    %c0_i32 = arith.constant 0 : i32
    %c0_i32_0 = arith.constant 0 : i32
    %c0_i32_1 = arith.constant 0 : i32
    return %arg1, %c0_i32, %c0_i32_0 : i32, i32, i32
  }
  func.func @transform_9(%arg0: i32, %arg1: i32) -> (i32, i32, i32) {
    %c0_i32 = arith.constant 0 : i32
    %c0_i32_0 = arith.constant 0 : i32
    %c0_i32_1 = arith.constant 0 : i32
    return %arg1, %c0_i32, %c0_i32_0 : i32, i32, i32
  }
  func.func @transform_10(%arg0: i32, %arg1: i32) -> (i32, i32, i32) {
    %c0_i32 = arith.constant 0 : i32
    %c0_i32_0 = arith.constant 0 : i32
    %c0_i32_1 = arith.constant 0 : i32
    return %arg1, %c0_i32, %c0_i32_0 : i32, i32, i32
  }
  func.func @transform_11(%arg0: i32, %arg1: i32) -> (i32, i32, i32) {
    %c0_i32 = arith.constant 0 : i32
    %c0_i32_0 = arith.constant 0 : i32
    %c0_i32_1 = arith.constant 0 : i32
    return %arg1, %c0_i32, %c0_i32_0 : i32, i32, i32
  }
  func.func @transform_12(%arg0: i32, %arg1: i32) -> (i32, i32, i32) {
    %c0_i32 = arith.constant 0 : i32
    %c0_i32_0 = arith.constant 0 : i32
    %c0_i32_1 = arith.constant 0 : i32
    return %arg1, %c0_i32, %c0_i32_0 : i32, i32, i32
  }
  func.func @transform_13(%arg0: i32, %arg1: i32) -> (i32, i32, i32) {
    %c0_i32 = arith.constant 0 : i32
    %c0_i32_0 = arith.constant 0 : i32
    %c0_i32_1 = arith.constant 0 : i32
    return %arg1, %c0_i32, %c0_i32_0 : i32, i32, i32
  }
  func.func @transform_14(%arg0: i32, %arg1: i32) -> (i32, i32) {
    %c0_i32 = arith.constant 0 : i32
    %c0_i32_0 = arith.constant 0 : i32
    %c0_i32_1 = arith.constant 0 : i32
    return %c0_i32, %c0_i32_0 : i32, i32
  }
  func.func @transform_15(%arg0: i32, %arg1: i32) -> (i32, i32, i32) {
    %c0_i32 = arith.constant 0 : i32
    %c0_i32_0 = arith.constant 0 : i32
    %c0_i32_1 = arith.constant 0 : i32
    return %arg0, %c0_i32, %c0_i32_0 : i32, i32, i32
  }
}

module attributes {stable_mosaic.version = 11 : i64} {
  func.func @_output_head_kernel(%arg0: i32, %arg1: memref<1x16x128xf32, #tpu.memory_space<vmem>>, %arg2: memref<2x128xf32, #tpu.memory_space<vmem>>, %arg3: memref<128x128xbf16, #tpu.memory_space<vmem>>, %arg4: memref<1x128xf32, #tpu.memory_space<vmem>>, %arg5: memref<1x16x128xf32, #tpu.memory_space<vmem>>, %arg6: memref<1x16x128xf32, #tpu.memory_space<vmem>>) attributes {dimension_semantics = [#tpu.dimension_semantics<parallel>], iteration_bounds = array<i64: 2>, scalar_prefetch = 0 : i64, scratch_operands = 0 : i64, tpu.core_type = #tpu.core_type<tc>, window_params = [{transform_indices = @transform_0, window_bounds = array<i64: 1, 16, 128>}, {pipeline_mode = #tpu.pipeline_mode<synchronous>, transform_indices = @transform_1, window_bounds = array<i64: 2, 128>}, {pipeline_mode = #tpu.pipeline_mode<synchronous>, transform_indices = @transform_2, window_bounds = array<i64: 128, 128>}, {pipeline_mode = #tpu.pipeline_mode<synchronous>, transform_indices = @transform_3, window_bounds = array<i64: 1, 128>}, {transform_indices = @transform_4, window_bounds = array<i64: 1, 16, 128>}, {transform_indices = @transform_5, window_bounds = array<i64: 1, 16, 128>}]} {
    %c0 = arith.constant 0 : index
    %c0_0 = arith.constant 0 : index
    %c0_1 = arith.constant 0 : index
    %0 = vector.load %arg1[%c0, %c0_0, %c0_1] : memref<1x16x128xf32, #tpu.memory_space<vmem>>, vector<1x16x128xf32>
    %1 = vector.shape_cast %0 : vector<1x16x128xf32> to vector<16x128xf32>
    %c0_2 = arith.constant 0 : index
    %c0_3 = arith.constant 0 : index
    %2 = vector.load %arg2[%c0_2, %c0_3] : memref<2x128xf32, #tpu.memory_space<vmem>>, vector<2x128xf32>
    %3 = vector.extract_strided_slice %2 {offsets = [0, 0], sizes = [1, 128], strides = [1, 1]} : vector<2x128xf32> to vector<1x128xf32>
    %4 = vector.extract_strided_slice %2 {offsets = [1, 0], sizes = [1, 128], strides = [1, 1]} : vector<2x128xf32> to vector<1x128xf32>
    %cst = arith.constant dense<0.000000e+00> : vector<16xf32>
    %5 = vector.multi_reduction <add>, %1, %cst [1] : vector<16x128xf32> to vector<16xf32>
    %6 = vector.shape_cast %5 : vector<16xf32> to vector<16x1xf32>
    %cst_4 = arith.constant 1.280000e+02 : f32
    %7 = vector.broadcast %cst_4 : f32 to vector<16x1xf32>
    %8 = arith.divf %6, %7 : vector<16x1xf32>
    %9 = vector.broadcast %8 : vector<16x1xf32> to vector<16x128xf32>
    %10 = arith.subf %1, %9 : vector<16x128xf32>
    %11 = arith.mulf %10, %10 : vector<16x128xf32>
    %cst_5 = arith.constant dense<0.000000e+00> : vector<16xf32>
    %12 = vector.multi_reduction <add>, %11, %cst_5 [1] : vector<16x128xf32> to vector<16xf32>
    %13 = vector.shape_cast %12 : vector<16xf32> to vector<16x1xf32>
    %cst_6 = arith.constant 1.280000e+02 : f32
    %14 = vector.broadcast %cst_6 : f32 to vector<16x1xf32>
    %15 = arith.divf %13, %14 : vector<16x1xf32>
    %cst_7 = arith.constant 9.99999974E-6 : f32
    %16 = vector.broadcast %cst_7 : f32 to vector<16x1xf32>
    %17 = arith.addf %15, %16 : vector<16x1xf32>
    %18 = math.rsqrt %17 : vector<16x1xf32>
    %19 = vector.broadcast %18 : vector<16x1xf32> to vector<16x128xf32>
    %20 = arith.mulf %10, %19 : vector<16x128xf32>
    %21 = vector.broadcast %3 : vector<1x128xf32> to vector<16x128xf32>
    %22 = arith.mulf %20, %21 : vector<16x128xf32>
    %23 = vector.broadcast %4 : vector<1x128xf32> to vector<16x128xf32>
    %24 = arith.addf %22, %23 : vector<16x128xf32>
    %c0_8 = arith.constant 0 : index
    %c0_9 = arith.constant 0 : index
    %25 = vector.load %arg3[%c0_8, %c0_9] : memref<128x128xbf16, #tpu.memory_space<vmem>>, vector<128x128xbf16>
    %c0_10 = arith.constant 0 : index
    %c0_11 = arith.constant 0 : index
    %26 = vector.load %arg4[%c0_10, %c0_11] : memref<1x128xf32, #tpu.memory_space<vmem>>, vector<1x128xf32>
    %27 = arith.truncf %24 : vector<16x128xf32> to vector<16x128xbf16>
    %cst_12 = arith.constant dense<0.000000e+00> : vector<16x128xf32>
    %28 = tpu.matmul %27, %25, %cst_12 {dimension_numbers = #tpu.dot_dimension_numbers<[1], [0], [0], [1], [0, 0, 1, 1], [], []>} : vector<16x128xbf16>, vector<128x128xbf16>, vector<16x128xf32> -> vector<16x128xf32>
    %29 = vector.broadcast %26 : vector<1x128xf32> to vector<16x128xf32>
    %30 = arith.addf %28, %29 : vector<16x128xf32>
    %c0_13 = arith.constant 0 : index
    %c0_14 = arith.constant 0 : index
    %c0_15 = arith.constant 0 : index
    %31 = vector.load %arg5[%c0_13, %c0_14, %c0_15] : memref<1x16x128xf32, #tpu.memory_space<vmem>>, vector<1x16x128xf32>
    %32 = vector.shape_cast %31 : vector<1x16x128xf32> to vector<16x128xf32>
    %33 = vector.shape_cast %30 : vector<16x128xf32> to vector<1x16x128xf32>
    tpu.vector_store %arg5[%c0_13, %c0_14, %c0_15], %33 {strides = array<i32>} : memref<1x16x128xf32, #tpu.memory_space<vmem>>, vector<1x16x128xf32>,
    %cst_16 = arith.constant dense<0xFF800000> : vector<16xf32>
    %34 = vector.multi_reduction <maximumf>, %30, %cst_16 [1] : vector<16x128xf32> to vector<16xf32>
    %35 = vector.shape_cast %34 : vector<16xf32> to vector<16x1xf32>
    %36 = vector.broadcast %35 : vector<16x1xf32> to vector<16x128xf32>
    %37 = arith.subf %30, %36 : vector<16x128xf32>
    %38 = math.exp %37 : vector<16x128xf32>
    %cst_17 = arith.constant dense<0.000000e+00> : vector<16xf32>
    %39 = vector.multi_reduction <add>, %38, %cst_17 [1] : vector<16x128xf32> to vector<16xf32>
    %40 = vector.shape_cast %39 : vector<16xf32> to vector<16x1xf32>
    %41 = vector.broadcast %40 : vector<16x1xf32> to vector<16x128xf32>
    %42 = arith.divf %38, %41 : vector<16x128xf32>
    %c0_18 = arith.constant 0 : index
    %c0_19 = arith.constant 0 : index
    %c0_20 = arith.constant 0 : index
    %43 = vector.load %arg6[%c0_18, %c0_19, %c0_20] : memref<1x16x128xf32, #tpu.memory_space<vmem>>, vector<1x16x128xf32>
    %44 = vector.shape_cast %43 : vector<1x16x128xf32> to vector<16x128xf32>
    %45 = vector.shape_cast %42 : vector<16x128xf32> to vector<1x16x128xf32>
    tpu.vector_store %arg6[%c0_18, %c0_19, %c0_20], %45 {strides = array<i32>} : memref<1x16x128xf32, #tpu.memory_space<vmem>>, vector<1x16x128xf32>,
    return
  }
  func.func @transform_0(%arg0: i32) -> (i32, i32, i32) {
    %c0_i32 = arith.constant 0 : i32
    %c0_i32_0 = arith.constant 0 : i32
    %c0_i32_1 = arith.constant 0 : i32
    return %arg0, %c0_i32, %c0_i32_0 : i32, i32, i32
  }
  func.func @transform_1(%arg0: i32) -> (i32, i32) {
    %c0_i32 = arith.constant 0 : i32
    %c0_i32_0 = arith.constant 0 : i32
    %c0_i32_1 = arith.constant 0 : i32
    return %c0_i32, %c0_i32_0 : i32, i32
  }
  func.func @transform_2(%arg0: i32) -> (i32, i32) {
    %c0_i32 = arith.constant 0 : i32
    %c0_i32_0 = arith.constant 0 : i32
    %c0_i32_1 = arith.constant 0 : i32
    return %c0_i32, %c0_i32_0 : i32, i32
  }
  func.func @transform_3(%arg0: i32) -> (i32, i32) {
    %c0_i32 = arith.constant 0 : i32
    %c0_i32_0 = arith.constant 0 : i32
    %c0_i32_1 = arith.constant 0 : i32
    return %c0_i32, %c0_i32_0 : i32, i32
  }
  func.func @transform_4(%arg0: i32) -> (i32, i32, i32) {
    %c0_i32 = arith.constant 0 : i32
    %c0_i32_0 = arith.constant 0 : i32
    %c0_i32_1 = arith.constant 0 : i32
    return %arg0, %c0_i32, %c0_i32_0 : i32, i32, i32
  }
  func.func @transform_5(%arg0: i32) -> (i32, i32, i32) {
    %c0_i32 = arith.constant 0 : i32
    %c0_i32_0 = arith.constant 0 : i32
    %c0_i32_1 = arith.constant 0 : i32
    return %arg0, %c0_i32, %c0_i32_0 : i32, i32, i32
  }
}

module attributes {stable_mosaic.version = 11 : i64} {
  func.func @_decoder_stack_kernel(%arg0: i32, %arg1: i32, %arg2: memref<1x16x128xf32, #tpu.memory_space<vmem>>, %arg3: memref<16x128xf32, #tpu.memory_space<vmem>>, %arg4: memref<1x16x128xf32, #tpu.memory_space<vmem>>, %arg5: memref<1x2x128xf32, #tpu.memory_space<vmem>>, %arg6: memref<1x128x384xbf16, #tpu.memory_space<vmem>>, %arg7: memref<1x1x384xf32, #tpu.memory_space<vmem>>, %arg8: memref<1x4x32x128xbf16, #tpu.memory_space<vmem>>, %arg9: memref<1x1x128xf32, #tpu.memory_space<vmem>>, %arg10: memref<1x2x128xf32, #tpu.memory_space<vmem>>, %arg11: memref<1x128x128xbf16, #tpu.memory_space<vmem>>, %arg12: memref<1x1x128xf32, #tpu.memory_space<vmem>>, %arg13: memref<1x128x256xbf16, #tpu.memory_space<vmem>>, %arg14: memref<1x1x256xf32, #tpu.memory_space<vmem>>, %arg15: memref<1x4x32x128xbf16, #tpu.memory_space<vmem>>, %arg16: memref<1x1x128xf32, #tpu.memory_space<vmem>>, %arg17: memref<1x2x128xf32, #tpu.memory_space<vmem>>, %arg18: memref<1x128x256xbf16, #tpu.memory_space<vmem>>, %arg19: memref<1x1x256xf32, #tpu.memory_space<vmem>>, %arg20: memref<1x256x128xbf16, #tpu.memory_space<vmem>>, %arg21: memref<1x1x128xf32, #tpu.memory_space<vmem>>, %arg22: memref<1x16x128xf32, #tpu.memory_space<vmem>>) attributes {dimension_semantics = [#tpu.dimension_semantics<parallel>, #tpu.dimension_semantics<arbitrary>], iteration_bounds = array<i64: 2, 2>, scalar_prefetch = 0 : i64, scratch_operands = 0 : i64, tpu.core_type = #tpu.core_type<tc>, window_params = [{transform_indices = @transform_0, window_bounds = array<i64: 1, 16, 128>}, {pipeline_mode = #tpu.pipeline_mode<synchronous>, transform_indices = @transform_1, window_bounds = array<i64: 16, 128>}, {transform_indices = @transform_2, window_bounds = array<i64: 1, 16, 128>}, {transform_indices = @transform_3, window_bounds = array<i64: 1, 2, 128>}, {transform_indices = @transform_4, window_bounds = array<i64: 1, 128, 384>}, {transform_indices = @transform_5, window_bounds = array<i64: 1, 1, 384>}, {transform_indices = @transform_6, window_bounds = array<i64: 1, 4, 32, 128>}, {transform_indices = @transform_7, window_bounds = array<i64: 1, 1, 128>}, {transform_indices = @transform_8, window_bounds = array<i64: 1, 2, 128>}, {transform_indices = @transform_9, window_bounds = array<i64: 1, 128, 128>}, {transform_indices = @transform_10, window_bounds = array<i64: 1, 1, 128>}, {transform_indices = @transform_11, window_bounds = array<i64: 1, 128, 256>}, {transform_indices = @transform_12, window_bounds = array<i64: 1, 1, 256>}, {transform_indices = @transform_13, window_bounds = array<i64: 1, 4, 32, 128>}, {transform_indices = @transform_14, window_bounds = array<i64: 1, 1, 128>}, {transform_indices = @transform_15, window_bounds = array<i64: 1, 2, 128>}, {transform_indices = @transform_16, window_bounds = array<i64: 1, 128, 256>}, {transform_indices = @transform_17, window_bounds = array<i64: 1, 1, 256>}, {transform_indices = @transform_18, window_bounds = array<i64: 1, 256, 128>}, {transform_indices = @transform_19, window_bounds = array<i64: 1, 1, 128>}, {transform_indices = @transform_20, window_bounds = array<i64: 1, 16, 128>}]} {
    %c0_i32 = arith.constant 0 : i32
    %0 = arith.cmpi eq, %arg1, %c0_i32 : i32
    %1 = arith.extui %0 : i1 to i32
    %c0_i32_0 = arith.constant 0 : i32
    %2 = arith.cmpi ne, %1, %c0_i32_0 : i32
    scf.if %2 {
      %c0_98 = arith.constant 0 : index
      %c0_99 = arith.constant 0 : index
      %c0_100 = arith.constant 0 : index
      %252 = vector.load %arg2[%c0_98, %c0_99, %c0_100] : memref<1x16x128xf32, #tpu.memory_space<vmem>>, vector<1x16x128xf32>
      %253 = vector.shape_cast %252 : vector<1x16x128xf32> to vector<16x128xf32>
      %cst_101 = arith.constant 11.3137083 : f32
      %254 = vector.broadcast %cst_101 : f32 to vector<16x128xf32>
      %255 = arith.mulf %253, %254 : vector<16x128xf32>
      %c0_102 = arith.constant 0 : index
      %c0_103 = arith.constant 0 : index
      %256 = vector.load %arg3[%c0_102, %c0_103] : memref<16x128xf32, #tpu.memory_space<vmem>>, vector<16x128xf32>
      %257 = arith.addf %255, %256 : vector<16x128xf32>
      %c0_104 = arith.constant 0 : index
      %c0_105 = arith.constant 0 : index
      %c0_106 = arith.constant 0 : index
      %258 = vector.load %arg22[%c0_104, %c0_105, %c0_106] : memref<1x16x128xf32, #tpu.memory_space<vmem>>, vector<1x16x128xf32>
      %259 = vector.shape_cast %258 : vector<1x16x128xf32> to vector<16x128xf32>
      %260 = vector.shape_cast %257 : vector<16x128xf32> to vector<1x16x128xf32>
      tpu.vector_store %arg22[%c0_104, %c0_105, %c0_106], %260 {strides = array<i32>} : memref<1x16x128xf32, #tpu.memory_space<vmem>>, vector<1x16x128xf32>,
    } else {
    }
    %c0 = arith.constant 0 : index
    %c0_1 = arith.constant 0 : index
    %c0_2 = arith.constant 0 : index
    %3 = vector.load %arg22[%c0, %c0_1, %c0_2] : memref<1x16x128xf32, #tpu.memory_space<vmem>>, vector<1x16x128xf32>
    %4 = vector.shape_cast %3 : vector<1x16x128xf32> to vector<16x128xf32>
    %c0_3 = arith.constant 0 : index
    %c0_4 = arith.constant 0 : index
    %c0_5 = arith.constant 0 : index
    %5 = vector.load %arg5[%c0_3, %c0_4, %c0_5] : memref<1x2x128xf32, #tpu.memory_space<vmem>>, vector<1x2x128xf32>
    %6 = vector.shape_cast %5 : vector<1x2x128xf32> to vector<2x128xf32>
    %c0_6 = arith.constant 0 : index
    %c0_7 = arith.constant 0 : index
    %c0_8 = arith.constant 0 : index
    %7 = vector.load %arg6[%c0_6, %c0_7, %c0_8] : memref<1x128x384xbf16, #tpu.memory_space<vmem>>, vector<1x128x384xbf16>
    %8 = vector.shape_cast %7 : vector<1x128x384xbf16> to vector<128x384xbf16>
    %c0_9 = arith.constant 0 : index
    %c0_10 = arith.constant 0 : index
    %c0_11 = arith.constant 0 : index
    %9 = vector.load %arg7[%c0_9, %c0_10, %c0_11] : memref<1x1x384xf32, #tpu.memory_space<vmem>>, vector<1x1x384xf32>
    %10 = vector.shape_cast %9 : vector<1x1x384xf32> to vector<1x384xf32>
    %c0_12 = arith.constant 0 : index
    %c0_13 = arith.constant 0 : index
    %c0_14 = arith.constant 0 : index
    %c0_15 = arith.constant 0 : index
    %11 = vector.load %arg8[%c0_12, %c0_13, %c0_14, %c0_15] : memref<1x4x32x128xbf16, #tpu.memory_space<vmem>>, vector<1x4x32x128xbf16>
    %12 = vector.shape_cast %11 : vector<1x4x32x128xbf16> to vector<4x32x128xbf16>
    %c0_16 = arith.constant 0 : index
    %c0_17 = arith.constant 0 : index
    %c0_18 = arith.constant 0 : index
    %13 = vector.load %arg9[%c0_16, %c0_17, %c0_18] : memref<1x1x128xf32, #tpu.memory_space<vmem>>, vector<1x1x128xf32>
    %14 = vector.shape_cast %13 : vector<1x1x128xf32> to vector<1x128xf32>
    %15 = vector.extract_strided_slice %6 {offsets = [0, 0], sizes = [1, 128], strides = [1, 1]} : vector<2x128xf32> to vector<1x128xf32>
    %16 = vector.extract_strided_slice %6 {offsets = [1, 0], sizes = [1, 128], strides = [1, 1]} : vector<2x128xf32> to vector<1x128xf32>
    %cst = arith.constant dense<0.000000e+00> : vector<16xf32>
    %17 = vector.multi_reduction <add>, %4, %cst [1] : vector<16x128xf32> to vector<16xf32>
    %18 = vector.shape_cast %17 : vector<16xf32> to vector<16x1xf32>
    %cst_19 = arith.constant 1.280000e+02 : f32
    %19 = vector.broadcast %cst_19 : f32 to vector<16x1xf32>
    %20 = arith.divf %18, %19 : vector<16x1xf32>
    %21 = vector.broadcast %20 : vector<16x1xf32> to vector<16x128xf32>
    %22 = arith.subf %4, %21 : vector<16x128xf32>
    %23 = arith.mulf %22, %22 : vector<16x128xf32>
    %cst_20 = arith.constant dense<0.000000e+00> : vector<16xf32>
    %24 = vector.multi_reduction <add>, %23, %cst_20 [1] : vector<16x128xf32> to vector<16xf32>
    %25 = vector.shape_cast %24 : vector<16xf32> to vector<16x1xf32>
    %cst_21 = arith.constant 1.280000e+02 : f32
    %26 = vector.broadcast %cst_21 : f32 to vector<16x1xf32>
    %27 = arith.divf %25, %26 : vector<16x1xf32>
    %cst_22 = arith.constant 9.99999974E-6 : f32
    %28 = vector.broadcast %cst_22 : f32 to vector<16x1xf32>
    %29 = arith.addf %27, %28 : vector<16x1xf32>
    %30 = math.rsqrt %29 : vector<16x1xf32>
    %31 = vector.broadcast %30 : vector<16x1xf32> to vector<16x128xf32>
    %32 = arith.mulf %22, %31 : vector<16x128xf32>
    %33 = vector.broadcast %15 : vector<1x128xf32> to vector<16x128xf32>
    %34 = arith.mulf %32, %33 : vector<16x128xf32>
    %35 = vector.broadcast %16 : vector<1x128xf32> to vector<16x128xf32>
    %36 = arith.addf %34, %35 : vector<16x128xf32>
    %37 = arith.truncf %36 : vector<16x128xf32> to vector<16x128xbf16>
    %cst_23 = arith.constant dense<0.000000e+00> : vector<16x384xf32>
    %38 = tpu.matmul %37, %8, %cst_23 {dimension_numbers = #tpu.dot_dimension_numbers<[1], [0], [0], [1], [0, 0, 1, 1], [], []>} : vector<16x128xbf16>, vector<128x384xbf16>, vector<16x384xf32> -> vector<16x384xf32>
    %39 = vector.broadcast %10 : vector<1x384xf32> to vector<16x384xf32>
    %40 = arith.addf %38, %39 : vector<16x384xf32>
    %41 = vector.extract_strided_slice %40 {offsets = [0, 0], sizes = [16, 128], strides = [1, 1]} : vector<16x384xf32> to vector<16x128xf32>
    %42 = vector.extract_strided_slice %41 {offsets = [0, 0], sizes = [16, 32], strides = [1, 1]} : vector<16x128xf32> to vector<16x32xf32>
    %43 = vector.shape_cast %42 : vector<16x32xf32> to vector<1x16x32xf32>
    %44 = vector.extract_strided_slice %41 {offsets = [0, 32], sizes = [16, 32], strides = [1, 1]} : vector<16x128xf32> to vector<16x32xf32>
    %45 = vector.shape_cast %44 : vector<16x32xf32> to vector<1x16x32xf32>
    %46 = vector.extract_strided_slice %41 {offsets = [0, 64], sizes = [16, 32], strides = [1, 1]} : vector<16x128xf32> to vector<16x32xf32>
    %47 = vector.shape_cast %46 : vector<16x32xf32> to vector<1x16x32xf32>
    %48 = vector.extract_strided_slice %41 {offsets = [0, 96], sizes = [16, 32], strides = [1, 1]} : vector<16x128xf32> to vector<16x32xf32>
    %49 = vector.shape_cast %48 : vector<16x32xf32> to vector<1x16x32xf32>
    %50 = tpu.concatenate %43, %45, %47, %49 in 0 : vector<1x16x32xf32>, vector<1x16x32xf32>, vector<1x16x32xf32>, vector<1x16x32xf32> -> vector<4x16x32xf32>
    %51 = vector.extract_strided_slice %40 {offsets = [0, 128], sizes = [16, 128], strides = [1, 1]} : vector<16x384xf32> to vector<16x128xf32>
    %52 = vector.extract_strided_slice %51 {offsets = [0, 0], sizes = [16, 32], strides = [1, 1]} : vector<16x128xf32> to vector<16x32xf32>
    %53 = vector.shape_cast %52 : vector<16x32xf32> to vector<1x16x32xf32>
    %54 = vector.extract_strided_slice %51 {offsets = [0, 32], sizes = [16, 32], strides = [1, 1]} : vector<16x128xf32> to vector<16x32xf32>
    %55 = vector.shape_cast %54 : vector<16x32xf32> to vector<1x16x32xf32>
    %56 = vector.extract_strided_slice %51 {offsets = [0, 64], sizes = [16, 32], strides = [1, 1]} : vector<16x128xf32> to vector<16x32xf32>
    %57 = vector.shape_cast %56 : vector<16x32xf32> to vector<1x16x32xf32>
    %58 = vector.extract_strided_slice %51 {offsets = [0, 96], sizes = [16, 32], strides = [1, 1]} : vector<16x128xf32> to vector<16x32xf32>
    %59 = vector.shape_cast %58 : vector<16x32xf32> to vector<1x16x32xf32>
    %60 = tpu.concatenate %53, %55, %57, %59 in 0 : vector<1x16x32xf32>, vector<1x16x32xf32>, vector<1x16x32xf32>, vector<1x16x32xf32> -> vector<4x16x32xf32>
    %61 = vector.extract_strided_slice %40 {offsets = [0, 256], sizes = [16, 128], strides = [1, 1]} : vector<16x384xf32> to vector<16x128xf32>
    %62 = vector.extract_strided_slice %61 {offsets = [0, 0], sizes = [16, 32], strides = [1, 1]} : vector<16x128xf32> to vector<16x32xf32>
    %63 = vector.shape_cast %62 : vector<16x32xf32> to vector<1x16x32xf32>
    %64 = vector.extract_strided_slice %61 {offsets = [0, 32], sizes = [16, 32], strides = [1, 1]} : vector<16x128xf32> to vector<16x32xf32>
    %65 = vector.shape_cast %64 : vector<16x32xf32> to vector<1x16x32xf32>
    %66 = vector.extract_strided_slice %61 {offsets = [0, 64], sizes = [16, 32], strides = [1, 1]} : vector<16x128xf32> to vector<16x32xf32>
    %67 = vector.shape_cast %66 : vector<16x32xf32> to vector<1x16x32xf32>
    %68 = vector.extract_strided_slice %61 {offsets = [0, 96], sizes = [16, 32], strides = [1, 1]} : vector<16x128xf32> to vector<16x32xf32>
    %69 = vector.shape_cast %68 : vector<16x32xf32> to vector<1x16x32xf32>
    %70 = tpu.concatenate %63, %65, %67, %69 in 0 : vector<1x16x32xf32>, vector<1x16x32xf32>, vector<1x16x32xf32>, vector<1x16x32xf32> -> vector<4x16x32xf32>
    %71 = arith.truncf %50 : vector<4x16x32xf32> to vector<4x16x32xbf16>
    %72 = arith.truncf %60 : vector<4x16x32xf32> to vector<4x16x32xbf16>
    %cst_24 = arith.constant dense<0.000000e+00> : vector<4x16x16xf32>
    %73 = tpu.matmul %71, %72, %cst_24 {dimension_numbers = #tpu.dot_dimension_numbers<[2], [2], [1], [1], [0, 0, 0, 1, 1, 1], [0], [0]>} : vector<4x16x32xbf16>, vector<4x16x32xbf16>, vector<4x16x16xf32> -> vector<4x16x16xf32>
    %cst_25 = arith.constant 0.176776692 : f32
    %74 = vector.broadcast %cst_25 : f32 to vector<4x16x16xf32>
    %75 = arith.mulf %73, %74 : vector<4x16x16xf32>
    %76 = tpu.iota {dimensions = array<i32: 0>} : vector<16x16xi32>
    %77 = tpu.iota {dimensions = array<i32: 1>} : vector<16x16xi32>
    %78 = arith.cmpi sle, %77, %76 : vector<16x16xi32>
    %79 = vector.shape_cast %78 : vector<16x16xi1> to vector<1x16x16xi1>
    %cst_26 = arith.constant -1.000000e+09 : f32
    %80 = vector.shape_cast %79 : vector<1x16x16xi1> to vector<1x16x16xi1>
    %81 = vector.broadcast %80 : vector<1x16x16xi1> to vector<4x16x16xi1>
    %82 = vector.broadcast %cst_26 : f32 to vector<4x16x16xf32>
    %83 = arith.select %81, %75, %82 : vector<4x16x16xi1>, vector<4x16x16xf32>
    %cst_27 = arith.constant dense<0xFF800000> : vector<4x16xf32>
    %84 = vector.multi_reduction <maximumf>, %83, %cst_27 [2] : vector<4x16x16xf32> to vector<4x16xf32>
    %85 = vector.shape_cast %84 : vector<4x16xf32> to vector<4x16x1xf32>
    %86 = vector.broadcast %85 : vector<4x16x1xf32> to vector<4x16x16xf32>
    %87 = arith.subf %83, %86 : vector<4x16x16xf32>
    %88 = math.exp %87 : vector<4x16x16xf32>
    %cst_28 = arith.constant 0.000000e+00 : f32
    %89 = vector.shape_cast %79 : vector<1x16x16xi1> to vector<1x16x16xi1>
    %90 = vector.broadcast %89 : vector<1x16x16xi1> to vector<4x16x16xi1>
    %91 = vector.broadcast %cst_28 : f32 to vector<4x16x16xf32>
    %92 = arith.select %90, %88, %91 : vector<4x16x16xi1>, vector<4x16x16xf32>
    %cst_29 = arith.constant dense<0.000000e+00> : vector<4x16xf32>
    %93 = vector.multi_reduction <add>, %92, %cst_29 [2] : vector<4x16x16xf32> to vector<4x16xf32>
    %94 = vector.shape_cast %93 : vector<4x16xf32> to vector<4x16x1xf32>
    %95 = tpu.reciprocal %94 {approx = true} : vector<4x16x1xf32> -> vector<4x16x1xf32>
    %96 = vector.broadcast %95 : vector<4x16x1xf32> to vector<4x16x16xf32>
    %97 = arith.mulf %92, %96 : vector<4x16x16xf32>
    %98 = arith.truncf %97 : vector<4x16x16xf32> to vector<4x16x16xbf16>
    %99 = arith.truncf %70 : vector<4x16x32xf32> to vector<4x16x32xbf16>
    %cst_30 = arith.constant dense<0.000000e+00> : vector<4x16x32xf32>
    %100 = tpu.matmul %98, %99, %cst_30 {dimension_numbers = #tpu.dot_dimension_numbers<[2], [1], [1], [2], [0, 0, 0, 1, 1, 2], [0], [0]>} : vector<4x16x16xbf16>, vector<4x16x32xbf16>, vector<4x16x32xf32> -> vector<4x16x32xf32>
    %101 = arith.truncf %100 : vector<4x16x32xf32> to vector<4x16x32xbf16>
    %cst_31 = arith.constant dense<0.000000e+00> : vector<4x16x128xf32>
    %102 = tpu.matmul %101, %12, %cst_31 {dimension_numbers = #tpu.dot_dimension_numbers<[2], [1], [1], [2], [0, 0, 0, 1, 1, 2], [0], [0]>} : vector<4x16x32xbf16>, vector<4x32x128xbf16>, vector<4x16x128xf32> -> vector<4x16x128xf32>
    %cst_32 = arith.constant dense<0.000000e+00> : vector<16x128xf32>
    %103 = vector.multi_reduction <add>, %102, %cst_32 [0] : vector<4x16x128xf32> to vector<16x128xf32>
    %104 = vector.broadcast %14 : vector<1x128xf32> to vector<16x128xf32>
    %105 = arith.addf %103, %104 : vector<16x128xf32>
    %106 = arith.addf %4, %105 : vector<16x128xf32>
    %c0_33 = arith.constant 0 : index
    %c0_34 = arith.constant 0 : index
    %c0_35 = arith.constant 0 : index
    %107 = vector.load %arg10[%c0_33, %c0_34, %c0_35] : memref<1x2x128xf32, #tpu.memory_space<vmem>>, vector<1x2x128xf32>
    %108 = vector.shape_cast %107 : vector<1x2x128xf32> to vector<2x128xf32>
    %109 = vector.extract_strided_slice %108 {offsets = [0, 0], sizes = [1, 128], strides = [1, 1]} : vector<2x128xf32> to vector<1x128xf32>
    %110 = vector.extract_strided_slice %108 {offsets = [1, 0], sizes = [1, 128], strides = [1, 1]} : vector<2x128xf32> to vector<1x128xf32>
    %cst_36 = arith.constant dense<0.000000e+00> : vector<16xf32>
    %111 = vector.multi_reduction <add>, %106, %cst_36 [1] : vector<16x128xf32> to vector<16xf32>
    %112 = vector.shape_cast %111 : vector<16xf32> to vector<16x1xf32>
    %cst_37 = arith.constant 1.280000e+02 : f32
    %113 = vector.broadcast %cst_37 : f32 to vector<16x1xf32>
    %114 = arith.divf %112, %113 : vector<16x1xf32>
    %115 = vector.broadcast %114 : vector<16x1xf32> to vector<16x128xf32>
    %116 = arith.subf %106, %115 : vector<16x128xf32>
    %117 = arith.mulf %116, %116 : vector<16x128xf32>
    %cst_38 = arith.constant dense<0.000000e+00> : vector<16xf32>
    %118 = vector.multi_reduction <add>, %117, %cst_38 [1] : vector<16x128xf32> to vector<16xf32>
    %119 = vector.shape_cast %118 : vector<16xf32> to vector<16x1xf32>
    %cst_39 = arith.constant 1.280000e+02 : f32
    %120 = vector.broadcast %cst_39 : f32 to vector<16x1xf32>
    %121 = arith.divf %119, %120 : vector<16x1xf32>
    %cst_40 = arith.constant 9.99999974E-6 : f32
    %122 = vector.broadcast %cst_40 : f32 to vector<16x1xf32>
    %123 = arith.addf %121, %122 : vector<16x1xf32>
    %124 = math.rsqrt %123 : vector<16x1xf32>
    %125 = vector.broadcast %124 : vector<16x1xf32> to vector<16x128xf32>
    %126 = arith.mulf %116, %125 : vector<16x128xf32>
    %127 = vector.broadcast %109 : vector<1x128xf32> to vector<16x128xf32>
    %128 = arith.mulf %126, %127 : vector<16x128xf32>
    %129 = vector.broadcast %110 : vector<1x128xf32> to vector<16x128xf32>
    %130 = arith.addf %128, %129 : vector<16x128xf32>
    %c0_41 = arith.constant 0 : index
    %c0_42 = arith.constant 0 : index
    %c0_43 = arith.constant 0 : index
    %131 = vector.load %arg11[%c0_41, %c0_42, %c0_43] : memref<1x128x128xbf16, #tpu.memory_space<vmem>>, vector<1x128x128xbf16>
    %132 = vector.shape_cast %131 : vector<1x128x128xbf16> to vector<128x128xbf16>
    %c0_44 = arith.constant 0 : index
    %c0_45 = arith.constant 0 : index
    %c0_46 = arith.constant 0 : index
    %133 = vector.load %arg12[%c0_44, %c0_45, %c0_46] : memref<1x1x128xf32, #tpu.memory_space<vmem>>, vector<1x1x128xf32>
    %134 = vector.shape_cast %133 : vector<1x1x128xf32> to vector<1x128xf32>
    %135 = arith.truncf %130 : vector<16x128xf32> to vector<16x128xbf16>
    %cst_47 = arith.constant dense<0.000000e+00> : vector<16x128xf32>
    %136 = tpu.matmul %135, %132, %cst_47 {dimension_numbers = #tpu.dot_dimension_numbers<[1], [0], [0], [1], [0, 0, 1, 1], [], []>} : vector<16x128xbf16>, vector<128x128xbf16>, vector<16x128xf32> -> vector<16x128xf32>
    %137 = vector.broadcast %134 : vector<1x128xf32> to vector<16x128xf32>
    %138 = arith.addf %136, %137 : vector<16x128xf32>
    %c0_48 = arith.constant 0 : index
    %c0_49 = arith.constant 0 : index
    %c0_50 = arith.constant 0 : index
    %139 = vector.load %arg4[%c0_48, %c0_49, %c0_50] : memref<1x16x128xf32, #tpu.memory_space<vmem>>, vector<1x16x128xf32>
    %140 = vector.shape_cast %139 : vector<1x16x128xf32> to vector<16x128xf32>
    %c0_51 = arith.constant 0 : index
    %c0_52 = arith.constant 0 : index
    %c0_53 = arith.constant 0 : index
    %141 = vector.load %arg13[%c0_51, %c0_52, %c0_53] : memref<1x128x256xbf16, #tpu.memory_space<vmem>>, vector<1x128x256xbf16>
    %142 = vector.shape_cast %141 : vector<1x128x256xbf16> to vector<128x256xbf16>
    %c0_54 = arith.constant 0 : index
    %c0_55 = arith.constant 0 : index
    %c0_56 = arith.constant 0 : index
    %143 = vector.load %arg14[%c0_54, %c0_55, %c0_56] : memref<1x1x256xf32, #tpu.memory_space<vmem>>, vector<1x1x256xf32>
    %144 = vector.shape_cast %143 : vector<1x1x256xf32> to vector<1x256xf32>
    %145 = arith.truncf %140 : vector<16x128xf32> to vector<16x128xbf16>
    %cst_57 = arith.constant dense<0.000000e+00> : vector<16x256xf32>
    %146 = tpu.matmul %145, %142, %cst_57 {dimension_numbers = #tpu.dot_dimension_numbers<[1], [0], [0], [1], [0, 0, 1, 1], [], []>} : vector<16x128xbf16>, vector<128x256xbf16>, vector<16x256xf32> -> vector<16x256xf32>
    %147 = vector.broadcast %144 : vector<1x256xf32> to vector<16x256xf32>
    %148 = arith.addf %146, %147 : vector<16x256xf32>
    %149 = vector.extract_strided_slice %138 {offsets = [0, 0], sizes = [16, 32], strides = [1, 1]} : vector<16x128xf32> to vector<16x32xf32>
    %150 = vector.shape_cast %149 : vector<16x32xf32> to vector<1x16x32xf32>
    %151 = vector.extract_strided_slice %138 {offsets = [0, 32], sizes = [16, 32], strides = [1, 1]} : vector<16x128xf32> to vector<16x32xf32>
    %152 = vector.shape_cast %151 : vector<16x32xf32> to vector<1x16x32xf32>
    %153 = vector.extract_strided_slice %138 {offsets = [0, 64], sizes = [16, 32], strides = [1, 1]} : vector<16x128xf32> to vector<16x32xf32>
    %154 = vector.shape_cast %153 : vector<16x32xf32> to vector<1x16x32xf32>
    %155 = vector.extract_strided_slice %138 {offsets = [0, 96], sizes = [16, 32], strides = [1, 1]} : vector<16x128xf32> to vector<16x32xf32>
    %156 = vector.shape_cast %155 : vector<16x32xf32> to vector<1x16x32xf32>
    %157 = tpu.concatenate %150, %152, %154, %156 in 0 : vector<1x16x32xf32>, vector<1x16x32xf32>, vector<1x16x32xf32>, vector<1x16x32xf32> -> vector<4x16x32xf32>
    %158 = vector.extract_strided_slice %148 {offsets = [0, 0], sizes = [16, 128], strides = [1, 1]} : vector<16x256xf32> to vector<16x128xf32>
    %159 = vector.extract_strided_slice %158 {offsets = [0, 0], sizes = [16, 32], strides = [1, 1]} : vector<16x128xf32> to vector<16x32xf32>
    %160 = vector.shape_cast %159 : vector<16x32xf32> to vector<1x16x32xf32>
    %161 = vector.extract_strided_slice %158 {offsets = [0, 32], sizes = [16, 32], strides = [1, 1]} : vector<16x128xf32> to vector<16x32xf32>
    %162 = vector.shape_cast %161 : vector<16x32xf32> to vector<1x16x32xf32>
    %163 = vector.extract_strided_slice %158 {offsets = [0, 64], sizes = [16, 32], strides = [1, 1]} : vector<16x128xf32> to vector<16x32xf32>
    %164 = vector.shape_cast %163 : vector<16x32xf32> to vector<1x16x32xf32>
    %165 = vector.extract_strided_slice %158 {offsets = [0, 96], sizes = [16, 32], strides = [1, 1]} : vector<16x128xf32> to vector<16x32xf32>
    %166 = vector.shape_cast %165 : vector<16x32xf32> to vector<1x16x32xf32>
    %167 = tpu.concatenate %160, %162, %164, %166 in 0 : vector<1x16x32xf32>, vector<1x16x32xf32>, vector<1x16x32xf32>, vector<1x16x32xf32> -> vector<4x16x32xf32>
    %168 = vector.extract_strided_slice %148 {offsets = [0, 128], sizes = [16, 128], strides = [1, 1]} : vector<16x256xf32> to vector<16x128xf32>
    %169 = vector.extract_strided_slice %168 {offsets = [0, 0], sizes = [16, 32], strides = [1, 1]} : vector<16x128xf32> to vector<16x32xf32>
    %170 = vector.shape_cast %169 : vector<16x32xf32> to vector<1x16x32xf32>
    %171 = vector.extract_strided_slice %168 {offsets = [0, 32], sizes = [16, 32], strides = [1, 1]} : vector<16x128xf32> to vector<16x32xf32>
    %172 = vector.shape_cast %171 : vector<16x32xf32> to vector<1x16x32xf32>
    %173 = vector.extract_strided_slice %168 {offsets = [0, 64], sizes = [16, 32], strides = [1, 1]} : vector<16x128xf32> to vector<16x32xf32>
    %174 = vector.shape_cast %173 : vector<16x32xf32> to vector<1x16x32xf32>
    %175 = vector.extract_strided_slice %168 {offsets = [0, 96], sizes = [16, 32], strides = [1, 1]} : vector<16x128xf32> to vector<16x32xf32>
    %176 = vector.shape_cast %175 : vector<16x32xf32> to vector<1x16x32xf32>
    %177 = tpu.concatenate %170, %172, %174, %176 in 0 : vector<1x16x32xf32>, vector<1x16x32xf32>, vector<1x16x32xf32>, vector<1x16x32xf32> -> vector<4x16x32xf32>
    %178 = arith.truncf %157 : vector<4x16x32xf32> to vector<4x16x32xbf16>
    %179 = arith.truncf %167 : vector<4x16x32xf32> to vector<4x16x32xbf16>
    %cst_58 = arith.constant dense<0.000000e+00> : vector<4x16x16xf32>
    %180 = tpu.matmul %178, %179, %cst_58 {dimension_numbers = #tpu.dot_dimension_numbers<[2], [2], [1], [1], [0, 0, 0, 1, 1, 1], [0], [0]>} : vector<4x16x32xbf16>, vector<4x16x32xbf16>, vector<4x16x16xf32> -> vector<4x16x16xf32>
    %cst_59 = arith.constant 0.176776692 : f32
    %181 = vector.broadcast %cst_59 : f32 to vector<4x16x16xf32>
    %182 = arith.mulf %180, %181 : vector<4x16x16xf32>
    %cst_60 = arith.constant dense<0xFF800000> : vector<4x16xf32>
    %183 = vector.multi_reduction <maximumf>, %182, %cst_60 [2] : vector<4x16x16xf32> to vector<4x16xf32>
    %184 = vector.shape_cast %183 : vector<4x16xf32> to vector<4x16x1xf32>
    %185 = vector.broadcast %184 : vector<4x16x1xf32> to vector<4x16x16xf32>
    %186 = arith.subf %182, %185 : vector<4x16x16xf32>
    %187 = math.exp %186 : vector<4x16x16xf32>
    %cst_61 = arith.constant dense<0.000000e+00> : vector<4x16xf32>
    %188 = vector.multi_reduction <add>, %187, %cst_61 [2] : vector<4x16x16xf32> to vector<4x16xf32>
    %189 = vector.shape_cast %188 : vector<4x16xf32> to vector<4x16x1xf32>
    %190 = tpu.reciprocal %189 {approx = true} : vector<4x16x1xf32> -> vector<4x16x1xf32>
    %191 = vector.broadcast %190 : vector<4x16x1xf32> to vector<4x16x16xf32>
    %192 = arith.mulf %187, %191 : vector<4x16x16xf32>
    %193 = arith.truncf %192 : vector<4x16x16xf32> to vector<4x16x16xbf16>
    %194 = arith.truncf %177 : vector<4x16x32xf32> to vector<4x16x32xbf16>
    %cst_62 = arith.constant dense<0.000000e+00> : vector<4x16x32xf32>
    %195 = tpu.matmul %193, %194, %cst_62 {dimension_numbers = #tpu.dot_dimension_numbers<[2], [1], [1], [2], [0, 0, 0, 1, 1, 2], [0], [0]>} : vector<4x16x16xbf16>, vector<4x16x32xbf16>, vector<4x16x32xf32> -> vector<4x16x32xf32>
    %c0_63 = arith.constant 0 : index
    %c0_64 = arith.constant 0 : index
    %c0_65 = arith.constant 0 : index
    %c0_66 = arith.constant 0 : index
    %196 = vector.load %arg15[%c0_63, %c0_64, %c0_65, %c0_66] : memref<1x4x32x128xbf16, #tpu.memory_space<vmem>>, vector<1x4x32x128xbf16>
    %197 = vector.shape_cast %196 : vector<1x4x32x128xbf16> to vector<4x32x128xbf16>
    %c0_67 = arith.constant 0 : index
    %c0_68 = arith.constant 0 : index
    %c0_69 = arith.constant 0 : index
    %198 = vector.load %arg16[%c0_67, %c0_68, %c0_69] : memref<1x1x128xf32, #tpu.memory_space<vmem>>, vector<1x1x128xf32>
    %199 = vector.shape_cast %198 : vector<1x1x128xf32> to vector<1x128xf32>
    %200 = arith.truncf %195 : vector<4x16x32xf32> to vector<4x16x32xbf16>
    %cst_70 = arith.constant dense<0.000000e+00> : vector<4x16x128xf32>
    %201 = tpu.matmul %200, %197, %cst_70 {dimension_numbers = #tpu.dot_dimension_numbers<[2], [1], [1], [2], [0, 0, 0, 1, 1, 2], [0], [0]>} : vector<4x16x32xbf16>, vector<4x32x128xbf16>, vector<4x16x128xf32> -> vector<4x16x128xf32>
    %cst_71 = arith.constant dense<0.000000e+00> : vector<16x128xf32>
    %202 = vector.multi_reduction <add>, %201, %cst_71 [0] : vector<4x16x128xf32> to vector<16x128xf32>
    %203 = vector.broadcast %199 : vector<1x128xf32> to vector<16x128xf32>
    %204 = arith.addf %202, %203 : vector<16x128xf32>
    %205 = arith.addf %106, %204 : vector<16x128xf32>
    %c0_72 = arith.constant 0 : index
    %c0_73 = arith.constant 0 : index
    %c0_74 = arith.constant 0 : index
    %206 = vector.load %arg17[%c0_72, %c0_73, %c0_74] : memref<1x2x128xf32, #tpu.memory_space<vmem>>, vector<1x2x128xf32>
    %207 = vector.shape_cast %206 : vector<1x2x128xf32> to vector<2x128xf32>
    %c0_75 = arith.constant 0 : index
    %c0_76 = arith.constant 0 : index
    %c0_77 = arith.constant 0 : index
    %208 = vector.load %arg18[%c0_75, %c0_76, %c0_77] : memref<1x128x256xbf16, #tpu.memory_space<vmem>>, vector<1x128x256xbf16>
    %209 = vector.shape_cast %208 : vector<1x128x256xbf16> to vector<128x256xbf16>
    %c0_78 = arith.constant 0 : index
    %c0_79 = arith.constant 0 : index
    %c0_80 = arith.constant 0 : index
    %210 = vector.load %arg19[%c0_78, %c0_79, %c0_80] : memref<1x1x256xf32, #tpu.memory_space<vmem>>, vector<1x1x256xf32>
    %211 = vector.shape_cast %210 : vector<1x1x256xf32> to vector<1x256xf32>
    %c0_81 = arith.constant 0 : index
    %c0_82 = arith.constant 0 : index
    %c0_83 = arith.constant 0 : index
    %212 = vector.load %arg20[%c0_81, %c0_82, %c0_83] : memref<1x256x128xbf16, #tpu.memory_space<vmem>>, vector<1x256x128xbf16>
    %213 = vector.shape_cast %212 : vector<1x256x128xbf16> to vector<256x128xbf16>
    %c0_84 = arith.constant 0 : index
    %c0_85 = arith.constant 0 : index
    %c0_86 = arith.constant 0 : index
    %214 = vector.load %arg21[%c0_84, %c0_85, %c0_86] : memref<1x1x128xf32, #tpu.memory_space<vmem>>, vector<1x1x128xf32>
    %215 = vector.shape_cast %214 : vector<1x1x128xf32> to vector<1x128xf32>
    %216 = vector.extract_strided_slice %207 {offsets = [0, 0], sizes = [1, 128], strides = [1, 1]} : vector<2x128xf32> to vector<1x128xf32>
    %217 = vector.extract_strided_slice %207 {offsets = [1, 0], sizes = [1, 128], strides = [1, 1]} : vector<2x128xf32> to vector<1x128xf32>
    %cst_87 = arith.constant dense<0.000000e+00> : vector<16xf32>
    %218 = vector.multi_reduction <add>, %205, %cst_87 [1] : vector<16x128xf32> to vector<16xf32>
    %219 = vector.shape_cast %218 : vector<16xf32> to vector<16x1xf32>
    %cst_88 = arith.constant 1.280000e+02 : f32
    %220 = vector.broadcast %cst_88 : f32 to vector<16x1xf32>
    %221 = arith.divf %219, %220 : vector<16x1xf32>
    %222 = vector.broadcast %221 : vector<16x1xf32> to vector<16x128xf32>
    %223 = arith.subf %205, %222 : vector<16x128xf32>
    %224 = arith.mulf %223, %223 : vector<16x128xf32>
    %cst_89 = arith.constant dense<0.000000e+00> : vector<16xf32>
    %225 = vector.multi_reduction <add>, %224, %cst_89 [1] : vector<16x128xf32> to vector<16xf32>
    %226 = vector.shape_cast %225 : vector<16xf32> to vector<16x1xf32>
    %cst_90 = arith.constant 1.280000e+02 : f32
    %227 = vector.broadcast %cst_90 : f32 to vector<16x1xf32>
    %228 = arith.divf %226, %227 : vector<16x1xf32>
    %cst_91 = arith.constant 9.99999974E-6 : f32
    %229 = vector.broadcast %cst_91 : f32 to vector<16x1xf32>
    %230 = arith.addf %228, %229 : vector<16x1xf32>
    %231 = math.rsqrt %230 : vector<16x1xf32>
    %232 = vector.broadcast %231 : vector<16x1xf32> to vector<16x128xf32>
    %233 = arith.mulf %223, %232 : vector<16x128xf32>
    %234 = vector.broadcast %216 : vector<1x128xf32> to vector<16x128xf32>
    %235 = arith.mulf %233, %234 : vector<16x128xf32>
    %236 = vector.broadcast %217 : vector<1x128xf32> to vector<16x128xf32>
    %237 = arith.addf %235, %236 : vector<16x128xf32>
    %238 = arith.truncf %237 : vector<16x128xf32> to vector<16x128xbf16>
    %cst_92 = arith.constant dense<0.000000e+00> : vector<16x256xf32>
    %239 = tpu.matmul %238, %209, %cst_92 {dimension_numbers = #tpu.dot_dimension_numbers<[1], [0], [0], [1], [0, 0, 1, 1], [], []>} : vector<16x128xbf16>, vector<128x256xbf16>, vector<16x256xf32> -> vector<16x256xf32>
    %240 = vector.broadcast %211 : vector<1x256xf32> to vector<16x256xf32>
    %241 = arith.addf %239, %240 : vector<16x256xf32>
    %cst_93 = arith.constant 0.000000e+00 : f32
    %242 = vector.broadcast %cst_93 : f32 to vector<16x256xf32>
    %243 = arith.maximumf %241, %242 : vector<16x256xf32>
    %244 = arith.truncf %243 : vector<16x256xf32> to vector<16x256xbf16>
    %cst_94 = arith.constant dense<0.000000e+00> : vector<16x128xf32>
    %245 = tpu.matmul %244, %213, %cst_94 {dimension_numbers = #tpu.dot_dimension_numbers<[1], [0], [0], [1], [0, 0, 1, 1], [], []>} : vector<16x256xbf16>, vector<256x128xbf16>, vector<16x128xf32> -> vector<16x128xf32>
    %246 = vector.broadcast %215 : vector<1x128xf32> to vector<16x128xf32>
    %247 = arith.addf %245, %246 : vector<16x128xf32>
    %248 = arith.addf %205, %247 : vector<16x128xf32>
    %c0_95 = arith.constant 0 : index
    %c0_96 = arith.constant 0 : index
    %c0_97 = arith.constant 0 : index
    %249 = vector.load %arg22[%c0_95, %c0_96, %c0_97] : memref<1x16x128xf32, #tpu.memory_space<vmem>>, vector<1x16x128xf32>
    %250 = vector.shape_cast %249 : vector<1x16x128xf32> to vector<16x128xf32>
    %251 = vector.shape_cast %248 : vector<16x128xf32> to vector<1x16x128xf32>
    tpu.vector_store %arg22[%c0_95, %c0_96, %c0_97], %251 {strides = array<i32>} : memref<1x16x128xf32, #tpu.memory_space<vmem>>, vector<1x16x128xf32>,
    return
  }
  func.func @transform_0(%arg0: i32, %arg1: i32) -> (i32, i32, i32) {
    %c0_i32 = arith.constant 0 : i32
    %c0_i32_0 = arith.constant 0 : i32
    %c0_i32_1 = arith.constant 0 : i32
    return %arg0, %c0_i32, %c0_i32_0 : i32, i32, i32
  }
  func.func @transform_1(%arg0: i32, %arg1: i32) -> (i32, i32) {
    %c0_i32 = arith.constant 0 : i32
    %c0_i32_0 = arith.constant 0 : i32
    %c0_i32_1 = arith.constant 0 : i32
    return %c0_i32, %c0_i32_0 : i32, i32
  }
  func.func @transform_2(%arg0: i32, %arg1: i32) -> (i32, i32, i32) {
    %c0_i32 = arith.constant 0 : i32
    %c0_i32_0 = arith.constant 0 : i32
    %c0_i32_1 = arith.constant 0 : i32
    return %arg0, %c0_i32, %c0_i32_0 : i32, i32, i32
  }
  func.func @transform_3(%arg0: i32, %arg1: i32) -> (i32, i32, i32) {
    %c0_i32 = arith.constant 0 : i32
    %c0_i32_0 = arith.constant 0 : i32
    %c0_i32_1 = arith.constant 0 : i32
    return %arg1, %c0_i32, %c0_i32_0 : i32, i32, i32
  }
  func.func @transform_4(%arg0: i32, %arg1: i32) -> (i32, i32, i32) {
    %c0_i32 = arith.constant 0 : i32
    %c0_i32_0 = arith.constant 0 : i32
    %c0_i32_1 = arith.constant 0 : i32
    return %arg1, %c0_i32, %c0_i32_0 : i32, i32, i32
  }
  func.func @transform_5(%arg0: i32, %arg1: i32) -> (i32, i32, i32) {
    %c0_i32 = arith.constant 0 : i32
    %c0_i32_0 = arith.constant 0 : i32
    %c0_i32_1 = arith.constant 0 : i32
    return %arg1, %c0_i32, %c0_i32_0 : i32, i32, i32
  }
  func.func @transform_6(%arg0: i32, %arg1: i32) -> (i32, i32, i32, i32) {
    %c0_i32 = arith.constant 0 : i32
    %c0_i32_0 = arith.constant 0 : i32
    %c0_i32_1 = arith.constant 0 : i32
    %c0_i32_2 = arith.constant 0 : i32
    return %arg1, %c0_i32, %c0_i32_0, %c0_i32_1 : i32, i32, i32, i32
  }
  func.func @transform_7(%arg0: i32, %arg1: i32) -> (i32, i32, i32) {
    %c0_i32 = arith.constant 0 : i32
    %c0_i32_0 = arith.constant 0 : i32
    %c0_i32_1 = arith.constant 0 : i32
    return %arg1, %c0_i32, %c0_i32_0 : i32, i32, i32
  }
  func.func @transform_8(%arg0: i32, %arg1: i32) -> (i32, i32, i32) {
    %c0_i32 = arith.constant 0 : i32
    %c0_i32_0 = arith.constant 0 : i32
    %c0_i32_1 = arith.constant 0 : i32
    return %arg1, %c0_i32, %c0_i32_0 : i32, i32, i32
  }
  func.func @transform_9(%arg0: i32, %arg1: i32) -> (i32, i32, i32) {
    %c0_i32 = arith.constant 0 : i32
    %c0_i32_0 = arith.constant 0 : i32
    %c0_i32_1 = arith.constant 0 : i32
    return %arg1, %c0_i32, %c0_i32_0 : i32, i32, i32
  }
  func.func @transform_10(%arg0: i32, %arg1: i32) -> (i32, i32, i32) {
    %c0_i32 = arith.constant 0 : i32
    %c0_i32_0 = arith.constant 0 : i32
    %c0_i32_1 = arith.constant 0 : i32
    return %arg1, %c0_i32, %c0_i32_0 : i32, i32, i32
  }
  func.func @transform_11(%arg0: i32, %arg1: i32) -> (i32, i32, i32) {
    %c0_i32 = arith.constant 0 : i32
    %c0_i32_0 = arith.constant 0 : i32
    %c0_i32_1 = arith.constant 0 : i32
    return %arg1, %c0_i32, %c0_i32_0 : i32, i32, i32
  }
  func.func @transform_12(%arg0: i32, %arg1: i32) -> (i32, i32, i32) {
    %c0_i32 = arith.constant 0 : i32
    %c0_i32_0 = arith.constant 0 : i32
    %c0_i32_1 = arith.constant 0 : i32
    return %arg1, %c0_i32, %c0_i32_0 : i32, i32, i32
  }
  func.func @transform_13(%arg0: i32, %arg1: i32) -> (i32, i32, i32, i32) {
    %c0_i32 = arith.constant 0 : i32
    %c0_i32_0 = arith.constant 0 : i32
    %c0_i32_1 = arith.constant 0 : i32
    %c0_i32_2 = arith.constant 0 : i32
    return %arg1, %c0_i32, %c0_i32_0, %c0_i32_1 : i32, i32, i32, i32
  }
  func.func @transform_14(%arg0: i32, %arg1: i32) -> (i32, i32, i32) {
    %c0_i32 = arith.constant 0 : i32
    %c0_i32_0 = arith.constant 0 : i32
    %c0_i32_1 = arith.constant 0 : i32
    return %arg1, %c0_i32, %c0_i32_0 : i32, i32, i32
  }
  func.func @transform_15(%arg0: i32, %arg1: i32) -> (i32, i32, i32) {
    %c0_i32 = arith.constant 0 : i32
    %c0_i32_0 = arith.constant 0 : i32
    %c0_i32_1 = arith.constant 0 : i32
    return %arg1, %c0_i32, %c0_i32_0 : i32, i32, i32
  }
  func.func @transform_16(%arg0: i32, %arg1: i32) -> (i32, i32, i32) {
    %c0_i32 = arith.constant 0 : i32
    %c0_i32_0 = arith.constant 0 : i32
    %c0_i32_1 = arith.constant 0 : i32
    return %arg1, %c0_i32, %c0_i32_0 : i32, i32, i32
  }
  func.func @transform_17(%arg0: i32, %arg1: i32) -> (i32, i32, i32) {
    %c0_i32 = arith.constant 0 : i32
    %c0_i32_0 = arith.constant 0 : i32
    %c0_i32_1 = arith.constant 0 : i32
    return %arg1, %c0_i32, %c0_i32_0 : i32, i32, i32
  }
  func.func @transform_18(%arg0: i32, %arg1: i32) -> (i32, i32, i32) {
    %c0_i32 = arith.constant 0 : i32
    %c0_i32_0 = arith.constant 0 : i32
    %c0_i32_1 = arith.constant 0 : i32
    return %arg1, %c0_i32, %c0_i32_0 : i32, i32, i32
  }
  func.func @transform_19(%arg0: i32, %arg1: i32) -> (i32, i32, i32) {
    %c0_i32 = arith.constant 0 : i32
    %c0_i32_0 = arith.constant 0 : i32
    %c0_i32_1 = arith.constant 0 : i32
    return %arg1, %c0_i32, %c0_i32_0 : i32, i32, i32
  }
  func.func @transform_20(%arg0: i32, %arg1: i32) -> (i32, i32, i32) {
    %c0_i32 = arith.constant 0 : i32
    %c0_i32_0 = arith.constant 0 : i32
    %c0_i32_1 = arith.constant 0 : i32
    return %arg0, %c0_i32, %c0_i32_0 : i32, i32, i32
  }
}

</mosaic_0001>

<bundles_post_ra>
// kernel: duplex_transformer_conv_forward.5
= control target key start
LH: loop header
LB: loop body
LE: loop exit
PB: predicated region body
PF: predicated region fallthrough
CT: control target
= control target key end

     0   :  { %s624_s18 = smov 0   ;;  %s679_s0 = inlined_call_operand.vmem [shape: f32[2,16,128], index: 0, kind: input, shape index: {}]   ;;  %s680_s1 = inlined_call_operand.vmem [shape: f32[2,128], index: 1, kind: input, shape index: {}]   ;;  %s681_s2 = inlined_call_operand.vmem [shape: bf16[128,128], index: 2, kind: input, shape index: {}]   ;;  %s682_s3 = inlined_call_operand.vmem [shape: f32[1,128], index: 3, kind: input, shape index: {}]   ;;  %s683_s4 = inlined_call_operand.vmem [shape: f32[2,16,128], index: 4, kind: output, shape index: {0}]   ;;  %s684_s5 = inlined_call_operand.vmem [shape: f32[2,16,128], index: 5, kind: output, shape index: {1}]  }
   0x1 LB: > { %s500_s19 = sadd.s32 4294967295, %s590_s18   ;;  %p504_p0 = scmp.ge.s32.totalorder %s590_s18, 1  ;;  %s590_s18 = sphi %s624_s18, %s16_s18  }
   0x2   : > { %p190_p1 = scmp.lt.s32.totalorder %s590_s18, 3 }
   0x4   : > { %p191_p2 = pnand %p504_p0, %p190_p1 }
   0x5   : > { %p223_p3 = scmp.lt.s32.totalorder (!%p191_p2), %s500_s19, 1  ;;  %v564_v2 = vld [vmem:[%s681_s2] sm:$0xff] (!%p191_p2)   ;;  %v592_v3 = vmov (!%p191_p2), 0.0   ;;  %v565_v12 = vld [vmem:[%s681_s2 + $0x8] sm:$0xff] (!%p191_p2)   ;;  %v566_v13 = vld [vmem:[%s681_s2 + $0x10] sm:$0xff] (!%p191_p2)   ;;  %vm593_vm0 = vmmov (!%p191_p2), 0   ;;  %v265_v23 = vlaneseq (!%p191_p2) }
   0x6   : > { %194 = sbr.rel (%p191_p2) target bundleno = 863 (0x35f), region = 36  ;;  %534 = vmatprep.subr.bf16.mxu0 (!%p191_p2), %v592_v3  ;;  %v567_v14 = vld [vmem:[%s681_s2 + $0x18] sm:$0xff] (!%p191_p2)   ;;  %v568_v15 = vld [vmem:[%s681_s2 + $0x20] sm:$0xff] (!%p191_p2)   ;;  %550 = vmatprep.mubr.msk.bf16.mxu0 (!%p191_p2), %vm593_vm0, %v592_v3  ;;  %v569_v16 = vld [vmem:[%s681_s2 + $0x28] sm:$0xff] (!%p191_p2)  }
   0x7   : > { %535 = vmatpush3.bf16.msra.mxu0 (!%p191_p2), %v564_v2  ;;  %v570_v17 = vld [vmem:[%s681_s2 + $0x30] sm:$0xff] (!%p191_p2)   ;;  %v571_v18 = vld [vmem:[%s681_s2 + $0x38] sm:$0xff] (!%p191_p2)   ;;  %v266_v26 = vshrl.u32 (!%p191_p2), %v265_v23, 7  ;;  %v241_v28 = vld [vmem:[%s680_s1] sm:$0x3] (!%p191_p2) }
   0x8   : > { %536 = vmatprep.subr.bf16.mxu0 (!%p191_p2), %v592_v3  ;;  %v511_v41 = vld [vmem:[%s682_s3] ss:$0 sm:$0xff] (!%p191_p2) }
   0x9   : > { %v267_v27 = vsub.s32 (!%p191_p2), 0, %v266_v26  ;;  %v273_v32 = vsub.s32 (!%p191_p2), 1, %v266_v26 }
   0xb   : > { %537 = vmatpush3.bf16.msra.mxu0 (!%p191_p2), %v565_v12  ;;  %v268_v31 = vrot.slane (!%p191_p2), %v241_v28, %v267_v27  ;;  %v274_v36 = vrot.slane (!%p191_p2), %v241_v28, %v273_v32 }
   0xc   : > { %538 = vmatprep.subr.bf16.mxu0 (!%p191_p2), %v592_v3 }
   0xd   : > { %s686_s19 = smov (!%p223_p3, %s500_s19), 1 }
   0xe   : > { %s632_s20 = sshll.u32 %s686_s19, 4 }
   0xf   : > { %s227_s23 = scalar_lea.vmem %s679_s0, %s632_s20  ;;  %539 = vmatpush3.bf16.msra.mxu0 %v566_v13  ;;  %s237_s26 = scalar_lea.vmem %s684_s5, %s632_s20 }
  0x10   : > { %v239_v0 = vld [vmem:[%s227_s23] sm:$0xff]  ;;  %v240_v1 = vld [vmem:[%s227_s23 + $0x8] sm:$0xff]  ;;  %540 = vmatprep.subr.bf16.mxu0 %v592_v3  ;;  %s232_s23 = scalar_lea.vmem %s683_s4, %s632_s20 }
  0x11   : > { %242 = vadd.xlane.f32.xlu0 %v239_v0 }
  0x13   : > { %541 = vmatpush3.bf16.msra.mxu0 %v567_v14 }
  0x14   : > { %542 = vmatprep.subr.bf16.mxu0 %v592_v3 }
  0x15   : > { %244 = vadd.xlane.f32.xlu0 %v240_v1 }
  0x17   : > { %543 = vmatpush3.bf16.msra.mxu0 %v568_v15 }
  0x18   : > { %544 = vmatprep.subr.bf16.mxu0 %v592_v3 }
  0x1b   : > { %545 = vmatpush3.bf16.msra.mxu0 %v569_v16 }
  0x1c   : > { %546 = vmatprep.subr.bf16.mxu0 %v592_v3 }
  0x1f   : > { %547 = vmatpush3.bf16.msra.mxu0 %v570_v17 }
  0x20   : > { %548 = vmatprep.subr.bf16.mxu0 %v592_v3 }
  0x23   : > { %549 = vmatpush3.bf16.msra.mxu0 %v571_v18 }
  0x9e   : > { %v243_v4 = vpop.xlane.xlu0 %242 }
  0x9f   : > { %v247_v5 = vmul.f32 0.0078125, %v243_v4 }
  0xa1   : > { %v249_v6 = vsub.f32 %v239_v0, %v247_v5 }
  0xa2   : > { %v245_v7 = vpop.xlane.xlu0 %244 }
  0xa3   : > { %v248_v8 = vmul.f32 0.0078125, %v245_v7  ;;  %v251_v9 = vmul.f32 %v249_v6, %v249_v6 }
  0xa5   : > { %v250_v10 = vsub.f32 %v240_v1, %v248_v8  ;;  %253 = vadd.xlane.f32.xlu1 %v251_v9 }
  0xa7   : > { %v252_v11 = vmul.f32 %v250_v10, %v250_v10 }
  0xa9   : > { %255 = vadd.xlane.f32.xlu1 %v252_v11 }
 0x132   : > { %v254_v19 = vpop.xlane.xlu1 %253 }
 0x133   : > { %v257_v20 = vmul.f32 0.0078125, %v254_v19 }
 0x135   : > { %v259_v21 = vadd.f32 1e-05, %v257_v20 }
 0x136   : > { %v256_v22 = vpop.xlane.xlu1 %255 }
 0x137   : > { %572 = vrsqrt.f32 %v259_v21  ;;  %v258_v24 = vmul.f32 0.0078125, %v256_v22 }
 0x139   : > { %v260_v25 = vadd.f32 1e-05, %v258_v24 }
 0x13b   : > { %574 = vrsqrt.f32 %v260_v25 }
 0x141   : > { %v573_v29 = vpop.eup %572 }
 0x142   : > { %v263_v30 = vmul.f32 %v573_v29, %v249_v6 }
 0x144   : > { %v269_v35 = vmul.f32 %v268_v31, %v263_v30 }
 0x145   : > { %v575_v33 = vpop.eup %574 }
 0x146   : > { %v264_v34 = vmul.f32 %v575_v33, %v250_v10  ;;  %v275_v38 = vadd.f32 %v274_v36, %v269_v35 }
 0x148   : > { %v270_v37 = vmul.f32 %v268_v31, %v264_v34 }
 0x14a   : > { %v276_v39 = vadd.f32 %v274_v36, %v270_v37 }
 0x14c   : > { %v294_v40 = vpack.c.bf16 %v276_v39, %v275_v38 }
 0x14e   : > { %551 = vmatmul.mubr.bf16.vlgmr.msra.gmra.mrb[0].mxu0 %v294_v40 }
 0x221   : > { %v383_v42 = vpop.f32.mrb[0].mxu0 }
 0x222   : > { %v384_v43 = vadd.f32 %v511_v41, %v383_v42  ;;  %v552_v44 = vpop.f32.mrb[1].mxu0 }
 0x223   : > { %v386_v45 = vpop.f32.mrb[2].mxu0 }
 0x224   : > { %390 = vst [vmem:[%s232_s23] sm:$0xff] %v384_v43  ;;  %v387_v46 = vadd.f32 %v511_v41, %v386_v45  ;;  %392 = vmax.xlane.f32.xlu0 %v384_v43  ;;  %v553_v47 = vpop.f32.mrb[3].mxu0 }
 0x226   : > { %391 = vst [vmem:[%s232_s23 + $0x8] sm:$0xff] %v387_v46  ;;  %394 = vmax.xlane.f32.xlu1 %v387_v46 }
 0x2b1   : > { %v393_v48 = vpop.xlane.xlu0 %392 }
 0x2b2   : > { %v396_v49 = vsub.f32 %v384_v43, %v393_v48 }
 0x2b3   : > { %v395_v50 = vpop.xlane.xlu1 %394 }
 0x2b4   : > { %v398_v51 = vmul.f32 1.442695, %v396_v49  ;;  %v397_v52 = vsub.f32 %v387_v46, %v395_v50 }
 0x2b6   : > { %576 = vpow2.f32 %v398_v51  ;;  %v400_v53 = vmul.f32 1.442695, %v397_v52 }
 0x2b8   : > { %578 = vpow2.f32 %v400_v53 }
 0x2c0   : > { %v577_v54 = vpop.eup %576 }
 0x2c1   : > { %402 = vadd.xlane.f32.xlu0 %v577_v54 }
 0x2c2   : > { %v579_v55 = vpop.eup %578 }
 0x2c3   : > { %404 = vadd.xlane.f32.xlu1 %v579_v55 }
 0x34e   : > { %v403_v56 = vpop.xlane.xlu0 %402 }
 0x34f   : > { %580 = vrcp.f32 %v403_v56 }
 0x350   : > { %v405_v57 = vpop.xlane.xlu1 %404 }
 0x351   : > { %582 = vrcp.f32 %v405_v57 }
 0x359   : > { %v581_v58 = vpop.eup %580 }
 0x35a   : > { %v407_v59 = vmul.f32 %v581_v58, %v577_v54 }
 0x35b   : > { %v583_v60 = vpop.eup %582 }
 0x35c   : > { %410 = vst [vmem:[%s237_s26] sm:$0xff] %v407_v59  ;;  %v409_v61 = vmul.f32 %v583_v60, %v579_v55 }
 0x35e   : > { %411 = vst [vmem:[%s237_s26 + $0x8] sm:$0xff] %v409_v61 }
 0x35f PF: > { %s16_s18 = sadd.s32 1, %s590_s18  }
 0x360   : > { %p13_p4 = scmp.ge.s32.totalorder %s16_s18, 4  }
 0x362   :  { %15 = sbr.rel (!%p13_p4) target bundleno = 1 (0x1), region = 78 }

// kernel: duplex_transformer_conv_forward.3
= control target key start
LH: loop header
LB: loop body
LE: loop exit
PB: predicated region body
PF: predicated region fallthrough
CT: control target
= control target key end

     0   :  { %s3917_s0 = inlined_call_operand.vmem [shape: f32[2,16,24], index: 0, kind: input, shape index: {}]   ;;  %s3918_s1 = inlined_call_operand.vmem [shape: bf16[24,128], index: 1, kind: input, shape index: {}]   ;;  %s3919_s2 = inlined_call_operand.vmem [shape: f32[1,128], index: 2, kind: input, shape index: {}]   ;;  %s3920_s3 = inlined_call_operand.vmem [shape: f32[16,128], index: 3, kind: input, shape index: {}]   ;;  %s3921_s4 = inlined_call_operand.vmem [shape: f32[2,2,128], index: 4, kind: input, shape index: {}]   ;;  %s3922_s5 = inlined_call_operand.hbm [shape: bf16[2,128,384], index: 5, kind: input, shape index: {}]   ;;  %s3923_s6 = inlined_call_operand.vmem [shape: f32[2,1,384], index: 6, kind: input, shape index: {}]   ;;  %s3924_s7 = inlined_call_operand.hbm [shape: bf16[2,4,32,128], index: 7, kind: input, shape index: {}]   ;;  %s3925_s8 = inlined_call_operand.vmem [shape: f32[2,1,128], index: 8, kind: input, shape index: {}]   ;;  %s3926_s9 = inlined_call_operand.vmem [shape: f32[2,2,128], index: 9, kind: input, shape index: {}]   ;;  %s3927_s10 = inlined_call_operand.vmem [shape: bf16[2,128,256], index: 10, kind: input, shape index: {}]   ;;  %s3928_s11 = inlined_call_operand.vmem [shape: f32[2,1,256], index: 11, kind: input, shape index: {}]   ;;  %s3929_s12 = inlined_call_operand.hbm [shape: bf16[2,256,128], index: 12, kind: input, shape index: {}]   ;;  %s3930_s13 = inlined_call_operand.vmem [shape: f32[2,1,128], index: 13, kind: input, shape index: {}]   ;;  %s3931_s14 = inlined_call_operand.vmem [shape: f32[2,128], index: 14, kind: input, shape index: {}]   ;;  %s3932_s15 = inlined_call_operand.vmem [shape: f32[2,16,128], index: 15, kind: output, shape index: {}]  }
   0x1   :  { %3945 = sst [smem:[#allocation17_spill]] %s3917_s0 }
   0x2   :  { %3946 = sst [smem:[#allocation18_spill]] %s3918_s1 }
   0x3   :  { %3947 = sst [smem:[#allocation19_spill]] %s3919_s2 }
   0x4   :  { %3948 = sst [smem:[#allocation20_spill]] %s3920_s3 }
   0x5   :  { %3949 = sst [smem:[#allocation21_spill]] %s3922_s5 }
   0x6   :  { %3950 = sst [smem:[#allocation22_spill]] %s3924_s7 }
   0x7   :  { %3951 = sst [smem:[#allocation23_spill]] %s3926_s9 }
   0x8   :  { %3952 = sst [smem:[#allocation24_spill]] %s3928_s11 }
   0x9   :  { %3953 = sst [smem:[#allocation25_spill]] %s3929_s12 }
   0xa   :  { %3954 = sst [smem:[#allocation26_spill]] %s3930_s13 }
   0xb   :  { %3955 = sst [smem:[#allocation27_spill]] %s3931_s14 }
   0xc   :  { %3956 = sst [smem:[#allocation28_spill]] %s3932_s15 }
   0xd   :  { %20 = vsyncpa [#allocation3], 0 }
   0xe   :  { %22 = vsyncpa [#allocation3 + $0x1], 0 }
   0xf   :  { %23 = vsyncpa [#allocation5], 0 }
  0x10   :  { %25 = vsyncpa [#allocation5 + $0x1], 0  ;;  %s3359_s18 = smov 0   ;;  %s3361_s19 = smov 0  }
  0x11   :  { %s3363_s20 = smov 0   ;;  %s3365_s21 = smov 0  }
  0x12   :  { %s3367_s22 = smov 0   ;;  %s3369_s23 = smov 0  }
  0x13   :  { %s3371_s24 = smov 0   ;;  %s3373_s25 = smov 0  }
  0x14 LB: > { %3957 = sst [smem:[#allocation9_spill]] %s3238_s19  ;;  %s3935_s26 = sadd.s32 4294967295, %s3262_s25   ;;  %s3262_s25 = sphi %s3373_s25, %s31_s25   ;;  %s3258_s24 = sphi %s3371_s24, %s4000_s24   ;;  %s3254_s23 = sphi %s3369_s23, %s3999_s23   ;;  %s3250_s22 = sphi %s3367_s22, %s3998_s22   ;;  %s3246_s21 = sphi %s3365_s21, %s3997_s21   ;;  %s3242_s20 = sphi %s3363_s20, %s3996_s20   ;;  %s3238_s19 = sphi %s3361_s19, %s3995_s19   ;;  %s3234_s18 = sphi %s3359_s18, %s3994_s18  }
  0x15   : > { %3958 = sst [smem:[#allocation10_spill]] %s3242_s20  ;;  %s40_s27 = sadd.s32 1, %s3254_s23 }
  0x16   : > { %3959 = sst [smem:[#allocation11_spill]] %s3254_s23  ;;  %p41_p0 = scmp.ge.s32.totalorder %s40_s27, 2 }
  0x17   : > { %3960 = sst [smem:[#allocation12_spill]] %s3258_s24  ;;  %s43_s28 = sadd.s32 1, %s3258_s24 }
  0x18   : > { %3961 = sst [smem:[#allocation13_spill]] %s3262_s25  ;;  %s165_s29 = sadd.s32 1, %s3242_s20 }
  0x19   : > { %p172_p1 = scmp.ne.s32.totalorder %s3242_s20, %s3238_s19  ;;  %s4002_s27 = smov (%p41_p0, %s40_s27), 0 }
  0x1a   : > { %3962 = sst [smem:[#allocation14_spill]] %s4002_s27  ;;  %s4004_s28 = smov (!%p41_p0, %s43_s28), %s3258_s24 }
  0x1b   : > { %s162_s30 = ssub.s32 %s3254_s23, %s4002_s27  ;;  %p173_p2 = scmp.eq.s32.totalorder %s3262_s25, 0 }
  0x1c   : > { %p45_p3 = scmp.ge.s32.totalorder %s4004_s28, 2  ;;  %p163_p4 = scmp.eq.s32.totalorder %s162_s30, 0 }
  0x1d   : > { %p174_p5 = por %p173_p2, %p172_p1  ;;  %p178_p6 = scmp.ne.s32.totalorder %s3238_s19, %s3234_s18 }
  0x1e   : > { %s4006_s28 = smov (%p45_p3, %s4004_s28), 0  ;;  %p179_p7 = scmp.eq.s32.totalorder %s3935_s26, 0 }
  0x1f   : > { %3963 = sst [smem:[#allocation15_spill]] %s4006_s28  ;;  %p2852_p8 = scmp.lt.s32.totalorder %s3262_s25, 4 }
  0x20   : > { %s3413_s16 = scalar_select %p163_p4, %s3242_s20, %s165_s29  }
  0x21   : > { %s3419_s17 = sand.u32 1, %s3242_s20   ;;  %p3421_p9 = por %p179_p7, %p178_p6 }
  0x22   : > { %3964 = sst [smem:[#allocation16_spill]] %s3413_s16  ;;  %s512_s27 = sand.u32 1, %s3262_s25  }
  0x23   : > { %s3965_s24 = scalar_select %p3421_p9, 1, 0 }
  0x24   : > { %p3426_p10 = pnand %p2852_p8, %p174_p5  ;;  %s2553_s18 = sshll.u32 %s3419_s17, 6 }
  0x25   : > { %s2657_s28 = sshll.u32 %s3254_s23, 10  ;;  %s3967_s7 = sld [smem:[#allocation22_spill]] }
  0x26   : > { %s516_s20 = scalar_lea.vmem [#allocation4], %s2553_s18  ;;  %s3440_s3 = scalar_lea.sflag [#allocation5], %s512_s27 }
  0x27   : > { %s523_s14 = sshll.u32 %s516_s20, 4  ;;  %p3446_p13 = pneg %p3426_p10  ;;  %s3437_s14 = int_to_ptr.vmem [resolvable:$true] %s523_s14 }
  0x2b   : > { %s3435_s26 = scalar_lea.hbm %s3967_s7, %s2657_s28  ;;  %s3107_s20 = scalar_lea.hbm %s3967_s7, 2048 }
  0x2c   : > { %s3102_s2 = scalar_lea.hbm %s3435_s26, 1024  ;;  %p3108_p2 = scmp.lt.u32.totalorder %s3435_s26, %s3967_s7 }
  0x2d   : > { %p3103_p12 = scmp.ne.s32.totalorder %s3435_s26, %s3102_s2  ;;  %p3109_p3 = scmp.lt.u32.totalorder %s3107_s20, %s3102_s2 }
  0x2e   : > { %p3111_p5 = scmp.lt.u32.totalorder %s3102_s2, %s3435_s26 }
  0x2f   : > { %p3105_p0 = pnand %p3446_p13, %p3103_p12  ;;  %p3110_p4 = por %p3109_p3, %p3108_p2 }
  0x31   : > { %p3106_p1 = pneg %p3105_p0  ;;  %p3112_p6 = por %p3111_p5, %p3110_p4 }
  0x33   : > { %p3113_p7 = pnand %p3112_p6, %p3106_p1 }
  0x35   : > { %3116 = shalt.err (!%p3113_p7)
}
  0x36   : > { %s3117_s27 = scalar_lea.vmem %s3437_s14, 1024  ;;  %s3264_s28 = smov [#allocation4]  }
  0x37   : > { %p3118_p8 = scmp.ne.s32.totalorder %s3437_s14, %s3117_s27  ;;  %s3122_s16 = sshll.u32 %s3264_s28, 4  ;;  %s3123_s16 = int_to_ptr.vmem [resolvable:$false] %s3122_s16 }
  0x38   : > { %s3124_s18 = scalar_lea.vmem %s3123_s16, 2048  ;;  %p3125_p11 = scmp.lt.s32.totalorder %s3437_s14, %s3123_s16 }
  0x39   : > { %p3120_p12 = pnand %p3118_p8, %p3446_p13  ;;  %p3126_p9 = scmp.lt.s32.totalorder %s3124_s18, %s3117_s27 }
  0x3b   : > { %p3121_p0 = pneg %p3120_p12  ;;  %p3127_p2 = por %p3126_p9, %p3125_p11 }
  0x3d   : > { %p3128_p3 = pnand %p3127_p2, %p3121_p0 }
  0x3f   : > { %3131 = shalt.err (!%p3128_p3)
}
  0x40   : > { %s3940_s2 = smov 64   ;;  %s3941_s20 = smov 4  }
  0x41   : > { %2848 = dma.hbm_to_vmem [thread:$0]  (!%p3426_p10), %s3435_s26, 1024, %s3437_s14, %s3440_s3, %s3940_s2, %s3940_s2, %s3941_s20  }
  0x42   : > { %p586_p9 = scmp.lt.s32.totalorder %s3262_s25, 5  ;;  %p3969_p11 = scmp.ge.s32.totalorder %s3262_s25, 1 }
  0x43   : > { %s2832_s27 = smul.u32 192, %s3419_s17  ;;  %s3971_s5 = sld [smem:[#allocation21_spill]] }
  0x44   : > { %p3476_p1 = pnand %p3969_p11, %p586_p9  ;;  %s2833_s28 = smul.u32 3072, %s3254_s23 }
  0x45   : > { %s488_s15 = scalar_lea.vmem [#allocation2], %s2832_s27  ;;  %s2556_s14 = sshll.u32 %s3419_s17, 7 }
  0x46   : > { %s3970_s29 = scalar_select %p3476_p1, 1, 0 }
  0x47   : > { %s495_s13 = sshll.u32 %s488_s15, 4  ;;  %s485_s26 = scalar_lea.sflag [#allocation3], %s3419_s17  ;;  %s3487_s13 = int_to_ptr.vmem [resolvable:$true] %s495_s13 }
  0x49   : > { %s3485_s7 = scalar_lea.hbm %s3971_s5, %s2833_s28  ;;  %s3137_s28 = scalar_lea.hbm %s3971_s5, 6144 }
  0x4a   : > { %s3132_s2 = scalar_lea.hbm %s3485_s7, 3072  ;;  %p3138_p7 = scmp.lt.u32.totalorder %s3485_s7, %s3971_s5 }
  0x4b   : > { %p3133_p4 = scmp.ne.s32.totalorder %s3485_s7, %s3132_s2  ;;  %p3139_p8 = scmp.lt.u32.totalorder %s3137_s28, %s3132_s2 }
  0x4c   : > { %p3141_p0 = scmp.lt.u32.totalorder %s3132_s2, %s3485_s7 }
  0x4d   : > { %p3135_p5 = pnand %p3133_p4, %p3446_p13  ;;  %p3140_p12 = por %p3139_p8, %p3138_p7 }
  0x4f   : > { %p3136_p6 = pneg %p3135_p5  ;;  %p3142_p2 = por %p3141_p0, %p3140_p12 }
  0x51   : > { %p3143_p3 = pnand %p3142_p2, %p3136_p6 }
  0x53   : > { %3146 = shalt.err (!%p3143_p3)
}
  0x54   : > { %s3147_s15 = scalar_lea.vmem %s3487_s13, 3072  ;;  %s3267_s11 = smov [#allocation2]  }
  0x55   : > { %p3148_p9 = scmp.ne.s32.totalorder %s3487_s13, %s3147_s15  ;;  %s3152_s20 = sshll.u32 %s3267_s11, 4  ;;  %s3153_s20 = int_to_ptr.vmem [resolvable:$false] %s3152_s20 }
  0x56   : > { %s3154_s27 = scalar_lea.vmem %s3153_s20, 6144  ;;  %p3155_p5 = scmp.lt.s32.totalorder %s3487_s13, %s3153_s20 }
  0x57   : > { %p3150_p11 = pnand %p3148_p9, %p3446_p13  ;;  %p3156_p1 = scmp.lt.s32.totalorder %s3154_s27, %s3147_s15 }
  0x59   : > { %p3151_p4 = pneg %p3150_p11  ;;  %p3157_p7 = por %p3156_p1, %p3155_p5 }
  0x5b   : > { %p3158_p8 = pnand %p3157_p7, %p3151_p4 }
  0x5d   : > { %3161 = shalt.err (!%p3158_p8)
}
  0x5e   : > { %s3268_s2 = smov 192   ;;  %s3269_s28 = smov 12  }
  0x5f   : > { %2845 = dma.hbm_to_vmem [thread:$0]  (!%p3426_p10), %s3485_s7, 3072, %s3487_s13, %s485_s26, %s3268_s2, %s3268_s2, %s3269_s28  }
  0x60   : > { %s2658_s16 = sshll.u32 %s3254_s23, 11  ;;  %s3972_s12 = sld [smem:[#allocation25_spill]] }
  0x61   : > { %s565_s20 = scalar_lea.vmem [#allocation6], %s2556_s14 }
  0x62   : > { %s572_s27 = sshll.u32 %s565_s20, 4  ;;  %s3522_s27 = int_to_ptr.vmem [resolvable:$true] %s572_s27 }
  0x66   : > { %s3518_s15 = scalar_lea.hbm %s3972_s12, %s2658_s16  ;;  %s3167_s26 = scalar_lea.hbm %s3972_s12, 4096 }
  0x67   : > { %s3162_s5 = scalar_lea.hbm %s3518_s15, 2048  ;;  %p3168_p0 = scmp.lt.u32.totalorder %s3518_s15, %s3972_s12 }
  0x68   : > { %p3163_p1 = scmp.ne.s32.totalorder %s3518_s15, %s3162_s5  ;;  %p3169_p2 = scmp.lt.u32.totalorder %s3167_s26, %s3162_s5 }
  0x69   : > { %p3171_p9 = scmp.lt.u32.totalorder %s3162_s5, %s3518_s15 }
  0x6a   : > { %p3165_p6 = pnand %p3163_p1, %p3446_p13  ;;  %p3170_p3 = por %p3169_p2, %p3168_p0 }
  0x6c   : > { %p3166_p12 = pneg %p3165_p6  ;;  %p3172_p11 = por %p3171_p9, %p3170_p3 }
  0x6e   : > { %p3173_p4 = pnand %p3172_p11, %p3166_p12 }
  0x70   : > { %3176 = shalt.err (!%p3173_p4)
}
  0x71   : > { %s3177_s17 = scalar_lea.vmem %s3522_s27, 2048  ;;  %s3270_s14 = smov [#allocation6]  }
  0x72   : > { %p3178_p5 = scmp.ne.s32.totalorder %s3522_s27, %s3177_s17  ;;  %s3182_s16 = sshll.u32 %s3270_s14, 4  ;;  %s3183_s16 = int_to_ptr.vmem [resolvable:$false] %s3182_s16 }
  0x73   : > { %s3184_s18 = scalar_lea.vmem %s3183_s16, 4096  ;;  %p3185_p1 = scmp.lt.s32.totalorder %s3522_s27, %s3183_s16 }
  0x74   : > { %p3180_p7 = pnand %p3178_p5, %p3446_p13  ;;  %p3186_p6 = scmp.lt.s32.totalorder %s3184_s18, %s3177_s17 }
  0x76   : > { %p3181_p8 = pneg %p3180_p7  ;;  %p3187_p0 = por %p3186_p6, %p3185_p1 }
  0x78   : > { %p3188_p2 = pnand %p3187_p0, %p3181_p8 }
  0x7a   : > { %3191 = shalt.err (!%p3188_p2)
}
  0x7b   : > { %s3973_s5 = smov 4   ;;  %s3974_s11 = smov 64  }
  0x7c   : > { %2851 = dma.hbm_to_vmem [thread:$0]  (!%p3426_p10), %s3518_s15, 2048, %s3522_s27, %s3440_s3, %s3974_s11, %s3974_s11, %s3973_s5  }
  0x7d   : > { %p3975_p13 = scmp.ne.s32.totalorder %s3970_s29, 0 }
  0x7e   : > { %s3552_s1 = sand.u32 (!%p3975_p13), 1, %s3238_s19   ;;  %p3976_p12 = scmp.ne.s32.totalorder (!%p3975_p13), %s3965_s24, 0 }
  0x7f   : > { %590 = sbr.rel (%p3975_p13) target bundleno = 3152 (0xc50), region = 80  ;;  %s593_s7 = scalar_lea.sflag (!%p3975_p13), [#allocation3], %s3552_s1 }
  0x80   : > { %s2834_s20 = smul.u32 (!%p3975_p13), 192, %s3552_s1 }
  0x82   : > { %s3556_s13 = scalar_lea.vmem (!%p3975_p13), [#allocation2], %s2834_s20 }
  0x86   : > { %3225 = dma.done.wait (%p3976_p12), %s593_s7, 3072  }
  0x87   : > { %3227 = vsyncadd (%p3976_p12), %s593_s7, 4294964224  ;;  %s3977_s3 = sadd.s32 4294967295, %s3262_s25   ;;  %s2560_s29 = sshll.u32 %s3552_s1, 6 }
  0x88   : > { %s601_s30 = sand.u32 1, %s3977_s3   ;;  %s3565_s27 = scalar_lea.vmem [#allocation4], %s2560_s29 }
  0x89   : > { %s602_s15 = scalar_lea.sflag [#allocation5], %s601_s30 }
  0x8a   : > { %3229 = dma.done.wait (%p3976_p12), %s602_s15, 3072  }
  0x8b   : > { %3231 = vsyncadd (%p3976_p12), %s602_s15, 4294964224  ;;  %s2561_s26 = sshll.u32 %s3552_s1, 7  ;;  %p703_p10 = scmp.lt.s32.totalorder %s3250_s22, 1 }
  0x8c   : > { %p708_p3 = scmp.lt.s32.totalorder %s3246_s21, 1  ;;  %s3978_s0 = sld [smem:[#allocation17_spill]] }
  0x8d   : > { %s4008_s22 = smov (!%p703_p10, %s3250_s22), 1  ;;  %s3980_s19 = sld [smem:[#allocation24_spill]] }
  0x8e   : > { %s3576_s2 = scalar_select %p708_p3, %s3246_s21, 1 }
  0x8f   : > { %s2659_s28 = sshll.u32 %s4008_s22, 4  ;;  %s3981_s25 = sld [smem:[#allocation26_spill]] }
  0x90   : > { %s3582_s16 = sshll.u32 %s3576_s2, 1  ;;  %s2835_s1 = smul.u32 3, %s3576_s2 }
  0x91   : > { %s3982_s9 = sld [smem:[#allocation28_spill]]  ;;  %p2571_p9 = scmp.ne.s32.totalorder %s3246_s21, 0 }
  0x92   : > { %s707_s14 = scalar_lea.vmem %s3978_s0, %s2659_s28  ;;  %s3600_s24 = scalar_lea.vmem %s3923_s6, %s2835_s1  ;;  %v3271_v1 = vmov (!%p2571_p9), 0.0   ;;  %vm771_vm0 = vcmask (!%p2571_p9), 1043456   ;;  %vm3272_vm1 = vmmov (!%p2571_p9), 0   ;;  %vm767_vm2 = vcmask (!%p2571_p9), 195584  }
  0x93   : > { %s2660_s0 = sshll.u32 %s3576_s2, 7  ;;  %s731_s20 = scalar_lea.vmem %s3980_s19, %s3582_s16  ;;  %2724 = vmatprep.subr.bf16.mxu0 (!%p2571_p9), %v3271_v1  ;;  %2728 = vmatprep.mubr.msk.bf16.mxu0 (!%p2571_p9), %vm3272_vm1, %v3271_v1  ;;  %v745_v3 = vld [vmem:[%s707_s14] sm:$0xff] (!%p2571_p9)  ;;  %v746_v4 = vld [vmem:[%s707_s14 + $0x8] sm:$0xff] (!%p2571_p9) }
  0x94   : > { %s3606_s5 = scalar_lea.vmem %s3927_s10, %s2660_s0  ;;  %s3621_s1 = scalar_lea.vmem [#allocation6], %s2561_s26  ;;  %v751_v6 = vpack.c.bf16 (!%p2571_p9), %v746_v4, %v745_v3 }
  0x95   : > { %s734_s30 = scalar_lea.vmem %s3981_s25, %s3576_s2  ;;  %744 = sbr.rel (%p2571_p9) target bundleno = 385 (0x181), region = 96 }
  0x96   : > { %s3983_s17 = sld [smem:[#allocation18_spill]] (!%p2571_p9)  ;;  %s3984_s26 = sld [smem:[#allocation19_spill]] (!%p2571_p9) }
  0x97   : > { %s3619_s15 = scalar_lea.vmem %s3982_s9, %s2659_s28  ;;  %s3985_s3 = sld [smem:[#allocation20_spill]] (!%p2571_p9) }
  0x9c   : > { %v2929_v0 = vld [vmem:[%s3983_s17] sm:$0xff]   ;;  %v2930_v2 = vld [vmem:[%s3983_s17 + $0x8] ss:$0 sps:$4 sm:$0xff]  }
  0x9d   : > { %2725 = vmatpush3.bf16.msra.mxu0 %v2929_v0  ;;  %v773_v5 = vsel %vm771_vm0, %v2930_v2, 0  ;;  %v2572_v7 = vld [vmem:[%s3984_s26] ss:$0 sm:$0xff]  ;;  %v819_v16 = vld [vmem:[%s3985_s3 + $0x8] sm:$0xff] }
  0x9e   : > { %2726 = vmatprep.subr.bf16.mxu0 %v3271_v1  ;;  %v818_v11 = vld [vmem:[%s3985_s3] sm:$0xff] }
  0xa1   : > { %2727 = vmatpush3.bf16.msra.mxu0 %v773_v5 }
  0xa4   : > { %2729 = vmatmul.mubr.msk.bf16.vlgmr.msra.gmra.mrb[0].mxu0 %vm767_vm2, %v751_v6 }
 0x177   : > { %v809_v8 = vpop.f32.mrb[0].mxu0 }
 0x178   : > { %v810_v9 = vadd.f32 %v2572_v7, %v809_v8  ;;  %v2730_v10 = vpop.f32.mrb[1].mxu0 }
 0x179   : > { %v812_v12 = vpop.f32.mrb[2].mxu0 }
 0x17a   : > { %v816_v13 = vmul.f32 11.313708, %v810_v9  ;;  %v813_v14 = vadd.f32 %v2572_v7, %v812_v12  ;;  %v2731_v15 = vpop.f32.mrb[3].mxu0 }
 0x17c   : > { %v820_v17 = vadd.f32 %v818_v11, %v816_v13  ;;  %v817_v18 = vmul.f32 11.313708, %v813_v14 }
 0x17e   : > { %822 = vst [vmem:[%s3619_s15] sm:$0xff] %v820_v17  ;;  %v821_v19 = vadd.f32 %v819_v16, %v817_v18 }
 0x180   : > { %823 = vst [vmem:[%s3619_s15 + $0x8] sm:$0xff] %v821_v19 }
 0x181 PF: > { %v2976_v22 = vld [vmem:[%s3556_s13 + $0x4] ss:$12 sps:$4 sm:$0xff]   ;;  %v2978_v23 = vld [vmem:[%s3556_s13] ss:$12 sps:$4 sm:$0xff]   ;;  %v3273_v24 = vmov 0.0   ;;  %v3274_v50 = vmov 0   ;;  %v900_v60 = vlaneseq  ;;  %s3986_s7 = scalar_lea.vmem %s3921_s4, %s3582_s16  ;;  %s3987_s19 = scalar_lea.vmem %s3925_s8, %s3576_s2 }
 0x182   : > { %2732 = vmatprep.subr.bf16.mxu1 %v3273_v24  ;;  %v2979_v25 = vld [vmem:[%s3556_s13 + $0x8] ss:$12 sps:$4 sm:$0xff]   ;;  %1057 = vmatprep.subr.bf16.mxu0 %v2976_v22  ;;  %v2982_v35 = vld [vmem:[%s3556_s13 + $0x18] ss:$12 sps:$4 sm:$0xff]   ;;  %v2983_v36 = vld [vmem:[%s3556_s13 + $0x20] ss:$12 sps:$4 sm:$0xff]  }
 0x183   : > { %v2980_v26 = vld [vmem:[%s3556_s13 + $0x1c] ss:$12 sps:$4 sm:$0xff]   ;;  %1058 = vmatpush1.bf16.msra.mxu0 %v2978_v23  ;;  %2733 = vmatpush3.bf16.msra.mxu1 %v2979_v25  ;;  %v2984_v37 = vld [vmem:[%s3556_s13 + $0x34] ss:$12 sps:$4 sm:$0xff]   ;;  %v2987_v39 = vld [vmem:[%s3556_s13 + $0x38] ss:$12 sps:$4 sm:$0xff]  }
 0x184   : > { %1059 = vmatprep.subr.bf16.mxu0 %v2980_v26  ;;  %2734 = vmatprep.subr.bf16.mxu1 %v3273_v24  ;;  %v2986_v38 = vld [vmem:[%s3556_s13 + $0x30] ss:$12 sps:$4 sm:$0xff]   ;;  %v2988_v40 = vld [vmem:[%s3556_s13 + $0x4c] ss:$12 sps:$4 sm:$0xff]   ;;  %v2990_v41 = vld [vmem:[%s3556_s13 + $0x48] ss:$12 sps:$4 sm:$0xff]  }
 0x185   : > { %v824_v20 = vld [vmem:[%s3619_s15] sm:$0xff]  ;;  %v2991_v42 = vld [vmem:[%s3556_s13 + $0x50] ss:$12 sps:$4 sm:$0xff]   ;;  %v2995_v45 = vld [vmem:[%s3556_s13 + $0x68] ss:$12 sps:$4 sm:$0xff]   ;;  %1089 = vmatprep.mubr.bf16.mxu0 %v3274_v50  ;;  %vm3275_vm3 = vmmov 0  }
 0x186   : > { %877 = vadd.xlane.f32.xlu0 %v824_v20  ;;  %v2992_v43 = vld [vmem:[%s3556_s13 + $0x64] ss:$12 sps:$4 sm:$0xff]   ;;  %v2994_v44 = vld [vmem:[%s3556_s13 + $0x60] ss:$12 sps:$4 sm:$0xff]   ;;  %v2996_v46 = vld [vmem:[%s3556_s13 + $0x7c] ss:$12 sps:$4 sm:$0xff]   ;;  %2748 = vmatprep.mubr.msk.bf16.mxu1 %vm3275_vm3, %v3273_v24 }
 0x187   : > { %v825_v21 = vld [vmem:[%s3619_s15 + $0x8] sm:$0xff]  ;;  %1060 = vmatpush1.bf16.msra.mxu0 %v2982_v35  ;;  %2735 = vmatpush3.bf16.msra.mxu1 %v2983_v36  ;;  %v2998_v47 = vld [vmem:[%s3556_s13 + $0x78] ss:$12 sps:$4 sm:$0xff]   ;;  %v3000_v49 = vld [vmem:[%s3556_s13 + $0x94] ss:$12 sps:$4 sm:$0xff]   ;;  %v901_v63 = vshrl.u32 %v900_v60, 7 }
 0x188   : > { %2736 = vmatprep.subr.bf16.mxu1 %v3273_v24  ;;  %1061 = vmatprep.subr.bf16.mxu0 %v2984_v37  ;;  %v2999_v48 = vld [vmem:[%s3556_s13 + $0x80] ss:$12 sps:$4 sm:$0xff]   ;;  %v3002_v51 = vld [vmem:[%s3556_s13 + $0x90] ss:$12 sps:$4 sm:$0xff]   ;;  %v3003_v52 = vld [vmem:[%s3556_s13 + $0x98] ss:$12 sps:$4 sm:$0xff]  }
 0x189   : > { %v3004_v53 = vld [vmem:[%s3556_s13 + $0xac] ss:$12 sps:$4 sm:$0xff]   ;;  %v3006_v54 = vld [vmem:[%s3556_s13 + $0xa8] ss:$12 sps:$4 sm:$0xff]   ;;  %v3007_v55 = vld [vmem:[%s3556_s13 + $0xb0] ss:$12 sps:$4 sm:$0xff]  }
 0x18a   : > { %879 = vadd.xlane.f32.xlu0 %v825_v21  ;;  %v3688_v0 = vsub.s32 0, %v901_v63  ;;  %v826_v1 = vld [vmem:[%s3986_s7] sm:$0x3]  ;;  %v3697_v5 = vsub.s32 1, %v901_v63  ;;  %v924_v15 = vsub.s32 2, %v901_v63  ;;  %vm1209_vm4 = vcmask 261120  }
 0x18b   : > { %1062 = vmatpush1.bf16.msra.mxu0 %v2986_v38  ;;  %2737 = vmatpush3.bf16.msra.mxu1 %v2987_v39  ;;  %v859_v14 = vld [vmem:[%s3600_s24] sm:$0x7]  ;;  %s3276_s24 = smov 96   ;;  %s3277_s22 = smov 64   ;;  %vm1406_vm5 = vcmask 130048  }
 0x18c   : > { %2738 = vmatprep.subr.bf16.mxu1 %v3273_v24  ;;  %1063 = vmatprep.subr.bf16.mxu0 %v2988_v40  ;;  %v903_v4 = vrot.slane %v826_v1, %v3688_v0  ;;  %v909_v9 = vrot.slane %v826_v1, %v3697_v5  ;;  %v917_v16 = vrot.slane %v859_v14, %v3688_v0  ;;  %s3278_s0 = smov 32   ;;  %s3988_s9 = sld [smem:[#allocation23_spill]] }
 0x18d   : > { %v925_v18 = vrot.slane %v859_v14, %v924_v15  ;;  %p2654_p11 = scmp.ne.s32.totalorder %s3246_s21, 1 }
 0x18f   : > { %1064 = vmatpush1.bf16.msra.mxu0 %v2990_v41  ;;  %2739 = vmatpush3.bf16.msra.mxu1 %v2991_v42 }
 0x190   : > { %2740 = vmatprep.subr.bf16.mxu1 %v3273_v24  ;;  %1065 = vmatprep.subr.bf16.mxu0 %v2992_v43 }
 0x192   : > { %s3989_s25 = scalar_lea.vmem %s3988_s9, %s3582_s16 }
 0x193   : > { %1066 = vmatpush1.bf16.msra.mxu0 %v2994_v44  ;;  %2741 = vmatpush3.bf16.msra.mxu1 %v2995_v45 }
 0x194   : > { %1067 = vmatprep.subr.bf16.mxu0 %v2996_v46  ;;  %2742 = vmatprep.subr.bf16.mxu1 %v3273_v24 }
 0x197   : > { %1068 = vmatpush1.bf16.msra.mxu0 %v2998_v47  ;;  %2743 = vmatpush3.bf16.msra.mxu1 %v2999_v48 }
 0x198   : > { %1069 = vmatprep.subr.bf16.mxu0 %v3000_v49  ;;  %2744 = vmatprep.subr.bf16.mxu1 %v3273_v24 }
 0x19b   : > { %1070 = vmatpush1.bf16.msra.mxu0 %v3002_v51  ;;  %2745 = vmatpush3.bf16.msra.mxu1 %v3003_v52 }
 0x19c   : > { %1071 = vmatprep.subr.bf16.mxu0 %v3004_v53  ;;  %2746 = vmatprep.subr.bf16.mxu1 %v3273_v24 }
 0x19f   : > { %1072 = vmatpush1.bf16.msra.mxu0 %v3006_v54  ;;  %2747 = vmatpush3.bf16.msra.mxu1 %v3007_v55 }
 0x1a0   : > { %2752 = vmatprep.subr.bf16.mxu0 %v3273_v24  ;;  %2758 = vmatprep.subr.bf16.mxu1 %v3273_v24 }
 0x213   : > { %v878_v27 = vpop.xlane.xlu0 %877 }
 0x214   : > { %v882_v28 = vmul.f32 0.0078125, %v878_v27 }
 0x216   : > { %v3649_v29 = vsub.f32 %v824_v20, %v882_v28  ;;  %v921_v20 = vrot.slane %v859_v14, %v3697_v5 }
 0x217   : > { %v880_v30 = vpop.xlane.xlu0 %879 }
 0x218   : > { %v883_v31 = vmul.f32 0.0078125, %v880_v30  ;;  %v886_v32 = vmul.f32 %v3649_v29, %v3649_v29 }
 0x21a   : > { %v3653_v33 = vsub.f32 %v825_v21, %v883_v31  ;;  %888 = vadd.xlane.f32.xlu1 %v886_v32 }
 0x21c   : > { %v887_v34 = vmul.f32 %v3653_v33, %v3653_v33 }
 0x21e   : > { %890 = vadd.xlane.f32.xlu1 %v887_v34 }
 0x2a7   : > { %v889_v56 = vpop.xlane.xlu1 %888 }
 0x2a8   : > { %v892_v57 = vmul.f32 0.0078125, %v889_v56 }
 0x2aa   : > { %v894_v58 = vadd.f32 1e-05, %v892_v57 }
 0x2ab   : > { %v891_v59 = vpop.xlane.xlu1 %890 }
 0x2ac   : > { %3056 = vrsqrt.f32 %v894_v58  ;;  %v893_v61 = vmul.f32 0.0078125, %v891_v59 }
 0x2ae   : > { %v895_v62 = vadd.f32 1e-05, %v893_v61 }
 0x2b0   : > { %3058 = vrsqrt.f32 %v895_v62 }
 0x2b6   : > { %v3057_v2 = vpop.eup %3056 }
 0x2b7   : > { %v898_v3 = vmul.f32 %v3057_v2, %v3649_v29 }
 0x2b9   : > { %v904_v8 = vmul.f32 %v903_v4, %v898_v3 }
 0x2ba   : > { %v3059_v6 = vpop.eup %3058 }
 0x2bb   : > { %v899_v7 = vmul.f32 %v3059_v6, %v3653_v33  ;;  %v910_v11 = vadd.f32 %v909_v9, %v904_v8 }
 0x2bd   : > { %v905_v10 = vmul.f32 %v903_v4, %v899_v7 }
 0x2bf   : > { %v911_v12 = vadd.f32 %v909_v9, %v905_v10 }
 0x2c1   : > { %v912_v13 = vpack.c.bf16 %v911_v12, %v910_v11 }
 0x2c3   : > { %1090 = vmatmul.mubr.bf16.vlgmr.msra.gmra.mrb[0].mxu0 %v912_v13  ;;  %2749 = vmatmul.mubr.bf16.vlgmr.msra.gmra.mrb[0].mxu1 %v912_v13 }
 0x2c4   : > { %2754 = vmatprep.mubr.msk.bf16.mxu0 %vm3275_vm3, %v3273_v24  ;;  %2760 = vmatprep.mubr.msk.bf16.mxu1 %vm3275_vm3, %v3273_v24 }
 0x396   : > { %v1091_v17 = vpop.f32.mrb[0].mxu0  ;;  %v1134_v19 = vpop.f32.mrb[0].mxu1 }
 0x397   : > { %v1093_v21 = vpop.f32.mrb[1].mxu0  ;;  %v2750_v22 = vpop.f32.mrb[1].mxu1  ;;  %v1092_v26 = vadd.f32 %v1091_v17, %v917_v16  ;;  %v1135_v31 = vadd.f32 %v1134_v19, %v925_v18 }
 0x398   : > { %v1095_v23 = vpop.f32.mrb[2].mxu0  ;;  %v1137_v25 = vpop.f32.mrb[2].mxu1  ;;  %v1094_v32 = vadd.f32 %v1093_v21, %v921_v20 }
 0x399   : > { %v1096_v27 = vadd.f32 %v1095_v23, %v917_v16  ;;  %v1138_v28 = vadd.f32 %v1137_v25, %v925_v18  ;;  %v1097_v29 = vpop.f32.mrb[3].mxu0  ;;  %v2751_v30 = vpop.f32.mrb[3].mxu1 }
 0x39a   : > { %v1098_v33 = vadd.f32 %v1097_v29, %v921_v20 }
 0x39b   : > { %v1201_v34 = vpack.c.bf16 %v1096_v27, %v1092_v26  ;;  %v2936_v35 = vpack.i.bf16 %v1096_v27, %v1092_v26  ;;  %v1499_v38 = vpack.c.bf16 %v1138_v28, %v1135_v31  ;;  %v3709_v39 = vpack.i.bf16 %v1138_v28, %v1135_v31 }
 0x39c   : > { %v2931_v36 = vpack.i.bf16 %v1098_v33, %v1094_v32  ;;  %v1205_v37 = vpack.c.bf16 %v1098_v33, %v1094_v32 }
 0x39d   : > { %2937 = vrot.lane.b32.xlu1 %v2936_v35, %s3276_s24 }
 0x39e   : > { %2932 = vrot.lane.b32.xlu0 %v2931_v36, %s3276_s24  ;;  %v1214_v40 = vsel %vm1209_vm4, %v1205_v37, 0 }
 0x39f   : > { %2753 = vmatpush3.bf16.xpose.msra.mxu0 %v1214_v40 }
 0x3a0   : > { %2764 = vmatprep.subr.bf16.mxu0 %v3273_v24 }
 0x3a1   : > { %2942 = vrot.lane.b32.xlu1 %v2931_v36, %s3277_s22 }
 0x3a2   : > { %2952 = vrot.lane.b32.xlu0 %v2936_v35, %s3277_s22 }
 0x3a5   : > { %2947 = vrot.lane.b32.xlu1 %v2931_v36, %s3278_s0 }
 0x3a6   : > { %2755 = vmatmul.mubr.msk.bf16.vlgmr.msra.gmra.mrb[4].mxu0 %vm1209_vm4, %v1201_v34 }
 0x3a7   : > { %2766 = vmatprep.mubr.msk.bf16.mxu0 %vm3275_vm3, %v3273_v24 }
 0x3a9   : > { %2957 = vrot.lane.b32.xlu1 %v2936_v35, %s3278_s0 }
 0x40f   : > { %v2938_v41 = vpop.permute.xlu1 %2937 }
 0x410   : > { %v2933_v42 = vpop.permute.xlu0 %2932  ;;  %v2940_v52 = vunpack.i.h.bf16 %v2938_v41  ;;  %v2939_v53 = vunpack.i.l.bf16 %v2938_v41 }
 0x411   : > { %v2935_v43 = vunpack.i.h.bf16 %v2933_v42  ;;  %v2934_v44 = vunpack.i.l.bf16 %v2933_v42 }
 0x412   : > { %v1202_v62 = vpack.c.bf16 %v2940_v52, %v2939_v53 }
 0x413   : > { %v1206_v45 = vpack.c.bf16 %v2935_v43, %v2934_v44  ;;  %v2943_v46 = vpop.permute.xlu1 %2942 }
 0x414   : > { %v2945_v47 = vunpack.i.h.bf16 %v2943_v46  ;;  %v2944_v48 = vunpack.i.l.bf16 %v2943_v46  ;;  %v2953_v54 = vpop.permute.xlu0 %2952 }
 0x415   : > { %v1261_v49 = vsel %vm1209_vm4, %v1206_v45, 0  ;;  %v2955_v59 = vunpack.i.h.bf16 %v2953_v54  ;;  %v2954_v60 = vunpack.i.l.bf16 %v2953_v54 }
 0x416   : > { %v1207_v51 = vpack.c.bf16 %v2945_v47, %v2944_v48  ;;  %2759 = vmatpush3.bf16.xpose.msra.mxu1 %v1261_v49 }
 0x417   : > { %v2948_v55 = vpop.permute.xlu1 %2947  ;;  %2770 = vmatprep.subr.bf16.mxu1 %v3273_v24  ;;  %v1203_v2 = vpack.c.bf16 %v2955_v59, %v2954_v60 }
 0x418   : > { %v2950_v56 = vunpack.i.h.bf16 %v2948_v55  ;;  %v2949_v57 = vunpack.i.l.bf16 %v2948_v55  ;;  %v1308_v58 = vsel %vm1209_vm4, %v1207_v51, 0 }
 0x419   : > { %2765 = vmatpush3.bf16.xpose.msra.mxu0 %v1308_v58 }
 0x41a   : > { %v1208_v61 = vpack.c.bf16 %v2950_v56, %v2949_v57  ;;  %2776 = vmatprep.subr.bf16.mxu0 %v3273_v24 }
 0x41b   : > { %v2958_v63 = vpop.permute.xlu1 %2957 }
 0x41c   : > { %v1355_v1 = vsel %vm1209_vm4, %v1208_v61, 0  ;;  %v2960_v3 = vunpack.i.h.bf16 %v2958_v63  ;;  %v2959_v4 = vunpack.i.l.bf16 %v2958_v63 }
 0x41d   : > { %2761 = vmatmul.mubr.msk.bf16.vlgmr.msra.gmra.mrb[4].mxu1 %vm1209_vm4, %v1202_v62 }
 0x41e   : > { %2771 = vmatpush3.bf16.xpose.msra.mxu1 %v1355_v1  ;;  %2772 = vmatprep.mubr.msk.bf16.mxu1 %vm3275_vm3, %v3273_v24  ;;  %v1204_v6 = vpack.c.bf16 %v2960_v3, %v2959_v4 }
 0x41f   : > { %2782 = vmatprep.subr.bf16.mxu1 %v3273_v24 }
 0x420   : > { %2767 = vmatmul.mubr.msk.bf16.vlgmr.msra.gmra.mrb[8].mxu0 %vm1209_vm4, %v1203_v2 }
 0x421   : > { %2777 = vmatpush3.bf16.msra.mxu0 %v1499_v38  ;;  %2778 = vmatprep.mubr.msk.bf16.mxu0 %vm3275_vm3, %v3273_v24 }
 0x422   : > { %2788 = vmatprep.subr.bf16.mxu0 %v3273_v24 }
 0x425   : > { %2773 = vmatmul.mubr.msk.bf16.vlgmr.msra.gmra.mrb[8].mxu1 %vm1209_vm4, %v1204_v6 }
 0x426   : > { %2784 = vmatprep.mubr.msk.bf16.mxu1 %vm3275_vm3, %v3273_v24 }
 0x479   : > { %v1250_v7 = vpop.f32.mrb[4].mxu0 }
 0x47a   : > { %v1398_v8 = vmul.f32 0.17677669, %v1250_v7  ;;  %v2756_v9 = vpop.f32.mrb[5].mxu0 }
 0x47b   : > { %v1253_v10 = vpop.f32.mrb[6].mxu0 }
 0x47c   : > { %v1399_v11 = vmul.f32 0.17677669, %v1253_v10  ;;  %v2757_v12 = vpop.f32.mrb[7].mxu0  ;;  %v1407_v13 = vsel %vm1406_vm5, %v1398_v8, -inf }
 0x47d   : > { %1408 = vmax.xlane.f32.xlu0 %v1407_v13 }
 0x47e   : > { %v1410_v14 = vsel %vm1406_vm5, %v1399_v11, -inf }
 0x47f   : > { %1411 = vmax.xlane.f32.xlu1 %v1410_v14 }
 0x4f0   : > { %v1297_v15 = vpop.f32.mrb[4].mxu1 }
 0x4f1   : > { %v1400_v16 = vmul.f32 0.17677669, %v1297_v15  ;;  %v2762_v17 = vpop.f32.mrb[5].mxu1 }
 0x4f2   : > { %v1300_v18 = vpop.f32.mrb[6].mxu1 }
 0x4f3   : > { %v1401_v19 = vmul.f32 0.17677669, %v1300_v18  ;;  %v2763_v20 = vpop.f32.mrb[7].mxu1  ;;  %v1344_v21 = vpop.f32.mrb[8].mxu0  ;;  %v1413_v22 = vsel %vm1406_vm5, %v1400_v16, -inf }
 0x4f4   : > { %1414 = vmax.xlane.f32.xlu0 %v1413_v22  ;;  %v2768_v23 = vpop.f32.mrb[9].mxu0  ;;  %v1402_v28 = vmul.f32 0.17677669, %v1344_v21 }
 0x4f5   : > { %v1347_v25 = vpop.f32.mrb[10].mxu0  ;;  %v1416_v29 = vsel %vm1406_vm5, %v1401_v19, -inf }
 0x4f6   : > { %v1403_v26 = vmul.f32 0.17677669, %v1347_v25  ;;  %v2769_v27 = vpop.f32.mrb[11].mxu0  ;;  %v1419_v37 = vsel %vm1406_vm5, %v1402_v28, -inf }
 0x4f8   : > { %v1391_v30 = vpop.f32.mrb[8].mxu1  ;;  %1417 = vmax.xlane.f32.xlu0 %v1416_v29  ;;  %v1422_v31 = vsel %vm1406_vm5, %v1403_v26, -inf }
 0x4f9   : > { %v2774_v32 = vpop.f32.mrb[9].mxu1  ;;  %1423 = vmax.xlane.f32.xlu1 %v1422_v31  ;;  %v1404_v34 = vmul.f32 0.17677669, %v1391_v30 }
 0x4fa   : > { %v1394_v33 = vpop.f32.mrb[10].mxu1 }
 0x4fb   : > { %v3742_v35 = vmul.f32 0.17677669, %v1394_v33  ;;  %v2775_v36 = vpop.f32.mrb[11].mxu1  ;;  %v1425_v40 = vsel %vm1406_vm5, %v1404_v34, -inf }
 0x4fc   : > { %1420 = vmax.xlane.f32.xlu0 %v1419_v37 }
 0x4fd   : > { %v1428_v38 = vsel %vm1406_vm5, %v3742_v35, -inf }
 0x4fe   : > { %1429 = vmax.xlane.f32.xlu1 %v1428_v38 }
 0x500   : > { %1426 = vmax.xlane.f32.xlu0 %v1425_v40 }
 0x50a   : > { %v1409_v41 = vpop.xlane.xlu0 %1408 }
 0x50b   : > { %v1431_v42 = vsub.f32 %v1398_v8, %v1409_v41 }
 0x50c   : > { %v1412_v43 = vpop.xlane.xlu1 %1411 }
 0x50d   : > { %v1439_v44 = vmul.f32 1.442695, %v1431_v42  ;;  %v1432_v45 = vsub.f32 %v1399_v11, %v1412_v43 }
 0x50f   : > { %3060 = vpow2.f32 %v1439_v44  ;;  %v1441_v46 = vmul.f32 1.442695, %v1432_v45 }
 0x511   : > { %3062 = vpow2.f32 %v1441_v46 }
 0x519   : > { %v3061_v47 = vpop.eup %3060 }
 0x51a   : > { %v1455_v48 = vsel %vm1406_vm5, %v3061_v47, 0.0 }
 0x51b   : > { %v3063_v49 = vpop.eup %3062  ;;  %1456 = vadd.xlane.f32.xlu0 %v1455_v48 }
 0x51c   : > { %v1458_v51 = vsel %vm1406_vm5, %v3063_v49, 0.0 }
 0x51d   : > { %1459 = vadd.xlane.f32.xlu1 %v1458_v51  ;;  %v3008_v51 = vld [vmem:[%s3565_s27] sm:$0xff]  }
 0x581   : > { %v1415_v52 = vpop.xlane.xlu0 %1414 }
 0x582   : > { %v1433_v53 = vsub.f32 %v1400_v16, %v1415_v52 }
 0x584   : > { %v1443_v54 = vmul.f32 1.442695, %v1433_v53  ;;  %v3009_v53 = vld [vmem:[%s3565_s27 + $0x8] sm:$0xff]  }
 0x585   : > { %v1418_v55 = vpop.xlane.xlu0 %1417 }
 0x586   : > { %3064 = vpow2.f32 %v1443_v54  ;;  %v1434_v56 = vsub.f32 %v1401_v19, %v1418_v55  ;;  %v1424_v57 = vpop.xlane.xlu1 %1423 }
 0x587   : > { %v1436_v58 = vsub.f32 %v1403_v26, %v1424_v57 }
 0x588   : > { %v1445_v59 = vmul.f32 1.442695, %v1434_v56 }
 0x589   : > { %v1449_v60 = vmul.f32 1.442695, %v1436_v58  ;;  %v1421_v61 = vpop.xlane.xlu0 %1420 }
 0x58a   : > { %3066 = vpow2.f32 %v1445_v59  ;;  %v1435_v62 = vsub.f32 %v1402_v28, %v1421_v61 }
 0x58b   : > { %3068 = vpow2.f32 %v1449_v60  ;;  %v1430_v15 = vpop.xlane.xlu1 %1429 }
 0x58c   : > { %v1447_v63 = vmul.f32 1.442695, %v1435_v62  ;;  %v1438_v23 = vsub.f32 %v3742_v35, %v1430_v15 }
 0x58d   : > { %v1427_v1 = vpop.xlane.xlu0 %1426 }
 0x58e   : > { %3070 = vpow2.f32 %v1447_v63  ;;  %v1437_v2 = vsub.f32 %v1404_v34, %v1427_v1  ;;  %v1453_v25 = vmul.f32 1.442695, %v1438_v23  ;;  %v3010_v63 = vld [vmem:[%s3565_s27 + $0x10] sm:$0xff]  }
 0x590   : > { %v3065_v3 = vpop.eup %3064  ;;  %v1451_v4 = vmul.f32 1.442695, %v1437_v2  ;;  %v3012_v2 = vld [vmem:[%s3565_s27 + $0x18] sm:$0xff]  }
 0x591   : > { %v1461_v6 = vsel %vm1406_vm5, %v3065_v3, 0.0 }
 0x592   : > { %3072 = vpow2.f32 %v1451_v4  ;;  %1462 = vadd.xlane.f32.xlu0 %v1461_v6 }
 0x594   : > { %v3067_v7 = vpop.eup %3066 }
 0x595   : > { %v1464_v8 = vsel %vm1406_vm5, %v3067_v7, 0.0  ;;  %v3069_v9 = vpop.eup %3068 }
 0x596   : > { %1465 = vadd.xlane.f32.xlu1 %v1464_v8  ;;  %v1470_v12 = vsel %vm1406_vm5, %v3069_v9, 0.0 }
 0x598   : > { %v3071_v10 = vpop.eup %3070 }
 0x599   : > { %v1467_v11 = vsel %vm1406_vm5, %v3071_v10, 0.0 }
 0x59a   : > { %1468 = vadd.xlane.f32.xlu0 %v1467_v11  ;;  %1471 = vadd.xlane.f32.xlu1 %v1470_v12 }
 0x59c   : > { %v3754_v13 = vpop.eup %3072 }
 0x59d   : > { %v1473_v14 = vsel %vm1406_vm5, %v3754_v13, 0.0 }
 0x59e   : > { %1474 = vadd.xlane.f32.xlu0 %v1473_v14 }
 0x5a8   : > { %v1457_v16 = vpop.xlane.xlu0 %1456 }
 0x5a9   : > { %3074 = vrcp.f32 %v1457_v16  ;;  %v3014_v16 = vld [vmem:[%s3565_s27 + $0x30] sm:$0xff]  }
 0x5aa   : > { %v1460_v17 = vpop.xlane.xlu1 %1459 }
 0x5ab   : > { %3076 = vrcp.f32 %v1460_v17  ;;  %2967 = vrot.lane.b32.xlu1 %v3709_v39, %s3277_s22 }
 0x5ac   : > { %3078 = vpow2.f32 %v1453_v25 }
 0x5b3   : > { %v3075_v18 = vpop.eup %3074 }
 0x5b4   : > { %2962 = vrot.lane.b32.xlu0 %v3709_v39, %s3276_s24  ;;  %v1487_v20 = vmul.f32 %v3075_v18, %v3061_v47 }
 0x5b5   : > { %v3077_v19 = vpop.eup %3076 }
 0x5b6   : > { %v1488_v21 = vmul.f32 %v3077_v19, %v3063_v49  ;;  %v3079_v26 = vpop.eup %3078 }
 0x5b7   : > { %v1476_v27 = vsel %vm1406_vm5, %v3079_v26, 0.0 }
 0x5b8   : > { %v1495_v22 = vpack.c.bf16 %v1488_v21, %v1487_v20 }
 0x5ba   : > { %2779 = vmatmul.mubr.msk.bf16.vlgmr.msra.gmra.mrb[12].mxu0 %vm1406_vm5, %v1495_v22  ;;  %v3015_v22 = vld [vmem:[%s3565_s27 + $0x38] sm:$0xff]  }
 0x5bb   : > { %2790 = vmatprep.mubr.msk.bf16.mxu0 %vm3275_vm3, %v3273_v24 }
 0x5cf   : > { %1477 = vadd.xlane.f32.xlu1 %v1476_v27 }
 0x5e0   : > { %2972 = vrot.lane.b32.xlu1 %v3709_v39, %s3278_s0 }
 0x61f   : > { %v1463_v28 = vpop.xlane.xlu0 %1462 }
 0x623   : > { %v1466_v29 = vpop.xlane.xlu1 %1465 }
 0x624   : > { %3080 = vrcp.f32 %v1466_v29 }
 0x625   : > { %3082 = vrcp.f32 %v1463_v28 }
 0x627   : > { %v1469_v30 = vpop.xlane.xlu0 %1468  ;;  %v1472_v31 = vpop.xlane.xlu1 %1471 }
 0x628   : > { %3084 = vrcp.f32 %v1469_v30 }
 0x629   : > { %3086 = vrcp.f32 %v1472_v31 }
 0x62b   : > { %v1475_v32 = vpop.xlane.xlu0 %1474  ;;  %v2968_v33 = vpop.permute.xlu1 %2967 }
 0x62c   : > { %v2970_v34 = vunpack.i.h.bf16 %v2968_v33  ;;  %v2969_v35 = vunpack.i.l.bf16 %v2968_v33  ;;  %3088 = vrcp.f32 %v1475_v32 }
 0x62e   : > { %v3081_v36 = vpop.eup %3080  ;;  %v1501_v37 = vpack.c.bf16 %v2970_v34, %v2969_v35 }
 0x62f   : > { %v2963_v38 = vpop.permute.xlu0 %2962  ;;  %v3083_v40 = vpop.eup %3082  ;;  %v1490_v39 = vmul.f32 %v3081_v36, %v3067_v7  ;;  %v3011_v7 = vld [vmem:[%s3565_s27 + $0x20] sm:$0xff]  }
 0x630   : > { %v2965_v41 = vunpack.i.h.bf16 %v2963_v38  ;;  %v2964_v42 = vunpack.i.l.bf16 %v2963_v38  ;;  %2789 = vmatpush3.bf16.msra.mxu0 %v1501_v37  ;;  %v1489_v46 = vmul.f32 %v3083_v40, %v3065_v3 }
 0x631   : > { %2800 = vmatprep.subr.bf16.mxu0 %v3273_v24 }
 0x632   : > { %v3085_v43 = vpop.eup %3084  ;;  %v1500_v44 = vpack.c.bf16 %v2965_v41, %v2964_v42  ;;  %v1496_v49 = vpack.c.bf16 %v1490_v39, %v1489_v46 }
 0x633   : > { %v3087_v45 = vpop.eup %3086  ;;  %v1491_v47 = vmul.f32 %v3085_v43, %v3071_v10  ;;  %v3013_v10 = vld [vmem:[%s3565_s27 + $0x28] sm:$0xff]   ;;  %v2620_v43 = vld [vmem:[%s3987_s19] ss:$0 sm:$0xff] }
 0x634   : > { %v1492_v48 = vmul.f32 %v3087_v45, %v3069_v9  ;;  %2783 = vmatpush3.bf16.msra.mxu1 %v1500_v44 }
 0x635   : > { %2794 = vmatprep.subr.bf16.mxu1 %v3273_v24 }
 0x636   : > { %v1497_v52 = vpack.c.bf16 %v1492_v48, %v1491_v47  ;;  %v3089_v59 = vpop.eup %3088 }
 0x637   : > { %2785 = vmatmul.mubr.msk.bf16.vlgmr.msra.gmra.mrb[12].mxu1 %vm1406_vm5, %v1496_v49  ;;  %v1493_v61 = vmul.f32 %v3089_v59, %v3754_v13  ;;  %v3021_v59 = vld [vmem:[%s3606_s5 + $0x14] ss:$8 sps:$4 sm:$0xff]  }
 0x638   : > { %2791 = vmatmul.mubr.msk.bf16.vlgmr.msra.gmra.mrb[16].mxu0 %vm1406_vm5, %v1497_v52  ;;  %2796 = vmatprep.mubr.msk.bf16.mxu1 %vm3275_vm3, %v3273_v24 }
 0x639   : > { %2801 = vmatpush3.bf16.msra.mxu0 %v3008_v51  ;;  %2804 = vmatprep.mubr.msk.bf16.mxu0 %vm3275_vm3, %v3273_v24 }
 0x63a   : > { %2802 = vmatprep.subr.bf16.mxu0 %v3273_v24 }
 0x63d   : > { %2803 = vmatpush3.bf16.msra.mxu0 %v3009_v53  ;;  %v3096_v53 = vld [vmem:[%s3619_s15] sm:$0xff] }
 0x63e   : > { %2816 = vmatprep.subr.bf16.mxu0 %v3273_v24 }
 0x65c   : > { %v1478_v54 = vpop.xlane.xlu1 %1477 }
 0x65d   : > { %3090 = vrcp.f32 %v1478_v54 }
 0x660   : > { %v2973_v55 = vpop.permute.xlu1 %2972 }
 0x661   : > { %v2975_v56 = vunpack.i.h.bf16 %v2973_v55  ;;  %v2974_v57 = vunpack.i.l.bf16 %v2973_v55  ;;  %v3097_v55 = vld [vmem:[%s3619_s15 + $0x8] sm:$0xff] }
 0x663   : > { %v1502_v58 = vpack.c.bf16 %v2975_v56, %v2974_v57  ;;  %v3016_v57 = vld [vmem:[%s3606_s5] ss:$8 sps:$4 sm:$0xff]  }
 0x665   : > { %2795 = vmatpush3.bf16.msra.mxu1 %v1502_v58  ;;  %v3018_v58 = vld [vmem:[%s3606_s5 + $0x4] ss:$8 sps:$4 sm:$0xff]  }
 0x666   : > { %2808 = vmatprep.subr.bf16.mxu1 %v3273_v24 }
 0x667   : > { %v3091_v60 = vpop.eup %3090 }
 0x668   : > { %v1494_v62 = vmul.f32 %v3091_v60, %v3079_v26  ;;  %v3019_v60 = vld [vmem:[%s3606_s5 + $0x10] ss:$8 sps:$4 sm:$0xff]  }
 0x66a   : > { %v1498_v1 = vpack.c.bf16 %v1494_v62, %v1493_v61 }
 0x66c   : > { %2797 = vmatmul.mubr.msk.bf16.vlgmr.msra.gmra.mrb[16].mxu1 %vm1406_vm5, %v1498_v1 }
 0x66d   : > { %2809 = vmatpush3.bf16.msra.mxu1 %v3010_v63  ;;  %2812 = vmatprep.mubr.msk.bf16.mxu1 %vm3275_vm3, %v3273_v24 }
 0x66e   : > { %2810 = vmatprep.subr.bf16.mxu1 %v3273_v24 }
 0x671   : > { %2811 = vmatpush3.bf16.msra.mxu1 %v3012_v2 }
 0x672   : > { %2824 = vmatprep.subr.bf16.mxu1 %v3273_v24 }
 0x68d   : > { %v1540_v3 = vpop.f32.mrb[12].mxu0 }
 0x68e   : > { %v2780_v4 = vpop.f32.mrb[13].mxu0 }
 0x68f   : > { %v1543_v6 = vpop.f32.mrb[14].mxu0 }
 0x690   : > { %v1679_v8 = vpack.c.bf16 %v1543_v6, %v1540_v3  ;;  %v2781_v9 = vpop.f32.mrb[15].mxu0 }
 0x691   : > { %v3027_v9 = vld [vmem:[%s3606_s5 + $0x34] ss:$8 sps:$4 sm:$0xff]  }
 0x692   : > { %2805 = vmatmul.mubr.msk.bf16.vlgmr.msra.gmra.mrb[20].mxu0 %vm1209_vm4, %v1679_v8  ;;  %v3022_v8 = vld [vmem:[%s3606_s5 + $0x20] ss:$8 sps:$4 sm:$0xff]  }
 0x693   : > { %2817 = vmatpush3.bf16.msra.mxu0 %v3011_v7  ;;  %2820 = vmatprep.mubr.msk.bf16.mxu0 %vm3275_vm3, %v3273_v24  ;;  %v3024_v7 = vld [vmem:[%s3606_s5 + $0x24] ss:$8 sps:$4 sm:$0xff]  }
 0x694   : > { %2818 = vmatprep.subr.bf16.mxu0 %v3273_v24 }
 0x697   : > { %2819 = vmatpush3.bf16.msra.mxu0 %v3013_v10  ;;  %v3025_v10 = vld [vmem:[%s3606_s5 + $0x30] ss:$8 sps:$4 sm:$0xff]  }
 0x698   : > { %2100 = vmatprep.subr.bf16.mxu0 %v3018_v58 }
 0x70a   : > { %v1584_v11 = vpop.f32.mrb[12].mxu1 }
 0x70b   : > { %v1628_v12 = vpop.f32.mrb[16].mxu0  ;;  %v2786_v13 = vpop.f32.mrb[13].mxu1 }
 0x70c   : > { %v2792_v14 = vpop.f32.mrb[17].mxu0  ;;  %v1587_v15 = vpop.f32.mrb[14].mxu1  ;;  %v3033_v13 = vld [vmem:[%s3606_s5 + $0x54] ss:$8 sps:$4 sm:$0xff]  }
 0x70d   : > { %v1680_v17 = vpack.c.bf16 %v1587_v15, %v1584_v11  ;;  %v1631_v18 = vpop.f32.mrb[18].mxu0  ;;  %v2787_v19 = vpop.f32.mrb[15].mxu1  ;;  %v3030_v11 = vld [vmem:[%s3606_s5 + $0x44] ss:$8 sps:$4 sm:$0xff]   ;;  %v3031_v14 = vld [vmem:[%s3606_s5 + $0x50] ss:$8 sps:$4 sm:$0xff]  }
 0x70e   : > { %v1681_v20 = vpack.c.bf16 %v1631_v18, %v1628_v12  ;;  %v2793_v21 = vpop.f32.mrb[19].mxu0  ;;  %v3028_v12 = vld [vmem:[%s3606_s5 + $0x40] ss:$8 sps:$4 sm:$0xff]   ;;  %v3037_v18 = vld [vmem:[%s3606_s5 + $0x70] ss:$8 sps:$4 sm:$0xff]  }
 0x70f   : > { %2813 = vmatmul.mubr.msk.bf16.vlgmr.msra.gmra.mrb[20].mxu1 %vm1209_vm4, %v1680_v17  ;;  %v3034_v15 = vld [vmem:[%s3606_s5 + $0x60] ss:$8 sps:$4 sm:$0xff]   ;;  %v3039_v17 = vld [vmem:[%s3606_s5 + $0x74] ss:$8 sps:$4 sm:$0xff]  }
 0x710   : > { %2821 = vmatmul.mubr.msk.bf16.vlgmr.msra.gmra.mrb[24].mxu0 %vm1209_vm4, %v1681_v20  ;;  %2825 = vmatpush3.bf16.msra.mxu1 %v3014_v16  ;;  %v3036_v16 = vld [vmem:[%s3606_s5 + $0x64] ss:$8 sps:$4 sm:$0xff]  }
 0x711   : > { %2826 = vmatprep.subr.bf16.mxu1 %v3273_v24  ;;  %2828 = vmatprep.mubr.msk.bf16.mxu1 %vm3275_vm3, %v3273_v24  ;;  %v3040_v19 = vld [vmem:[%s3621_s1 + $0x40] sm:$0xff]   ;;  %v3042_v21 = vld [vmem:[%s3621_s1 + $0x48] sm:$0xff]  }
 0x712   : > { %2132 = vmatprep.mubr.bf16.mxu0 %v3274_v50  ;;  %2101 = vmatpush1.bf16.msra.mxu0 %v3016_v57  ;;  %v3041_v20 = vld [vmem:[%s3621_s1] sm:$0xff]  }
 0x713   : > { %2102 = vmatprep.subr.bf16.mxu0 %v3021_v59 }
 0x714   : > { %2827 = vmatpush3.bf16.msra.mxu1 %v3015_v22  ;;  %v3043_v22 = vld [vmem:[%s3621_s1 + $0x8] sm:$0xff]  }
 0x715   : > { %2702 = vmatprep.subr.bf16.mxu1 %v3040_v19 }
 0x716   : > { %2103 = vmatpush1.bf16.msra.mxu0 %v3019_v60 }
 0x717   : > { %2104 = vmatprep.subr.bf16.mxu0 %v3024_v7 }
 0x71a   : > { %2105 = vmatpush1.bf16.msra.mxu0 %v3022_v8 }
 0x71b   : > { %2106 = vmatprep.subr.bf16.mxu0 %v3027_v9 }
 0x71e   : > { %2107 = vmatpush1.bf16.msra.mxu0 %v3025_v10 }
 0x71f   : > { %2108 = vmatprep.subr.bf16.mxu0 %v3030_v11  ;;  %v2637_v11 = vld [vmem:[%s734_s30] ss:$0 sm:$0xff]  ;;  %s3992_s30 = sld [smem:[#allocation27_spill]] (!%p2654_p11) }
 0x722   : > { %2109 = vmatpush1.bf16.msra.mxu0 %v3028_v12 }
 0x723   : > { %2110 = vmatprep.subr.bf16.mxu0 %v3033_v13 }
 0x726   : > { %2111 = vmatpush1.bf16.msra.mxu0 %v3031_v14 }
 0x727   : > { %2112 = vmatprep.subr.bf16.mxu0 %v3036_v16 }
 0x72a   : > { %2113 = vmatpush1.bf16.msra.mxu0 %v3034_v15 }
 0x72b   : > { %2114 = vmatprep.subr.bf16.mxu0 %v3039_v17 }
 0x72e   : > { %2115 = vmatpush1.bf16.msra.mxu0 %v3037_v18 }
 0x73f   : > { %v1672_v23 = vpop.f32.mrb[16].mxu1 }
 0x740   : > { %v2798_v25 = vpop.f32.mrb[17].mxu1 }
 0x741   : > { %v1675_v26 = vpop.f32.mrb[18].mxu1  ;;  %v3045_v25 = vld [vmem:[%s3621_s1 + $0x10] sm:$0xff]  }
 0x742   : > { %v1682_v27 = vpack.c.bf16 %v1675_v26, %v1672_v23  ;;  %v2799_v28 = vpop.f32.mrb[19].mxu1  ;;  %v3044_v23 = vld [vmem:[%s3621_s1 + $0x50] sm:$0xff]   ;;  %v3046_v26 = vld [vmem:[%s3621_s1 + $0x58] sm:$0xff]  }
 0x743   : > { %v3048_v28 = vld [vmem:[%s3621_s1 + $0x60] sm:$0xff]  }
 0x744   : > { %2829 = vmatmul.mubr.msk.bf16.vlgmr.msra.gmra.mrb[24].mxu1 %vm1209_vm4, %v1682_v27  ;;  %v3047_v27 = vld [vmem:[%s3621_s1 + $0x18] sm:$0xff]  }
 0x745   : > { %2703 = vmatpush3.bf16.msra.mxu1 %v3041_v20 }
 0x746   : > { %2704 = vmatprep.subr.bf16.mxu1 %v3042_v21 }
 0x749   : > { %2705 = vmatpush3.bf16.msra.mxu1 %v3043_v22 }
 0x74a   : > { %2706 = vmatprep.subr.bf16.mxu1 %v3044_v23 }
 0x74d   : > { %2707 = vmatpush3.bf16.msra.mxu1 %v3045_v25 }
 0x74e   : > { %2708 = vmatprep.subr.bf16.mxu1 %v3046_v26 }
 0x751   : > { %2709 = vmatpush3.bf16.msra.mxu1 %v3047_v27 }
 0x752   : > { %2710 = vmatprep.subr.bf16.mxu1 %v3048_v28 }
 0x765   : > { %v1732_v29 = vpop.f32.mrb[20].mxu0 }
 0x766   : > { %v2806_v30 = vpop.f32.mrb[21].mxu0 }
 0x767   : > { %v1735_v31 = vpop.f32.mrb[22].mxu0  ;;  %v3050_v30 = vld [vmem:[%s3621_s1 + $0x68] sm:$0xff]  }
 0x768   : > { %v2807_v32 = vpop.f32.mrb[23].mxu0 }
 0x7e2   : > { %v1788_v33 = vpop.f32.mrb[20].mxu1 }
 0x7e3   : > { %v1907_v34 = vadd.f32 %v1788_v33, %v1732_v29  ;;  %v1844_v35 = vpop.f32.mrb[24].mxu0  ;;  %v2814_v36 = vpop.f32.mrb[21].mxu1  ;;  %v3049_v29 = vld [vmem:[%s3621_s1 + $0x20] sm:$0xff]  }
 0x7e4   : > { %v2822_v24 = vpop.f32.mrb[25].mxu0  ;;  %v1791_v37 = vpop.f32.mrb[22].mxu1  ;;  %2711 = vmatpush3.bf16.msra.mxu1 %v3049_v29 }
 0x7e5   : > { %v1908_v50 = vadd.f32 %v1907_v34, %v1844_v35  ;;  %v1910_v38 = vadd.f32 %v1791_v37, %v1735_v31  ;;  %v1847_v40 = vpop.f32.mrb[26].mxu0  ;;  %v2815_v41 = vpop.f32.mrb[23].mxu1  ;;  %2712 = vmatprep.subr.bf16.mxu1 %v3050_v30  ;;  %v1923_v24 = vld [vmem:[%s3989_s25] sm:$0x3] }
 0x7e6   : > { %v2823_v42 = vpop.f32.mrb[27].mxu0 }
 0x7e7   : > { %v1911_v39 = vadd.f32 %v1910_v38, %v1847_v40  ;;  %v1999_v38 = vrot.slane %v1923_v24, %v3688_v0 }
 0x817   : > { %v1900_v44 = vpop.f32.mrb[24].mxu1 }
 0x818   : > { %v1909_v45 = vadd.f32 %v1908_v50, %v1900_v44  ;;  %v2830_v46 = vpop.f32.mrb[25].mxu1 }
 0x819   : > { %v1903_v47 = vpop.f32.mrb[26].mxu1 }
 0x81a   : > { %v1919_v48 = vadd.f32 %v2620_v43, %v1909_v45  ;;  %v1912_v49 = vadd.f32 %v1911_v39, %v1903_v47  ;;  %v2831_v51 = vpop.f32.mrb[27].mxu1  ;;  %v2005_v39 = vrot.slane %v1923_v24, %v3697_v5  ;;  %v3051_v47 = vld [vmem:[%s3621_s1 + $0x28] sm:$0xff]  }
 0x81b   : > { %2713 = vmatpush3.bf16.msra.mxu1 %v3051_v47  ;;  %v3054_v51 = vld [vmem:[%s3621_s1 + $0x78] sm:$0xff]  }
 0x81c   : > { %v1920_v52 = vadd.f32 %v2620_v43, %v1912_v49  ;;  %v3811_v54 = vadd.f32 %v3096_v53, %v1919_v48  ;;  %v3052_v48 = vld [vmem:[%s3621_s1 + $0x70] sm:$0xff]   ;;  %v1940_v53 = vld [vmem:[%s731_s20] sm:$0x3] }
 0x81d   : > { %v3053_v49 = vld [vmem:[%s3621_s1 + $0x30] sm:$0xff]   ;;  %2714 = vmatprep.subr.bf16.mxu1 %v3052_v48  ;;  %v2017_v57 = vrot.slane %v1940_v53, %v3697_v5 }
 0x81e   : > { %1974 = vadd.xlane.f32.xlu1 %v3811_v54  ;;  %v3815_v56 = vadd.f32 %v3097_v55, %v1920_v52  ;;  %v3055_v52 = vld [vmem:[%s3621_s1 + $0x38] sm:$0xff]   ;;  %v2013_v55 = vrot.slane %v1940_v53, %v3688_v0 }
 0x81f   : > { %2715 = vmatpush3.bf16.msra.mxu1 %v3053_v49 }
 0x820   : > { %1976 = vadd.xlane.f32.xlu0 %v3815_v56  ;;  %2716 = vmatprep.subr.bf16.mxu1 %v3054_v51 }
 0x823   : > { %2717 = vmatpush3.bf16.msra.mxu1 %v3055_v52 }
 0x8ab   : > { %v1975_v61 = vpop.xlane.xlu1 %1974 }
 0x8ac   : > { %v1978_v62 = vmul.f32 0.0078125, %v1975_v61 }
 0x8ad   : > { %v1977_v63 = vpop.xlane.xlu0 %1976 }
 0x8ae   : > { %v3823_v1 = vsub.f32 %v3811_v54, %v1978_v62  ;;  %v1979_v2 = vmul.f32 0.0078125, %v1977_v63 }
 0x8b0   : > { %v3826_v3 = vsub.f32 %v3815_v56, %v1979_v2  ;;  %v1982_v4 = vmul.f32 %v3823_v1, %v3823_v1 }
 0x8b2   : > { %1984 = vadd.xlane.f32.xlu0 %v1982_v4  ;;  %v1983_v6 = vmul.f32 %v3826_v3, %v3826_v3 }
 0x8b6   : > { %1986 = vadd.xlane.f32.xlu0 %v1983_v6 }
 0x93f   : > { %v1985_v31 = vpop.xlane.xlu0 %1984 }
 0x940   : > { %v1988_v32 = vmul.f32 0.0078125, %v1985_v31 }
 0x942   : > { %v1990_v33 = vadd.f32 1e-05, %v1988_v32 }
 0x943   : > { %v1987_v34 = vpop.xlane.xlu0 %1986 }
 0x944   : > { %3092 = vrsqrt.f32 %v1990_v33  ;;  %v1989_v35 = vmul.f32 0.0078125, %v1987_v34  ;;  %v2300_v34 = vld [vmem:[%s3992_s30] sm:$0x3] (!%p2654_p11) }
 0x946   : > { %v1991_v36 = vadd.f32 1e-05, %v1989_v35  ;;  %v2326_v35 = vrot.slane (!%p2654_p11), %v2300_v34, %v3688_v0 }
 0x948   : > { %3094 = vrsqrt.f32 %v1991_v36 }
 0x94e   : > { %v3093_v37 = vpop.eup %3092 }
 0x94f   : > { %v1994_v50 = vmul.f32 %v3093_v37, %v3823_v1  ;;  %v2332_v37 = vrot.slane (!%p2654_p11), %v2300_v34, %v3697_v5 }
 0x951   : > { %v2000_v42 = vmul.f32 %v1999_v38, %v1994_v50 }
 0x952   : > { %v3095_v40 = vpop.eup %3094 }
 0x953   : > { %v1995_v41 = vmul.f32 %v3095_v40, %v3826_v3  ;;  %v2006_v44 = vadd.f32 %v2005_v39, %v2000_v42 }
 0x955   : > { %v2001_v43 = vmul.f32 %v1999_v38, %v1995_v41 }
 0x957   : > { %v2007_v45 = vadd.f32 %v2005_v39, %v2001_v43 }
 0x959   : > { %v2008_v46 = vpack.c.bf16 %v2007_v45, %v2006_v44 }
 0x95b   : > { %2133 = vmatmul.mubr.bf16.vlgmr.msra.gmra.mrb[28].mxu0 %v2008_v46 }
 0xa2e   : > { %v2134_v58 = vpop.f32.mrb[28].mxu0 }
 0xa2f   : > { %v2135_v59 = vadd.f32 %v2134_v58, %v2013_v55  ;;  %v2136_v60 = vpop.f32.mrb[29].mxu0 }
 0xa30   : > { %v2137_v61 = vadd.f32 %v2136_v60, %v2017_v57  ;;  %v2138_v62 = vpop.f32.mrb[30].mxu0 }
 0xa31   : > { %v2139_v63 = vadd.f32 %v2138_v62, %v2013_v55  ;;  %v2140_v1 = vpop.f32.mrb[31].mxu0  ;;  %v2143_v3 = vmax.f32 %v2135_v59, 0.0 }
 0xa32   : > { %v2141_v2 = vadd.f32 %v2140_v1, %v2017_v57  ;;  %v2144_v6 = vmax.f32 %v2137_v61, 0.0 }
 0xa33   : > { %v2145_v4 = vmax.f32 %v2139_v63, 0.0 }
 0xa34   : > { %v2146_v7 = vmax.f32 %v2141_v2, 0.0 }
 0xa35   : > { %v2147_v8 = vpack.c.bf16 %v2145_v4, %v2143_v3 }
 0xa36   : > { %v2148_v9 = vpack.c.bf16 %v2146_v7, %v2144_v6 }
 0xa38   : > { %2283 = vmatprep.mubr.bf16.mxu1 %v2148_v9 }
 0xa39   : > { %2284 = vmatmul.mubr.bf16.vlgmr.msra.gmra.mrb[28].mxu1 %v2147_v8 }
 0xb0c   : > { %v2718_v10 = vpop.f32.mrb[28].mxu1 }
 0xb0d   : > { %v2719_v12 = vpop.f32.mrb[29].mxu1 }
 0xb0e   : > { %v2720_v13 = vadd.f32 %v2719_v12, %v2718_v10  ;;  %v2721_v14 = vpop.f32.mrb[30].mxu1 }
 0xb0f   : > { %v2722_v15 = vpop.f32.mrb[31].mxu1 }
 0xb10   : > { %v2286_v16 = vadd.f32 %v2720_v13, %v2637_v11  ;;  %v2723_v17 = vadd.f32 %v2722_v15, %v2721_v14  ;;  %2299 = sbr.rel (%p2654_p11) target bundleno = 3152 (0xc50), region = 100 }
 0xb12   : > { %v2292_v18 = vadd.f32 %v2286_v16, %v3811_v54  ;;  %v2289_v19 = vadd.f32 %v2723_v17, %v2637_v11 }
 0xb14   : > { %2294 = vst [vmem:[%s3619_s15] sm:$0xff] %v2292_v18  ;;  %v2293_v20 = vadd.f32 %v2289_v19, %v3815_v56  ;;  %2301 = vadd.xlane.f32.xlu0 (!%p2654_p11), %v2292_v18 }
 0xb16   : > { %2295 = vst [vmem:[%s3619_s15 + $0x8] sm:$0xff] %v2293_v20 }
 0xb18   : > { %2303 = vadd.xlane.f32.xlu0 %v2293_v20 }
 0xba1   : > { %v2302_v21 = vpop.xlane.xlu0 %2301 }
 0xba2   : > { %v2305_v22 = vmul.f32 0.0078125, %v2302_v21 }
 0xba4   : > { %v2307_v23 = vsub.f32 %v2292_v18, %v2305_v22 }
 0xba5   : > { %v2304_v25 = vpop.xlane.xlu0 %2303 }
 0xba6   : > { %v2306_v26 = vmul.f32 0.0078125, %v2304_v25  ;;  %v2309_v27 = vmul.f32 %v2307_v23, %v2307_v23 }
 0xba8   : > { %v2308_v28 = vsub.f32 %v2293_v20, %v2306_v26  ;;  %2311 = vadd.xlane.f32.xlu1 %v2309_v27 }
 0xbaa   : > { %v2310_v29 = vmul.f32 %v2308_v28, %v2308_v28 }
 0xbac   : > { %2313 = vadd.xlane.f32.xlu1 %v2310_v29 }
 0xc35   : > { %v2312_v54 = vpop.xlane.xlu1 %2311 }
 0xc36   : > { %v2315_v30 = vmul.f32 0.0078125, %v2312_v54 }
 0xc38   : > { %v2317_v56 = vadd.f32 1e-05, %v2315_v30 }
 0xc39   : > { %v2314_v31 = vpop.xlane.xlu1 %2313 }
 0xc3a   : > { %3098 = vrsqrt.f32 %v2317_v56  ;;  %v2316_v32 = vmul.f32 0.0078125, %v2314_v31 }
 0xc3c   : > { %v2318_v33 = vadd.f32 1e-05, %v2316_v32 }
 0xc3e   : > { %3100 = vrsqrt.f32 %v2318_v33 }
 0xc44   : > { %v3099_v36 = vpop.eup %3098 }
 0xc45   : > { %v2321_v24 = vmul.f32 %v3099_v36, %v2307_v23 }
 0xc47   : > { %v2327_v50 = vmul.f32 %v2326_v35, %v2321_v24 }
 0xc48   : > { %v3101_v38 = vpop.eup %3100 }
 0xc49   : > { %v2333_v40 = vadd.f32 %v2332_v37, %v2327_v50  ;;  %v2322_v41 = vmul.f32 %v3101_v38, %v2308_v28 }
 0xc4b   : > { %2335 = vst [vmem:[%s3619_s15] sm:$0xff] %v2333_v40  ;;  %v2328_v42 = vmul.f32 %v2326_v35, %v2322_v41 }
 0xc4d   : > { %v2334_v39 = vadd.f32 %v2332_v37, %v2328_v42 }
 0xc4f   : > { %2336 = vst [vmem:[%s3619_s15 + $0x8] sm:$0xff] %v2334_v39 }
 0xc50 PF: > { %s3993_s14 = sld [smem:[#allocation13_spill]]  ;;  %s3994_s18 = sld [smem:[#allocation9_spill]] }
 0xc51   : > { %s3995_s19 = sld [smem:[#allocation10_spill]]  ;;  %s3996_s20 = sld [smem:[#allocation16_spill]] }
 0xc52   : > { %s3997_s21 = sld [smem:[#allocation11_spill]]  ;;  %s3998_s22 = sld [smem:[#allocation12_spill]] }
 0xc53   : > { %s3999_s23 = sld [smem:[#allocation14_spill]]  ;;  %s4000_s24 = sld [smem:[#allocation15_spill]] }
 0xc56   : > { %s31_s25 = sadd.s32 1, %s3993_s14  }
 0xc57   : > { %p28_p4 = scmp.ge.s32.totalorder %s31_s25, 6  }
 0xc59   :  { %30 = sbr.rel (!%p28_p4) target bundleno = 20 (0x14), region = 176 }
 0xc60   :  { %2358 = vsyncpa [#allocation3], 1 }
 0xc61   :  { %2360 = vsyncpa [#allocation3 + $0x1], 1 }
 0xc62   :  { %2361 = vsyncpa [#allocation5], 1 }
 0xc63   :  { %2363 = vsyncpa [#allocation5 + $0x1], 1 }

// kernel: duplex_transformer_conv_forward.4
= control target key start
LH: loop header
LB: loop body
LE: loop exit
PB: predicated region body
PF: predicated region fallthrough
CT: control target
= control target key end

     0   :  { %s5919_s0 = inlined_call_operand.vmem [shape: f32[2,16,128], index: 0, kind: input, shape index: {}]   ;;  %s5920_s1 = inlined_call_operand.vmem [shape: f32[16,128], index: 1, kind: input, shape index: {}]   ;;  %s5921_s2 = inlined_call_operand.vmem [shape: f32[2,16,128], index: 2, kind: input, shape index: {}]   ;;  %s5922_s3 = inlined_call_operand.vmem [shape: f32[2,2,128], index: 3, kind: input, shape index: {}]   ;;  %s5923_s4 = inlined_call_operand.vmem [shape: bf16[2,128,384], index: 4, kind: input, shape index: {}]   ;;  %s5924_s5 = inlined_call_operand.vmem [shape: f32[2,1,384], index: 5, kind: input, shape index: {}]   ;;  %s5925_s6 = inlined_call_operand.vmem [shape: bf16[2,4,32,128], index: 6, kind: input, shape index: {}]   ;;  %s5926_s7 = inlined_call_operand.hbm [shape: f32[2,1,128], index: 7, kind: input, shape index: {}]   ;;  %s5927_s8 = inlined_call_operand.vmem [shape: f32[2,2,128], index: 8, kind: input, shape index: {}]   ;;  %s5928_s9 = inlined_call_operand.vmem [shape: bf16[2,128,128], index: 9, kind: input, shape index: {}]   ;;  %s5929_s10 = inlined_call_operand.hbm [shape: f32[2,1,128], index: 10, kind: input, shape index: {}]   ;;  %s5930_s11 = inlined_call_operand.vmem [shape: bf16[2,128,256], index: 11, kind: input, shape index: {}]   ;;  %s5931_s12 = inlined_call_operand.vmem [shape: f32[2,1,256], index: 12, kind: input, shape index: {}]   ;;  %s5932_s13 = inlined_call_operand.vmem [shape: bf16[2,4,32,128], index: 13, kind: input, shape index: {}]   ;;  %s5933_s14 = inlined_call_operand.hbm [shape: f32[2,1,128], index: 14, kind: input, shape index: {}]   ;;  %s5934_s15 = inlined_call_operand.vmem [shape: f32[2,2,128], index: 15, kind: input, shape index: {}]   ;;  %s5935_s16 = inlined_call_operand.vmem [shape: bf16[2,128,256], index: 16, kind: input, shape index: {}]   ;;  %s5936_s17 = inlined_call_operand.vmem [shape: f32[2,1,256], index: 17, kind: input, shape index: {}]   ;;  %s5937_s18 = inlined_call_operand.vmem [shape: bf16[2,256,128], index: 18, kind: input, shape index: {}]   ;;  %s5938_s19 = inlined_call_operand.hbm [shape: f32[2,1,128], index: 19, kind: input, shape index: {}]   ;;  %s5939_s20 = inlined_call_operand.vmem [shape: f32[2,16,128], index: 20, kind: output, shape index: {}]  }
   0x1   :  { %5953 = sst [smem:[#allocation22_spill]] %s5919_s0 }
   0x2   :  { %5954 = sst [smem:[#allocation23_spill]] %s5920_s1 }
   0x3   :  { %5955 = sst [smem:[#allocation24_spill]] %s5921_s2 }
   0x4   :  { %5956 = sst [smem:[#allocation25_spill]] %s5922_s3 }
   0x5   :  { %5957 = sst [smem:[#allocation26_spill]] %s5923_s4 }
   0x6   :  { %5958 = sst [smem:[#allocation27_spill]] %s5924_s5 }
   0x7   :  { %5959 = sst [smem:[#allocation28_spill]] %s5925_s6 }
   0x8   :  { %5960 = sst [smem:[#allocation29_spill]] %s5926_s7 }
   0x9   :  { %5961 = sst [smem:[#allocation30_spill]] %s5927_s8 }
   0xa   :  { %5962 = sst [smem:[#allocation31_spill]] %s5928_s9 }
   0xb   :  { %5963 = sst [smem:[#allocation32_spill]] %s5929_s10 }
   0xc   :  { %5964 = sst [smem:[#allocation33_spill]] %s5930_s11 }
   0xd   :  { %5965 = sst [smem:[#allocation34_spill]] %s5931_s12 }
   0xe   :  { %5966 = sst [smem:[#allocation35_spill]] %s5932_s13 }
   0xf   :  { %5967 = sst [smem:[#allocation36_spill]] %s5933_s14 }
  0x10   :  { %5968 = sst [smem:[#allocation37_spill]] %s5934_s15 }
  0x11   :  { %5969 = sst [smem:[#allocation38_spill]] %s5935_s16 }
  0x12   :  { %5970 = sst [smem:[#allocation39_spill]] %s5936_s17 }
  0x13   :  { %5971 = sst [smem:[#allocation40_spill]] %s5937_s18 }
  0x14   :  { %5972 = sst [smem:[#allocation41_spill]] %s5938_s19 }
  0x15   :  { %5973 = sst [smem:[#allocation42_spill]] %s5939_s20 }
  0x16   :  { %25 = vsyncpa [#allocation3], 0 }
  0x17   :  { %27 = vsyncpa [#allocation3 + $0x1], 0 }
  0x18   :  { %28 = vsyncpa [#allocation5], 0 }
  0x19   :  { %30 = vsyncpa [#allocation5 + $0x1], 0 }
  0x1a   :  { %31 = vsyncpa [#allocation8], 0 }
  0x1b   :  { %33 = vsyncpa [#allocation8 + $0x1], 0  ;;  %s5120_s1 = smov 0   ;;  %s5122_s22 = smov 0  }
  0x1c   :  { %s5124_s23 = smov 0   ;;  %s5126_s24 = smov 0  }
  0x1d   :  { %s5128_s2 = smov 0   ;;  %s5130_s25 = smov 0  }
  0x1e   :  { %s5132_s3 = smov 0   ;;  %s5134_s26 = smov 0  }
  0x1f LB: > { %5974 = sst [smem:[#allocation12_spill]] %s4979_s22  ;;  %s5943_s27 = sadd.s32 4294967295, %s5003_s26   ;;  %s5003_s26 = sphi %s5134_s26, %s39_s26   ;;  %s4999_s3 = sphi %s5132_s3, %s6041_s3   ;;  %s4995_s25 = sphi %s5130_s25, %s6040_s25   ;;  %s4991_s2 = sphi %s5128_s2, %s6039_s2   ;;  %s4987_s24 = sphi %s5126_s24, %s6038_s24   ;;  %s4983_s23 = sphi %s5124_s23, %s6037_s23   ;;  %s4979_s22 = sphi %s5122_s22, %s6036_s22   ;;  %s4975_s1 = sphi %s5120_s1, %s6035_s1  }
  0x20   : > { %5975 = sst [smem:[#allocation13_spill]] %s4983_s23  ;;  %s48_s28 = sadd.s32 1, %s4995_s25 }
  0x21   : > { %5976 = sst [smem:[#allocation14_spill]] %s4995_s25  ;;  %p49_p0 = scmp.ge.s32.totalorder %s48_s28, 2 }
  0x22   : > { %5977 = sst [smem:[#allocation15_spill]] %s4999_s3  ;;  %s51_s4 = sadd.s32 1, %s4999_s3 }
  0x23   : > { %5978 = sst [smem:[#allocation16_spill]] %s5003_s26  ;;  %s235_s29 = sadd.s32 1, %s4983_s23 }
  0x24   : > { %p242_p1 = scmp.ne.s32.totalorder %s4983_s23, %s4979_s22  ;;  %s6043_s28 = smov (%p49_p0, %s48_s28), 0 }
  0x25   : > { %5979 = sst [smem:[#allocation17_spill]] %s6043_s28  ;;  %s6045_s4 = smov (!%p49_p0, %s51_s4), %s4999_s3 }
  0x26   : > { %s232_s30 = ssub.s32 %s4995_s25, %s6043_s28  ;;  %p243_p2 = scmp.eq.s32.totalorder %s5003_s26, 0 }
  0x27   : > { %p53_p3 = scmp.ge.s32.totalorder %s6045_s4, 2  ;;  %p233_p4 = scmp.eq.s32.totalorder %s232_s30, 0 }
  0x28   : > { %p244_p5 = por %p243_p2, %p242_p1  ;;  %p248_p6 = scmp.ne.s32.totalorder %s4979_s22, %s4975_s1 }
  0x29   : > { %s6047_s4 = smov (%p53_p3, %s6045_s4), 0  ;;  %p249_p7 = scmp.eq.s32.totalorder %s5943_s27, 0 }
  0x2a   : > { %5980 = sst [smem:[#allocation18_spill]] %s6047_s4  ;;  %p4450_p8 = scmp.lt.s32.totalorder %s5003_s26, 4 }
  0x2b   : > { %s5174_s0 = scalar_select %p233_p4, %s4983_s23, %s235_s29  }
  0x2c   : > { %s5180_s21 = sand.u32 1, %s4983_s23   ;;  %p5182_p9 = por %p249_p7, %p248_p6 }
  0x2d   : > { %5981 = sst [smem:[#allocation19_spill]] %s5174_s0  ;;  %s5187_s28 = sshll.u32 %s4995_s25, 4 }
  0x2e   : > { %s5982_s3 = scalar_select %p5182_p9, 1, 0 }
  0x2f   : > { %p5189_p10 = pnand %p4450_p8, %p244_p5  ;;  %s691_s1 = sand.u32 1, %s5003_s26  }
  0x30   : > { %s5984_s10 = sld [smem:[#allocation32_spill]]  ;;  %s694_s0 = scalar_lea.vmem [#allocation4], %s5180_s21 }
  0x31   : > { %s5983_s30 = scalar_select %p5189_p10, 1, 0 }
  0x32   : > { %s701_s23 = sshll.u32 %s694_s0, 4  ;;  %s5205_s25 = scalar_lea.sflag [#allocation5], %s691_s1  ;;  %s5202_s23 = int_to_ptr.vmem [resolvable:$true] %s701_s23 }
  0x33   : > { %p5211_p0 = pneg %p5189_p10 }
  0x36   : > { %s5198_s27 = scalar_lea.hbm %s5984_s10, %s5187_s28  ;;  %s4814_s0 = scalar_lea.hbm %s5984_s10, 32 }
  0x37   : > { %s4809_s20 = scalar_lea.hbm %s5198_s27, 16  ;;  %p4815_p3 = scmp.lt.u32.totalorder %s5198_s27, %s5984_s10 }
  0x38   : > { %p4810_p13 = scmp.ne.s32.totalorder %s5198_s27, %s4809_s20  ;;  %p4816_p4 = scmp.lt.u32.totalorder %s4814_s0, %s4809_s20 }
  0x39   : > { %p4818_p6 = scmp.lt.u32.totalorder %s4809_s20, %s5198_s27 }
  0x3a   : > { %p4812_p1 = pnand %p5211_p0, %p4810_p13  ;;  %p4817_p5 = por %p4816_p4, %p4815_p3 }
  0x3c   : > { %p4813_p2 = pneg %p4812_p1  ;;  %p4819_p7 = por %p4818_p6, %p4817_p5 }
  0x3e   : > { %p4820_p8 = pnand %p4819_p7, %p4813_p2 }
  0x40   : > { %4823 = shalt.err (!%p4820_p8)
}
  0x41   : > { %s4824_s1 = scalar_lea.vmem %s5202_s23, 16  ;;  %s5005_s4 = smov [#allocation4]  }
  0x42   : > { %p4825_p13 = scmp.ne.s32.totalorder %s5202_s23, %s4824_s1  ;;  %s4829_s29 = sshll.u32 %s5005_s4, 4  ;;  %s4830_s29 = int_to_ptr.vmem [resolvable:$false] %s4829_s29 }
  0x43   : > { %s4831_s16 = scalar_lea.vmem %s4830_s29, 32  ;;  %p4832_p12 = scmp.lt.s32.totalorder %s5202_s23, %s4830_s29 }
  0x44   : > { %p4827_p1 = pnand %p4825_p13, %p5211_p0  ;;  %p4833_p9 = scmp.lt.s32.totalorder %s4831_s16, %s4824_s1 }
  0x46   : > { %p4828_p11 = pneg %p4827_p1  ;;  %p4834_p3 = por %p4833_p9, %p4832_p12 }
  0x48   : > { %p4835_p4 = pnand %p4834_p3, %p4828_p11 }
  0x4a   : > { %4838 = shalt.err (!%p4835_p4)
}
  0x4b   : > { %4443 = dma.hbm_to_vmem [thread:$0]  (!%p5189_p10), %s5198_s27, 16, %s5202_s23, %s5205_s25  }
  0x4c   : > { %p5986_p2 = scmp.lt.s32.totalorder %s5003_s26, 5  ;;  %p5987_p5 = scmp.ge.s32.totalorder %s5003_s26, 1 }
  0x4d   : > { %s5989_s7 = sld [smem:[#allocation29_spill]]  ;;  %s662_s4 = scalar_lea.vmem [#allocation2], %s5180_s21 }
  0x4e   : > { %p5239_p6 = pnand %p5987_p5, %p5986_p2  ;;  %s669_s29 = sshll.u32 %s662_s4, 4  ;;  %s5250_s29 = int_to_ptr.vmem [resolvable:$true] %s669_s29 }
  0x4f   : > { %s5990_s14 = sld [smem:[#allocation36_spill]]  ;;  %s660_s10 = scalar_lea.sflag [#allocation3], %s5180_s21 }
  0x50   : > { %s5988_s17 = scalar_select %p5239_p6, 1, 0 }
  0x53   : > { %s5247_s1 = scalar_lea.hbm %s5989_s7, %s5187_s28  ;;  %s4844_s13 = scalar_lea.hbm %s5989_s7, 32 }
  0x54   : > { %s4839_s15 = scalar_lea.hbm %s5247_s1, 16  ;;  %p4845_p7 = scmp.lt.u32.totalorder %s5247_s1, %s5989_s7 }
  0x55   : > { %s5256_s16 = scalar_lea.hbm %s5990_s14, %s5187_s28  ;;  %p4840_p9 = scmp.ne.s32.totalorder %s5247_s1, %s4839_s15 }
  0x56   : > { %p4846_p8 = scmp.lt.u32.totalorder %s4844_s13, %s4839_s15  ;;  %p4848_p1 = scmp.lt.u32.totalorder %s4839_s15, %s5247_s1 }
  0x57   : > { %p4842_p11 = pnand %p4840_p9, %p5211_p0 }
  0x58   : > { %p4847_p13 = por %p4846_p8, %p4845_p7 }
  0x59   : > { %p4843_p12 = pneg %p4842_p11 }
  0x5a   : > { %p4849_p3 = por %p4848_p1, %p4847_p13 }
  0x5c   : > { %p4850_p4 = pnand %p4849_p3, %p4843_p12 }
  0x5e   : > { %4853 = shalt.err (!%p4850_p4)
}
  0x5f   : > { %s4854_s4 = scalar_lea.vmem %s5250_s29, 16  ;;  %s5006_s23 = smov [#allocation2]  }
  0x60   : > { %p4855_p2 = scmp.ne.s32.totalorder %s5250_s29, %s4854_s4  ;;  %s4859_s27 = sshll.u32 %s5006_s23, 4  ;;  %s4860_s27 = int_to_ptr.vmem [resolvable:$false] %s4859_s27 }
  0x61   : > { %s4861_s11 = scalar_lea.vmem %s4860_s27, 32  ;;  %p4862_p11 = scmp.lt.s32.totalorder %s5250_s29, %s4860_s27 }
  0x62   : > { %p4857_p5 = pnand %p4855_p2, %p5211_p0  ;;  %p4863_p6 = scmp.lt.s32.totalorder %s4861_s11, %s4854_s4 }
  0x64   : > { %p4858_p9 = pneg %p4857_p5  ;;  %p4864_p7 = por %p4863_p6, %p4862_p11 }
  0x66   : > { %p4865_p8 = pnand %p4864_p7, %p4858_p9 }
  0x68   : > { %4868 = shalt.err (!%p4865_p8)
}
  0x69   : > { %4440 = dma.hbm_to_vmem [thread:$0]  (!%p5189_p10), %s5247_s1, 16, %s5250_s29, %s660_s10  }
  0x6a   : > { %s734_s12 = scalar_lea.vmem [#allocation6], %s5180_s21  ;;  %s4869_s15 = scalar_lea.hbm %s5256_s16, 16 }
  0x6b   : > { %s741_s13 = sshll.u32 %s734_s12, 4  ;;  %p4870_p12 = scmp.ne.s32.totalorder %s5256_s16, %s4869_s15  ;;  %s742_s13 = int_to_ptr.vmem [resolvable:$true] %s741_s13 }
  0x6c   : > { %s4874_s4 = scalar_lea.hbm %s5990_s14, 32  ;;  %p4875_p1 = scmp.lt.u32.totalorder %s5256_s16, %s5990_s14 }
  0x6d   : > { %p4872_p6 = pnand %p4870_p12, %p5211_p0  ;;  %p4876_p3 = scmp.lt.u32.totalorder %s4874_s4, %s4869_s15 }
  0x6e   : > { %p4878_p2 = scmp.lt.u32.totalorder %s4869_s15, %s5256_s16 }
  0x6f   : > { %p4873_p13 = pneg %p4872_p6  ;;  %p4877_p4 = por %p4876_p3, %p4875_p1 }
  0x71   : > { %p4879_p5 = por %p4878_p2, %p4877_p4 }
  0x73   : > { %p4880_p9 = pnand %p4879_p5, %p4873_p13 }
  0x75   : > { %4883 = shalt.err (!%p4880_p9)
}
  0x76   : > { %s4884_s10 = scalar_lea.vmem %s742_s13, 16  ;;  %s5007_s1 = smov [#allocation6]  }
  0x77   : > { %p4885_p11 = scmp.ne.s32.totalorder %s742_s13, %s4884_s10  ;;  %s4889_s29 = sshll.u32 %s5007_s1, 4  ;;  %s4890_s29 = int_to_ptr.vmem [resolvable:$false] %s4889_s29 }
  0x78   : > { %s4891_s11 = scalar_lea.vmem %s4890_s29, 32  ;;  %p4892_p12 = scmp.lt.s32.totalorder %s742_s13, %s4890_s29 }
  0x79   : > { %p4887_p7 = pnand %p4885_p11, %p5211_p0  ;;  %p4893_p6 = scmp.lt.s32.totalorder %s4891_s11, %s4884_s10 }
  0x7b   : > { %p4888_p8 = pneg %p4887_p7  ;;  %p4894_p10 = por %p4893_p6, %p4892_p12 }
  0x7d   : > { %p4895_p1 = pnand %p4894_p10, %p4888_p8 }
  0x7f   : > { %4898 = shalt.err (!%p4895_p1)
}
  0x80   : > { %p5991_p3 = scmp.ne.s32.totalorder %s5983_s30, 0  ;;  %s5992_s19 = sld [smem:[#allocation41_spill]] }
  0x81   : > { %s781_s0 = scalar_lea.vmem [#allocation7], %s5180_s21  ;;  %s779_s23 = scalar_lea.sflag [#allocation8], %s5180_s21 }
  0x82   : > { %4446 = dma.hbm_to_vmem [thread:$0]  (!%p5991_p3), %s5256_s16, 16, %s742_s13, %s5205_s25  }
  0x83   : > { %s788_s4 = sshll.u32 %s781_s0, 4  ;;  %s789_s4 = int_to_ptr.vmem [resolvable:$true] %s788_s4 }
  0x86   : > { %s5303_s20 = scalar_lea.hbm %s5992_s19, %s5187_s28  ;;  %s4904_s16 = scalar_lea.hbm %s5992_s19, 32 }
  0x87   : > { %s4899_s27 = scalar_lea.hbm %s5303_s20, 16  ;;  %p4905_p2 = scmp.lt.u32.totalorder %s5303_s20, %s5992_s19 }
  0x88   : > { %p4900_p10 = scmp.ne.s32.totalorder %s5303_s20, %s4899_s27  ;;  %p4906_p5 = scmp.lt.u32.totalorder %s4904_s16, %s4899_s27 }
  0x89   : > { %p4908_p11 = scmp.lt.u32.totalorder %s4899_s27, %s5303_s20 }
  0x8a   : > { %p4902_p13 = pnand %p4900_p10, %p5211_p0  ;;  %p4907_p9 = por %p4906_p5, %p4905_p2 }
  0x8c   : > { %p4903_p4 = pneg %p4902_p13  ;;  %p4909_p7 = por %p4908_p11, %p4907_p9 }
  0x8e   : > { %p4910_p8 = pnand %p4909_p7, %p4903_p4 }
  0x90   : > { %4913 = shalt.err (!%p4910_p8)
}
  0x91   : > { %s4914_s21 = scalar_lea.vmem %s789_s4, 16  ;;  %s5008_s1 = smov [#allocation7]  }
  0x92   : > { %p4915_p12 = scmp.ne.s32.totalorder %s789_s4, %s4914_s21  ;;  %s4919_s29 = sshll.u32 %s5008_s1, 4  ;;  %s4920_s29 = int_to_ptr.vmem [resolvable:$false] %s4919_s29 }
  0x93   : > { %s4921_s11 = scalar_lea.vmem %s4920_s29, 32  ;;  %p4922_p10 = scmp.lt.s32.totalorder %s789_s4, %s4920_s29 }
  0x94   : > { %p4917_p6 = pnand %p4915_p12, %p5211_p0  ;;  %p4923_p13 = scmp.lt.s32.totalorder %s4921_s11, %s4914_s21 }
  0x96   : > { %p4918_p1 = pneg %p4917_p6  ;;  %p4924_p3 = por %p4923_p13, %p4922_p10 }
  0x98   : > { %p4925_p2 = pnand %p4924_p3, %p4918_p1 }
  0x9a   : > { %4928 = shalt.err (!%p4925_p2)
}
  0x9b   : > { %p5993_p5 = scmp.ne.s32.totalorder %s5983_s30, 0  ;;  %p5994_p4 = scmp.ne.s32.totalorder %s5988_s17, 0 }
  0x9d   : > { %4449 = dma.hbm_to_vmem [thread:$0]  (!%p5993_p5), %s5303_s20, 16, %s789_s4, %s779_s23  }
  0x9e   : > { %797 = sbr.rel (%p5994_p4) target bundleno = 4290 (0x10c2), region = 100 }
  0xa5   : > { %s5327_s18 = sand.u32 1, %s4979_s22   ;;  %p5995_p0 = scmp.ne.s32.totalorder %s5982_s3, 0 }
  0xa6   : > { %s800_s12 = scalar_lea.sflag [#allocation3], %s5327_s18 }
  0xa7   : > { %4962 = dma.done.wait (%p5995_p0), %s800_s12, 16  }
  0xa8   : > { %4964 = vsyncadd (%p5995_p0), %s800_s12, 4294967280  ;;  %s5996_s30 = sadd.s32 4294967295, %s5003_s26  }
  0xa9   : > { %s807_s20 = sand.u32 1, %s5996_s30  }
  0xaa   : > { %s808_s17 = scalar_lea.sflag [#allocation5], %s807_s20 }
  0xab   : > { %4966 = dma.done.wait (%p5995_p0), %s808_s17, 32  }
  0xac   : > { %4968 = vsyncadd (%p5995_p0), %s808_s17, 4294967264  ;;  %s824_s23 = scalar_lea.sflag [#allocation8], %s5327_s18 }
  0xad   : > { %4970 = dma.done.wait (%p5995_p0), %s824_s23, 16  }
  0xae   : > { %4972 = vsyncadd (%p5995_p0), %s824_s23, 4294967280  ;;  %p963_p3 = scmp.lt.s32.totalorder %s4991_s2, 1  ;;  %p973_p9 = scmp.lt.s32.totalorder %s4987_s24, 1 }
  0xaf   : > { %s5997_s28 = sld [smem:[#allocation22_spill]]  ;;  %s5998_s11 = sld [smem:[#allocation24_spill]] }
  0xb0   : > { %s6049_s2 = smov (!%p963_p3, %s4991_s2), 1  ;;  %s6002_s5 = sld [smem:[#allocation27_spill]] }
  0xb1   : > { %s974_s10 = scalar_select %p973_p9, %s4987_s24, 1 }
  0xb2   : > { %s4122_s25 = sshll.u32 %s6049_s2, 4  ;;  %s6003_s6 = sld [smem:[#allocation28_spill]] }
  0xb3   : > { %s5361_s3 = sshll.u32 %s974_s10, 1  ;;  %s4427_s30 = smul.u32 192, %s974_s10 }
  0xb4   : > { %s4428_s27 = smul.u32 3, %s974_s10  ;;  %s4124_s1 = sshll.u32 %s974_s10, 6 }
  0xb5   : > { %s967_s21 = scalar_lea.vmem %s5997_s28, %s4122_s25  ;;  %s5359_s12 = scalar_lea.vmem %s5998_s11, %s4122_s25 }
  0xb6   : > { %5999 = sst [smem:[#allocation20_spill]] %s5359_s12  ;;  %s6001_s28 = sld [smem:[#allocation26_spill]] }
  0xb7   : > { %s5375_s0 = scalar_lea.vmem %s6002_s5, %s4428_s27  ;;  %s6005_s9 = sld [smem:[#allocation31_spill]] }
  0xb8   : > { %s5380_s14 = scalar_lea.vmem %s6003_s6, %s4124_s1  ;;  %s4126_s16 = sshll.u32 %s974_s10, 7 }
  0xb9   : > { %s6008_s22 = sld [smem:[#allocation33_spill]]  ;;  %s6009_s26 = sld [smem:[#allocation35_spill]] }
  0xba   : > { %s6010_s23 = sld [smem:[#allocation37_spill]]  ;;  %s6011_s8 = sld [smem:[#allocation38_spill]] }
  0xbb   : > { %s6012_s29 = sld [smem:[#allocation39_spill]]  ;;  %s6013_s27 = sld [smem:[#allocation40_spill]] }
  0xbc   : > { %s5370_s4 = scalar_lea.vmem %s6001_s28, %s4427_s30  ;;  %p3995_p11 = scmp.ne.s32.totalorder %s4987_s24, 0 }
  0xbd   : > { %s5389_s30 = scalar_lea.vmem %s6005_s9, %s4124_s1  ;;  %v1042_v0 = vld [vmem:[%s967_s21] sm:$0xff] (!%p3995_p11)  ;;  %s6015_s17 = sld [smem:[#allocation23_spill]] (!%p3995_p11)  ;;  %v1043_v2 = vld [vmem:[%s967_s21 + $0x8] sm:$0xff] (!%p3995_p11) }
  0xbe   : > { %6006 = sst [smem:[#allocation21_spill]] %s5389_s30  ;;  %v1044_v3 = vmul.f32 (!%p3995_p11), 11.313708, %v1042_v0  ;;  %v1045_v4 = vmul.f32 (!%p3995_p11), 11.313708, %v1043_v2 }
  0xbf   : > { %s5398_s7 = scalar_lea.vmem %s6008_s22, %s4126_s16  ;;  %s5403_s19 = scalar_lea.vmem %s6009_s26, %s4124_s1 }
  0xc0   : > { %s1017_s2 = scalar_lea.vmem %s6010_s23, %s5361_s3  ;;  %s5412_s12 = scalar_lea.vmem %s6011_s8, %s4126_s16 }
  0xc1   : > { %s1026_s5 = scalar_lea.vmem %s6012_s29, %s5361_s3  ;;  %s5421_s30 = scalar_lea.vmem %s6013_s27, %s4126_s16 }
  0xc2   : > { %s6014_s1 = sld [smem:[#allocation42_spill]]  ;;  %1041 = sbr.rel (%p3995_p11) target bundleno = 202 (0xca), region = 120 }
  0xc3   : > { %v1046_v1 = vld [vmem:[%s6015_s17] sm:$0xff] (!%p3995_p11)  ;;  %v1047_v5 = vld [vmem:[%s6015_s17 + $0x8] sm:$0xff] (!%p3995_p11) }
  0xc4   : > { %v1048_v6 = vadd.f32 (!%p3995_p11), %v1046_v1, %v1044_v3  ;;  %v1049_v7 = vadd.f32 (!%p3995_p11), %v1047_v5, %v1045_v4 }
  0xc8   : > { %s5426_s15 = scalar_lea.vmem %s6014_s1, %s4122_s25 }
  0xc9   : > { %1050 = vst [vmem:[%s5426_s15] sm:$0xff] %v1048_v6  ;;  %1051 = vst [vmem:[%s5426_s15 + $0x8] sm:$0xff] %v1049_v7 }
  0xca PF: > { %v4611_v10 = vld [vmem:[%s5370_s4 + $0x4] ss:$12 sps:$4 sm:$0xff]   ;;  %v4613_v11 = vld [vmem:[%s5370_s4] ss:$12 sps:$4 sm:$0xff]   ;;  %v5009_v12 = vmov 0.0   ;;  %v5010_v38 = vmov 0   ;;  %v1128_v48 = vlaneseq }
  0xcb   : > { %4227 = vmatprep.subr.bf16.mxu1 %v5009_v12  ;;  %v4614_v13 = vld [vmem:[%s5370_s4 + $0x8] ss:$12 sps:$4 sm:$0xff]   ;;  %1285 = vmatprep.subr.bf16.mxu0 %v4611_v10  ;;  %v4617_v23 = vld [vmem:[%s5370_s4 + $0x18] ss:$12 sps:$4 sm:$0xff]   ;;  %v4618_v24 = vld [vmem:[%s5370_s4 + $0x20] ss:$12 sps:$4 sm:$0xff]  }
  0xcc   : > { %v4615_v14 = vld [vmem:[%s5370_s4 + $0x1c] ss:$12 sps:$4 sm:$0xff]   ;;  %1286 = vmatpush1.bf16.msra.mxu0 %v4613_v11  ;;  %4228 = vmatpush3.bf16.msra.mxu1 %v4614_v13  ;;  %v4619_v25 = vld [vmem:[%s5370_s4 + $0x34] ss:$12 sps:$4 sm:$0xff]   ;;  %v4622_v27 = vld [vmem:[%s5370_s4 + $0x38] ss:$12 sps:$4 sm:$0xff]  }
  0xcd   : > { %1287 = vmatprep.subr.bf16.mxu0 %v4615_v14  ;;  %4229 = vmatprep.subr.bf16.mxu1 %v5009_v12  ;;  %v4621_v26 = vld [vmem:[%s5370_s4 + $0x30] ss:$12 sps:$4 sm:$0xff]   ;;  %v4623_v28 = vld [vmem:[%s5370_s4 + $0x4c] ss:$12 sps:$4 sm:$0xff]   ;;  %v4625_v29 = vld [vmem:[%s5370_s4 + $0x48] ss:$12 sps:$4 sm:$0xff]  }
  0xce   : > { %v4626_v30 = vld [vmem:[%s5370_s4 + $0x50] ss:$12 sps:$4 sm:$0xff]   ;;  %v4629_v32 = vld [vmem:[%s5370_s4 + $0x60] ss:$12 sps:$4 sm:$0xff]   ;;  %v4630_v33 = vld [vmem:[%s5370_s4 + $0x68] ss:$12 sps:$4 sm:$0xff]   ;;  %1317 = vmatprep.mubr.bf16.mxu0 %v5010_v38 }
  0xcf   : > { %v4627_v31 = vld [vmem:[%s5370_s4 + $0x64] ss:$12 sps:$4 sm:$0xff]   ;;  %v4631_v34 = vld [vmem:[%s5370_s4 + $0x7c] ss:$12 sps:$4 sm:$0xff]   ;;  %v4634_v36 = vld [vmem:[%s5370_s4 + $0x80] ss:$12 sps:$4 sm:$0xff]  }
  0xd0   : > { %v1052_v8 = vld [vmem:[%s5426_s15] sm:$0xff]  ;;  %v1053_v9 = vld [vmem:[%s5426_s15 + $0x8] sm:$0xff]  ;;  %1288 = vmatpush1.bf16.msra.mxu0 %v4617_v23  ;;  %4230 = vmatpush3.bf16.msra.mxu1 %v4618_v24  ;;  %vm5011_vm0 = vmmov 0   ;;  %v4637_v39 = vld [vmem:[%s5370_s4 + $0x90] ss:$12 sps:$4 sm:$0xff]   ;;  %v5485_v51 = vshrl.u32 %v1128_v48, 7 }
  0xd1   : > { %1105 = vadd.xlane.f32.xlu0 %v1052_v8  ;;  %4231 = vmatprep.subr.bf16.mxu1 %v5009_v12  ;;  %v4633_v35 = vld [vmem:[%s5370_s4 + $0x78] ss:$12 sps:$4 sm:$0xff]   ;;  %v4635_v37 = vld [vmem:[%s5370_s4 + $0x94] ss:$12 sps:$4 sm:$0xff]   ;;  %v4642_v43 = vld [vmem:[%s5370_s4 + $0xb0] ss:$12 sps:$4 sm:$0xff]  }
  0xd2   : > { %1289 = vmatprep.subr.bf16.mxu0 %v4619_v25  ;;  %4243 = vmatprep.mubr.msk.bf16.mxu1 %vm5011_vm0, %v5009_v12  ;;  %v4638_v40 = vld [vmem:[%s5370_s4 + $0x98] ss:$12 sps:$4 sm:$0xff]   ;;  %v4641_v42 = vld [vmem:[%s5370_s4 + $0xa8] ss:$12 sps:$4 sm:$0xff]   ;;  %v5488_v52 = vsub.s32 0, %v5485_v51  ;;  %s6016_s25 = sld [smem:[#allocation25_spill]] }
  0xd3   : > { %v4639_v41 = vld [vmem:[%s5370_s4 + $0xac] ss:$12 sps:$4 sm:$0xff]   ;;  %v5498_v57 = vsub.s32 1, %v5485_v51  ;;  %v1087_v2 = vld [vmem:[%s5375_s0] sm:$0x7]  ;;  %v1152_v3 = vsub.s32 2, %v5485_v51 }
  0xd4   : > { %1290 = vmatpush1.bf16.msra.mxu0 %v4621_v26  ;;  %4232 = vmatpush3.bf16.msra.mxu1 %v4622_v27  ;;  %v1145_v4 = vrot.slane %v1087_v2, %v5488_v52  ;;  %vm1437_vm1 = vcmask 261120   ;;  %s5012_s0 = smov 96   ;;  %s5013_s20 = smov 64   ;;  %vm1653_vm3 = vcmask 130048  }
  0xd5   : > { %1107 = vadd.xlane.f32.xlu0 %v1053_v9  ;;  %4233 = vmatprep.subr.bf16.mxu1 %v5009_v12  ;;  %v1153_v6 = vrot.slane %v1087_v2, %v1152_v3  ;;  %s5014_s23 = smov 32   ;;  %s6023_s10 = sld [smem:[#allocation21_spill]] }
  0xd6   : > { %1291 = vmatprep.subr.bf16.mxu0 %v4623_v28  ;;  %s6024_s13 = sld [smem:[#allocation20_spill]]  ;;  %s6025_s29 = sld [smem:[#allocation30_spill]] }
  0xd7   : > { %s6027_s26 = sld [smem:[#allocation34_spill]]  ;;  %s6029_s8 = scalar_lea.vmem [#allocation4], %s5327_s18 }
  0xd8   : > { %1292 = vmatpush1.bf16.msra.mxu0 %v4625_v29  ;;  %4234 = vmatpush3.bf16.msra.mxu1 %v4626_v30  ;;  %s6017_s21 = scalar_lea.vmem %s6016_s25, %s5361_s3 }
  0xd9   : > { %4235 = vmatprep.subr.bf16.mxu1 %v5009_v12  ;;  %1293 = vmatprep.subr.bf16.mxu0 %v4627_v31  ;;  %v1054_v53 = vld [vmem:[%s6017_s21] sm:$0x3] }
  0xda   : > { %v1131_v56 = vrot.slane %v1054_v53, %v5488_v52  ;;  %v1137_v61 = vrot.slane %v1054_v53, %v5498_v57 }
  0xdc   : > { %1294 = vmatpush1.bf16.msra.mxu0 %v4629_v32  ;;  %4236 = vmatpush3.bf16.msra.mxu1 %v4630_v33  ;;  %s6026_s22 = scalar_lea.vmem %s6025_s29, %s5361_s3 }
  0xdd   : > { %1295 = vmatprep.subr.bf16.mxu0 %v4631_v34  ;;  %4237 = vmatprep.subr.bf16.mxu1 %v5009_v12  ;;  %s6028_s1 = scalar_lea.vmem %s6027_s26, %s5361_s3  ;;  %s6033_s3 = scalar_lea.vmem [#allocation7], %s5327_s18 }
  0xe0   : > { %1296 = vmatpush1.bf16.msra.mxu0 %v4633_v35  ;;  %4238 = vmatpush3.bf16.msra.mxu1 %v4634_v36 }
  0xe1   : > { %1297 = vmatprep.subr.bf16.mxu0 %v4635_v37  ;;  %4239 = vmatprep.subr.bf16.mxu1 %v5009_v12 }
  0xe4   : > { %1298 = vmatpush1.bf16.msra.mxu0 %v4637_v39  ;;  %4240 = vmatpush3.bf16.msra.mxu1 %v4638_v40 }
  0xe5   : > { %1299 = vmatprep.subr.bf16.mxu0 %v4639_v41  ;;  %4241 = vmatprep.subr.bf16.mxu1 %v5009_v12 }
  0xe8   : > { %1300 = vmatpush1.bf16.msra.mxu0 %v4641_v42  ;;  %4242 = vmatpush3.bf16.msra.mxu1 %v4642_v43 }
  0xe9   : > { %4247 = vmatprep.subr.bf16.mxu0 %v5009_v12  ;;  %4253 = vmatprep.subr.bf16.mxu1 %v5009_v12 }
 0x15e   : > { %v1106_v15 = vpop.xlane.xlu0 %1105 }
 0x15f   : > { %v1110_v16 = vmul.f32 0.0078125, %v1106_v15 }
 0x161   : > { %v5445_v17 = vsub.f32 %v1052_v8, %v1110_v16  ;;  %v1149_v8 = vrot.slane %v1087_v2, %v5498_v57 }
 0x162   : > { %v1108_v18 = vpop.xlane.xlu0 %1107 }
 0x163   : > { %v1111_v19 = vmul.f32 0.0078125, %v1108_v18  ;;  %v1114_v20 = vmul.f32 %v5445_v17, %v5445_v17 }
 0x165   : > { %v5449_v21 = vsub.f32 %v1053_v9, %v1111_v19  ;;  %1116 = vadd.xlane.f32.xlu1 %v1114_v20 }
 0x167   : > { %v1115_v22 = vmul.f32 %v5449_v21, %v5449_v21 }
 0x169   : > { %1118 = vadd.xlane.f32.xlu1 %v1115_v22 }
 0x1f2   : > { %v1117_v44 = vpop.xlane.xlu1 %1116 }
 0x1f3   : > { %v1120_v45 = vmul.f32 0.0078125, %v1117_v44 }
 0x1f5   : > { %v1122_v46 = vadd.f32 1e-05, %v1120_v45 }
 0x1f6   : > { %v1119_v47 = vpop.xlane.xlu1 %1118 }
 0x1f7   : > { %4731 = vrsqrt.f32 %v1122_v46  ;;  %v1121_v49 = vmul.f32 0.0078125, %v1119_v47 }
 0x1f9   : > { %v1123_v50 = vadd.f32 1e-05, %v1121_v49 }
 0x1fb   : > { %4733 = vrsqrt.f32 %v1123_v50 }
 0x201   : > { %v4732_v54 = vpop.eup %4731 }
 0x202   : > { %v1126_v55 = vmul.f32 %v4732_v54, %v5445_v17 }
 0x204   : > { %v1132_v60 = vmul.f32 %v1131_v56, %v1126_v55 }
 0x205   : > { %v4734_v58 = vpop.eup %4733 }
 0x206   : > { %v1127_v59 = vmul.f32 %v4734_v58, %v5449_v21  ;;  %v1138_v63 = vadd.f32 %v1137_v61, %v1132_v60 }
 0x208   : > { %v1133_v62 = vmul.f32 %v1131_v56, %v1127_v59 }
 0x20a   : > { %v1139_v0 = vadd.f32 %v1137_v61, %v1133_v62  ;;  %v1638_v61 = vand.u32 127, %v1128_v48  ;;  %v1636_v62 = vadd.s32 8, %v5485_v51 }
 0x20c   : > { %v1140_v1 = vpack.c.bf16 %v1139_v0, %v1138_v63  ;;  %vm5542_vm2 = vcmp.le.s32.totalorder %v1638_v61, %v5485_v51  ;;  %vm5546_vm4 = vcmp.le.s32.totalorder %v1638_v61, %v1636_v62 }
 0x20e   : > { %1318 = vmatmul.mubr.bf16.vlgmr.msra.gmra.mrb[0].mxu0 %v1140_v1  ;;  %4244 = vmatmul.mubr.bf16.vlgmr.msra.gmra.mrb[0].mxu1 %v1140_v1 }
 0x20f   : > { %4249 = vmatprep.mubr.msk.bf16.mxu0 %vm5011_vm0, %v5009_v12  ;;  %4255 = vmatprep.mubr.msk.bf16.mxu1 %vm5011_vm0, %v5009_v12 }
 0x2e1   : > { %v1319_v5 = vpop.f32.mrb[0].mxu0  ;;  %v1362_v7 = vpop.f32.mrb[0].mxu1 }
 0x2e2   : > { %v1321_v9 = vpop.f32.mrb[1].mxu0  ;;  %v4245_v10 = vpop.f32.mrb[1].mxu1  ;;  %v1320_v14 = vadd.f32 %v1319_v5, %v1145_v4  ;;  %v1363_v19 = vadd.f32 %v1362_v7, %v1153_v6 }
 0x2e3   : > { %v1323_v11 = vpop.f32.mrb[2].mxu0  ;;  %v1365_v13 = vpop.f32.mrb[2].mxu1  ;;  %v1322_v20 = vadd.f32 %v1321_v9, %v1149_v8 }
 0x2e4   : > { %v1324_v15 = vadd.f32 %v1323_v11, %v1145_v4  ;;  %v1366_v16 = vadd.f32 %v1365_v13, %v1153_v6  ;;  %v1325_v17 = vpop.f32.mrb[3].mxu0  ;;  %v4246_v18 = vpop.f32.mrb[3].mxu1 }
 0x2e5   : > { %v1326_v21 = vadd.f32 %v1325_v17, %v1149_v8 }
 0x2e6   : > { %v1429_v22 = vpack.c.bf16 %v1324_v15, %v1320_v14  ;;  %v4526_v23 = vpack.i.bf16 %v1324_v15, %v1320_v14  ;;  %v1754_v26 = vpack.c.bf16 %v1366_v16, %v1363_v19  ;;  %v5511_v27 = vpack.i.bf16 %v1366_v16, %v1363_v19 }
 0x2e7   : > { %v4521_v24 = vpack.i.bf16 %v1326_v21, %v1322_v20  ;;  %v1433_v25 = vpack.c.bf16 %v1326_v21, %v1322_v20 }
 0x2e8   : > { %4527 = vrot.lane.b32.xlu1 %v4526_v23, %s5012_s0 }
 0x2e9   : > { %4522 = vrot.lane.b32.xlu0 %v4521_v24, %s5012_s0  ;;  %v1442_v28 = vsel %vm1437_vm1, %v1433_v25, 0 }
 0x2ea   : > { %4248 = vmatpush3.bf16.xpose.msra.mxu0 %v1442_v28 }
 0x2eb   : > { %4259 = vmatprep.subr.bf16.mxu0 %v5009_v12 }
 0x2ec   : > { %4532 = vrot.lane.b32.xlu1 %v4521_v24, %s5013_s20 }
 0x2ed   : > { %4542 = vrot.lane.b32.xlu0 %v4526_v23, %s5013_s20 }
 0x2f0   : > { %4537 = vrot.lane.b32.xlu1 %v4521_v24, %s5014_s23 }
 0x2f1   : > { %4250 = vmatmul.mubr.msk.bf16.vlgmr.msra.gmra.mrb[4].mxu0 %vm1437_vm1, %v1429_v22 }
 0x2f2   : > { %4261 = vmatprep.mubr.msk.bf16.mxu0 %vm5011_vm0, %v5009_v12 }
 0x2f4   : > { %4547 = vrot.lane.b32.xlu1 %v4526_v23, %s5014_s23 }
 0x35a   : > { %v4528_v29 = vpop.permute.xlu1 %4527 }
 0x35b   : > { %v4523_v30 = vpop.permute.xlu0 %4522  ;;  %v4530_v40 = vunpack.i.h.bf16 %v4528_v29  ;;  %v4529_v41 = vunpack.i.l.bf16 %v4528_v29 }
 0x35c   : > { %v4525_v31 = vunpack.i.h.bf16 %v4523_v30  ;;  %v4524_v32 = vunpack.i.l.bf16 %v4523_v30 }
 0x35d   : > { %v1430_v53 = vpack.c.bf16 %v4530_v40, %v4529_v41 }
 0x35e   : > { %v1434_v33 = vpack.c.bf16 %v4525_v31, %v4524_v32  ;;  %v4533_v34 = vpop.permute.xlu1 %4532 }
 0x35f   : > { %v4535_v35 = vunpack.i.h.bf16 %v4533_v34  ;;  %v4534_v36 = vunpack.i.l.bf16 %v4533_v34  ;;  %v4543_v42 = vpop.permute.xlu0 %4542 }
 0x360   : > { %v1489_v37 = vsel %vm1437_vm1, %v1434_v33, 0  ;;  %v4545_v47 = vunpack.i.h.bf16 %v4543_v42  ;;  %v4544_v49 = vunpack.i.l.bf16 %v4543_v42 }
 0x361   : > { %v1435_v39 = vpack.c.bf16 %v4535_v35, %v4534_v36  ;;  %4254 = vmatpush3.bf16.xpose.msra.mxu1 %v1489_v37 }
 0x362   : > { %v4538_v43 = vpop.permute.xlu1 %4537  ;;  %4265 = vmatprep.subr.bf16.mxu1 %v5009_v12  ;;  %v1431_v56 = vpack.c.bf16 %v4545_v47, %v4544_v49 }
 0x363   : > { %v4540_v44 = vunpack.i.h.bf16 %v4538_v43  ;;  %v4539_v45 = vunpack.i.l.bf16 %v4538_v43  ;;  %v1536_v46 = vsel %vm1437_vm1, %v1435_v39, 0 }
 0x364   : > { %4260 = vmatpush3.bf16.xpose.msra.mxu0 %v1536_v46 }
 0x365   : > { %v1436_v50 = vpack.c.bf16 %v4540_v44, %v4539_v45  ;;  %4271 = vmatprep.subr.bf16.mxu0 %v5009_v12 }
 0x366   : > { %v4548_v54 = vpop.permute.xlu1 %4547 }
 0x367   : > { %v1583_v55 = vsel %vm1437_vm1, %v1436_v50, 0  ;;  %v4550_v58 = vunpack.i.h.bf16 %v4548_v54  ;;  %v4549_v59 = vunpack.i.l.bf16 %v4548_v54 }
 0x368   : > { %4256 = vmatmul.mubr.msk.bf16.vlgmr.msra.gmra.mrb[4].mxu1 %vm1437_vm1, %v1430_v53 }
 0x369   : > { %4266 = vmatpush3.bf16.xpose.msra.mxu1 %v1583_v55  ;;  %4267 = vmatprep.mubr.msk.bf16.mxu1 %vm5011_vm0, %v5009_v12  ;;  %v1432_v60 = vpack.c.bf16 %v4550_v58, %v4549_v59 }
 0x36a   : > { %4277 = vmatprep.subr.bf16.mxu1 %v5009_v12 }
 0x36b   : > { %4262 = vmatmul.mubr.msk.bf16.vlgmr.msra.gmra.mrb[8].mxu0 %vm1437_vm1, %v1431_v56 }
 0x36c   : > { %4272 = vmatpush3.bf16.msra.mxu0 %v1754_v26  ;;  %4273 = vmatprep.mubr.msk.bf16.mxu0 %vm5011_vm0, %v5009_v12 }
 0x36d   : > { %4283 = vmatprep.subr.bf16.mxu0 %v5009_v12 }
 0x370   : > { %4268 = vmatmul.mubr.msk.bf16.vlgmr.msra.gmra.mrb[8].mxu1 %vm1437_vm1, %v1432_v60 }
 0x371   : > { %4279 = vmatprep.mubr.msk.bf16.mxu1 %vm5011_vm0, %v5009_v12 }
 0x3c4   : > { %v1478_v63 = vpop.f32.mrb[4].mxu0 }
 0x3c5   : > { %v1626_v1 = vmul.f32 0.17677669, %v1478_v63  ;;  %v4251_v2 = vpop.f32.mrb[5].mxu0 }
 0x3c6   : > { %v1481_v3 = vpop.f32.mrb[6].mxu0 }
 0x3c7   : > { %v1627_v5 = vmul.f32 0.17677669, %v1481_v3  ;;  %v4252_v6 = vpop.f32.mrb[7].mxu0  ;;  %v1645_v48 = vsel %vm5542_vm2, %v1626_v1, -1e+09 }
 0x3c8   : > { %v1654_v7 = vsel %vm1653_vm3, %v1645_v48, -inf }
 0x3c9   : > { %1655 = vmax.xlane.f32.xlu0 %v1654_v7  ;;  %v1646_v51 = vsel %vm5546_vm4, %v1627_v5, -1e+09 }
 0x3ca   : > { %v1657_v8 = vsel %vm1653_vm3, %v1646_v51, -inf }
 0x3cb   : > { %1658 = vmax.xlane.f32.xlu1 %v1657_v8 }
 0x43b   : > { %v1525_v9 = vpop.f32.mrb[4].mxu1 }
 0x43c   : > { %v1628_v10 = vmul.f32 0.17677669, %v1525_v9  ;;  %v4257_v11 = vpop.f32.mrb[5].mxu1 }
 0x43d   : > { %v1528_v13 = vpop.f32.mrb[6].mxu1 }
 0x43e   : > { %v1629_v14 = vmul.f32 0.17677669, %v1528_v13  ;;  %v4258_v15 = vpop.f32.mrb[7].mxu1  ;;  %v1572_v16 = vpop.f32.mrb[8].mxu0  ;;  %v1647_v17 = vsel %vm5542_vm2, %v1628_v10, -1e+09 }
 0x43f   : > { %v4263_v18 = vpop.f32.mrb[9].mxu0  ;;  %v1660_v19 = vsel %vm1653_vm3, %v1647_v17, -inf  ;;  %v1630_v20 = vmul.f32 0.17677669, %v1572_v16 }
 0x440   : > { %1661 = vmax.xlane.f32.xlu0 %v1660_v19  ;;  %v1575_v21 = vpop.f32.mrb[10].mxu0  ;;  %v1648_v22 = vsel %vm5546_vm4, %v1629_v14, -1e+09 }
 0x441   : > { %v1631_v23 = vmul.f32 0.17677669, %v1575_v21  ;;  %v4264_v24 = vpop.f32.mrb[11].mxu0  ;;  %v1663_v26 = vsel %vm1653_vm3, %v1648_v22, -inf  ;;  %v1649_v32 = vsel %vm5542_vm2, %v1630_v20, -1e+09 }
 0x442   : > { %v1666_v36 = vsel %vm1653_vm3, %v1649_v32, -inf }
 0x443   : > { %v1619_v25 = vpop.f32.mrb[8].mxu1  ;;  %v1650_v28 = vsel %vm5546_vm4, %v1631_v23, -1e+09 }
 0x444   : > { %v1632_v29 = vmul.f32 0.17677669, %v1619_v25  ;;  %v4269_v30 = vpop.f32.mrb[9].mxu1  ;;  %1664 = vmax.xlane.f32.xlu0 %v1663_v26  ;;  %v1669_v31 = vsel %vm1653_vm3, %v1650_v28, -inf }
 0x445   : > { %v1622_v33 = vpop.f32.mrb[10].mxu1  ;;  %1670 = vmax.xlane.f32.xlu1 %v1669_v31 }
 0x446   : > { %v1633_v34 = vmul.f32 0.17677669, %v1622_v33  ;;  %v4270_v35 = vpop.f32.mrb[11].mxu1  ;;  %v1651_v39 = vsel %vm5542_vm2, %v1632_v29, -1e+09 }
 0x447   : > { %v1672_v41 = vsel %vm1653_vm3, %v1651_v39, -inf }
 0x448   : > { %1667 = vmax.xlane.f32.xlu0 %v1666_v36  ;;  %v5570_v37 = vsel %vm5546_vm4, %v1633_v34, -1e+09 }
 0x449   : > { %v1675_v40 = vsel %vm1653_vm3, %v5570_v37, -inf }
 0x44a   : > { %1676 = vmax.xlane.f32.xlu1 %v1675_v40 }
 0x44c   : > { %1673 = vmax.xlane.f32.xlu0 %v1672_v41 }
 0x456   : > { %v1656_v42 = vpop.xlane.xlu0 %1655 }
 0x457   : > { %v1678_v43 = vsub.f32 %v1645_v48, %v1656_v42 }
 0x458   : > { %v1659_v44 = vpop.xlane.xlu1 %1658 }
 0x459   : > { %v1686_v45 = vmul.f32 1.442695, %v1678_v43  ;;  %v1679_v46 = vsub.f32 %v1646_v51, %v1659_v44 }
 0x45b   : > { %4735 = vpow2.f32 %v1686_v45  ;;  %v1688_v47 = vmul.f32 1.442695, %v1679_v46 }
 0x45d   : > { %4737 = vpow2.f32 %v1688_v47 }
 0x465   : > { %v4736_v49 = vpop.eup %4735 }
 0x466   : > { %v1702_v50 = vsel %vm5542_vm2, %v4736_v49, 0.0 }
 0x467   : > { %v4738_v53 = vpop.eup %4737  ;;  %v1710_v54 = vsel %vm1653_vm3, %v1702_v50, 0.0 }
 0x468   : > { %1711 = vadd.xlane.f32.xlu0 %v1710_v54  ;;  %v1703_v55 = vsel %vm5546_vm4, %v4738_v53, 0.0 }
 0x469   : > { %v1713_v56 = vsel %vm1653_vm3, %v1703_v55, 0.0 }
 0x46a   : > { %1714 = vadd.xlane.f32.xlu1 %v1713_v56 }
 0x4cd   : > { %v1662_v58 = vpop.xlane.xlu0 %1661 }
 0x4ce   : > { %v1680_v59 = vsub.f32 %v1647_v17, %v1662_v58 }
 0x4d0   : > { %v1690_v60 = vmul.f32 1.442695, %v1680_v59 }
 0x4d1   : > { %v1665_v61 = vpop.xlane.xlu0 %1664 }
 0x4d2   : > { %4739 = vpow2.f32 %v1690_v60  ;;  %v1681_v62 = vsub.f32 %v1648_v22, %v1665_v61  ;;  %v1671_v63 = vpop.xlane.xlu1 %1670 }
 0x4d3   : > { %v1683_v1 = vsub.f32 %v1650_v28, %v1671_v63  ;;  %v4643_v63 = vld [vmem:[%s5380_s14] sm:$0xff]  }
 0x4d4   : > { %v1692_v2 = vmul.f32 1.442695, %v1681_v62 }
 0x4d5   : > { %v1696_v3 = vmul.f32 1.442695, %v1683_v1  ;;  %v1668_v5 = vpop.xlane.xlu0 %1667 }
 0x4d6   : > { %4741 = vpow2.f32 %v1692_v2  ;;  %v1682_v6 = vsub.f32 %v1649_v32, %v1668_v5  ;;  %v4644_v2 = vld [vmem:[%s5380_s14 + $0x8] sm:$0xff]  }
 0x4d7   : > { %4743 = vpow2.f32 %v1696_v3  ;;  %v1677_v25 = vpop.xlane.xlu1 %1676 }
 0x4d8   : > { %v1694_v48 = vmul.f32 1.442695, %v1682_v6  ;;  %v1685_v0 = vsub.f32 %v5570_v37, %v1677_v25 }
 0x4d9   : > { %v1674_v7 = vpop.xlane.xlu0 %1673 }
 0x4da   : > { %4745 = vpow2.f32 %v1694_v48  ;;  %v1684_v51 = vsub.f32 %v1651_v39, %v1674_v7  ;;  %v1700_v34 = vmul.f32 1.442695, %v1685_v0 }
 0x4dc   : > { %v4740_v8 = vpop.eup %4739  ;;  %v1698_v9 = vmul.f32 1.442695, %v1684_v51 }
 0x4dd   : > { %v5585_v10 = vsel %vm5542_vm2, %v4740_v8, 0.0 }
 0x4de   : > { %4747 = vpow2.f32 %v1698_v9  ;;  %v1716_v11 = vsel %vm1653_vm3, %v5585_v10, 0.0 }
 0x4df   : > { %1717 = vadd.xlane.f32.xlu0 %v1716_v11  ;;  %v4645_v11 = vld [vmem:[%s5380_s14 + $0x10] sm:$0xff]  }
 0x4e0   : > { %v4742_v13 = vpop.eup %4741 }
 0x4e1   : > { %v4744_v14 = vpop.eup %4743  ;;  %v1705_v15 = vsel %vm5546_vm4, %v4742_v13, 0.0 }
 0x4e2   : > { %v1719_v16 = vsel %vm1653_vm3, %v1705_v15, 0.0  ;;  %v1707_v17 = vsel %vm5546_vm4, %v4744_v14, 0.0  ;;  %v4647_v14 = vld [vmem:[%s5380_s14 + $0x18] sm:$0xff]  }
 0x4e3   : > { %1720 = vadd.xlane.f32.xlu1 %v1719_v16  ;;  %v1725_v21 = vsel %vm1653_vm3, %v1707_v17, 0.0 }
 0x4e4   : > { %v4746_v18 = vpop.eup %4745 }
 0x4e5   : > { %v1706_v19 = vsel %vm5542_vm2, %v4746_v18, 0.0  ;;  %v4646_v18 = vld [vmem:[%s5380_s14 + $0x20] sm:$0xff]  }
 0x4e6   : > { %v1722_v20 = vsel %vm1653_vm3, %v1706_v19, 0.0 }
 0x4e7   : > { %1723 = vadd.xlane.f32.xlu0 %v1722_v20  ;;  %1726 = vadd.xlane.f32.xlu1 %v1725_v21  ;;  %v4648_v21 = vld [vmem:[%s5380_s14 + $0x28] sm:$0xff]  }
 0x4e8   : > { %v4748_v22 = vpop.eup %4747 }
 0x4e9   : > { %v5600_v23 = vsel %vm5542_vm2, %v4748_v22, 0.0 }
 0x4ea   : > { %v1728_v24 = vsel %vm1653_vm3, %v5600_v23, 0.0 }
 0x4eb   : > { %1729 = vadd.xlane.f32.xlu0 %v1728_v24 }
 0x4f5   : > { %v1712_v26 = vpop.xlane.xlu0 %1711 }
 0x4f6   : > { %4749 = vrcp.f32 %v1712_v26 }
 0x4f7   : > { %v1715_v28 = vpop.xlane.xlu1 %1714 }
 0x4f8   : > { %4751 = vrcp.f32 %v1715_v28  ;;  %4557 = vrot.lane.b32.xlu1 %v5511_v27, %s5013_s20  ;;  %v4649_v28 = vld [vmem:[%s5380_s14 + $0x30] sm:$0xff]  }
 0x4f9   : > { %4753 = vpow2.f32 %v1700_v34 }
 0x500   : > { %v4750_v29 = vpop.eup %4749 }
 0x501   : > { %4552 = vrot.lane.b32.xlu0 %v5511_v27, %s5012_s0  ;;  %v1742_v31 = vmul.f32 %v4750_v29, %v1702_v50 }
 0x502   : > { %v4752_v30 = vpop.eup %4751 }
 0x503   : > { %v1743_v32 = vmul.f32 %v4752_v30, %v1703_v55  ;;  %v4754_v35 = vpop.eup %4753 }
 0x504   : > { %v1709_v36 = vsel %vm5546_vm4, %v4754_v35, 0.0 }
 0x505   : > { %v1750_v33 = vpack.c.bf16 %v1743_v32, %v1742_v31  ;;  %v1731_v39 = vsel %vm1653_vm3, %v1709_v36, 0.0 }
 0x507   : > { %4274 = vmatmul.mubr.msk.bf16.vlgmr.msra.gmra.mrb[12].mxu0 %vm1653_vm3, %v1750_v33  ;;  %v4650_v33 = vld [vmem:[%s5380_s14 + $0x38] sm:$0xff]   ;;  %s6022_s14 = scalar_lea.vmem [#allocation2], %s5327_s18 }
 0x508   : > { %4285 = vmatprep.mubr.msk.bf16.mxu0 %vm5011_vm0, %v5009_v12 }
 0x51c   : > { %1732 = vadd.xlane.f32.xlu1 %v1731_v39 }
 0x52d   : > { %4562 = vrot.lane.b32.xlu1 %v5511_v27, %s5014_s23 }
 0x56c   : > { %v1718_v37 = vpop.xlane.xlu0 %1717 }
 0x570   : > { %v1721_v40 = vpop.xlane.xlu1 %1720 }
 0x571   : > { %4755 = vrcp.f32 %v1721_v40 }
 0x572   : > { %4757 = vrcp.f32 %v1718_v37 }
 0x574   : > { %v1724_v41 = vpop.xlane.xlu0 %1723  ;;  %v1727_v42 = vpop.xlane.xlu1 %1726 }
 0x575   : > { %4759 = vrcp.f32 %v1724_v41 }
 0x576   : > { %4761 = vrcp.f32 %v1727_v42 }
 0x578   : > { %v1730_v43 = vpop.xlane.xlu0 %1729  ;;  %v4558_v44 = vpop.permute.xlu1 %4557 }
 0x579   : > { %v4560_v45 = vunpack.i.h.bf16 %v4558_v44  ;;  %v4559_v46 = vunpack.i.l.bf16 %v4558_v44  ;;  %4763 = vrcp.f32 %v1730_v43 }
 0x57b   : > { %v4756_v4 = vpop.eup %4755  ;;  %v1756_v47 = vpack.c.bf16 %v4560_v45, %v4559_v46 }
 0x57c   : > { %v4553_v49 = vpop.permute.xlu0 %4552  ;;  %v4758_v50 = vpop.eup %4757  ;;  %v1745_v27 = vmul.f32 %v4756_v4, %v1705_v15 }
 0x57d   : > { %v4555_v53 = vunpack.i.h.bf16 %v4553_v49  ;;  %v4554_v54 = vunpack.i.l.bf16 %v4553_v49  ;;  %4284 = vmatpush3.bf16.msra.mxu0 %v1756_v47  ;;  %v1744_v59 = vmul.f32 %v4758_v50, %v5585_v10 }
 0x57e   : > { %4295 = vmatprep.subr.bf16.mxu0 %v5009_v12 }
 0x57f   : > { %v4760_v55 = vpop.eup %4759  ;;  %v1755_v56 = vpack.c.bf16 %v4555_v53, %v4554_v54  ;;  %v1751_v62 = vpack.c.bf16 %v1745_v27, %v1744_v59 }
 0x580   : > { %v4762_v58 = vpop.eup %4761  ;;  %v1746_v60 = vmul.f32 %v4760_v55, %v1706_v19 }
 0x581   : > { %v1747_v61 = vmul.f32 %v4762_v58, %v1707_v17  ;;  %4278 = vmatpush3.bf16.msra.mxu1 %v1755_v56  ;;  %v4040_v58 = vld [vmem:[%s6022_s14] ss:$0 sm:$0xff] }
 0x582   : > { %4289 = vmatprep.subr.bf16.mxu1 %v5009_v12 }
 0x583   : > { %v1752_v1 = vpack.c.bf16 %v1747_v61, %v1746_v60  ;;  %v4764_v51 = vpop.eup %4763 }
 0x584   : > { %4280 = vmatmul.mubr.msk.bf16.vlgmr.msra.gmra.mrb[12].mxu1 %vm1653_vm3, %v1751_v62  ;;  %v1748_v9 = vmul.f32 %v4764_v51, %v5600_v23  ;;  %v4651_v51 = vld [vmem:[%s5398_s7] ss:$8 sps:$4 sm:$0xff]  }
 0x585   : > { %4286 = vmatmul.mubr.msk.bf16.vlgmr.msra.gmra.mrb[16].mxu0 %vm1653_vm3, %v1752_v1  ;;  %4291 = vmatprep.mubr.msk.bf16.mxu1 %vm5011_vm0, %v5009_v12 }
 0x586   : > { %4296 = vmatpush3.bf16.msra.mxu0 %v4643_v63  ;;  %4299 = vmatprep.mubr.msk.bf16.mxu0 %vm5011_vm0, %v5009_v12 }
 0x587   : > { %4297 = vmatprep.subr.bf16.mxu0 %v5009_v12 }
 0x58a   : > { %4298 = vmatpush3.bf16.msra.mxu0 %v4644_v2 }
 0x58b   : > { %4311 = vmatprep.subr.bf16.mxu0 %v5009_v12 }
 0x5a9   : > { %v1733_v3 = vpop.xlane.xlu1 %1732 }
 0x5aa   : > { %4765 = vrcp.f32 %v1733_v3 }
 0x5ad   : > { %v4563_v5 = vpop.permute.xlu1 %4562 }
 0x5ae   : > { %v4565_v6 = vunpack.i.h.bf16 %v4563_v5  ;;  %v4564_v48 = vunpack.i.l.bf16 %v4563_v5  ;;  %v4807_v5 = vld [vmem:[%s5426_s15] sm:$0xff] }
 0x5b0   : > { %v1757_v7 = vpack.c.bf16 %v4565_v6, %v4564_v48  ;;  %v4808_v48 = vld [vmem:[%s5426_s15 + $0x8] sm:$0xff] }
 0x5b2   : > { %4290 = vmatpush3.bf16.msra.mxu1 %v1757_v7 }
 0x5b3   : > { %4303 = vmatprep.subr.bf16.mxu1 %v5009_v12 }
 0x5b4   : > { %v4766_v8 = vpop.eup %4765 }
 0x5b5   : > { %v1749_v10 = vmul.f32 %v4766_v8, %v1709_v36  ;;  %v4653_v8 = vld [vmem:[%s5398_s7 + $0x4] ss:$8 sps:$4 sm:$0xff]  }
 0x5b7   : > { %v1753_v13 = vpack.c.bf16 %v1749_v10, %v1748_v9  ;;  %v4656_v9 = vld [vmem:[%s5398_s7 + $0x14] ss:$8 sps:$4 sm:$0xff]   ;;  %v4660_v10 = vld [vmem:[%s6023_s10] sm:$0xff]  }
 0x5b9   : > { %4292 = vmatmul.mubr.msk.bf16.vlgmr.msra.gmra.mrb[16].mxu1 %vm1653_vm3, %v1753_v13  ;;  %v4659_v13 = vld [vmem:[%s5398_s7 + $0x24] ss:$8 sps:$4 sm:$0xff]  }
 0x5ba   : > { %4304 = vmatpush3.bf16.msra.mxu1 %v4645_v11  ;;  %4307 = vmatprep.mubr.msk.bf16.mxu1 %vm5011_vm0, %v5009_v12  ;;  %v4654_v11 = vld [vmem:[%s5398_s7 + $0x10] ss:$8 sps:$4 sm:$0xff]  }
 0x5bb   : > { %4305 = vmatprep.subr.bf16.mxu1 %v5009_v12 }
 0x5be   : > { %4306 = vmatpush3.bf16.msra.mxu1 %v4647_v14  ;;  %v4657_v14 = vld [vmem:[%s5398_s7 + $0x20] ss:$8 sps:$4 sm:$0xff]  }
 0x5bf   : > { %4319 = vmatprep.subr.bf16.mxu1 %v5009_v12 }
 0x5da   : > { %v1795_v15 = vpop.f32.mrb[12].mxu0 }
 0x5db   : > { %v4275_v16 = vpop.f32.mrb[13].mxu0 }
 0x5dc   : > { %v1798_v17 = vpop.f32.mrb[14].mxu0  ;;  %v4661_v16 = vld [vmem:[%s5398_s7 + $0x30] ss:$8 sps:$4 sm:$0xff]  }
 0x5dd   : > { %v1934_v19 = vpack.c.bf16 %v1798_v17, %v1795_v15  ;;  %v4276_v20 = vpop.f32.mrb[15].mxu0  ;;  %v4663_v15 = vld [vmem:[%s5398_s7 + $0x34] ss:$8 sps:$4 sm:$0xff]  }
 0x5df   : > { %4300 = vmatmul.mubr.msk.bf16.vlgmr.msra.gmra.mrb[20].mxu0 %vm1437_vm1, %v1934_v19 }
 0x5e0   : > { %4312 = vmatpush3.bf16.msra.mxu0 %v4646_v18  ;;  %4315 = vmatprep.mubr.msk.bf16.mxu0 %vm5011_vm0, %v5009_v12 }
 0x5e1   : > { %4313 = vmatprep.subr.bf16.mxu0 %v5009_v12 }
 0x5e4   : > { %4314 = vmatpush3.bf16.msra.mxu0 %v4648_v21 }
 0x5e5   : > { %4327 = vmatprep.subr.bf16.mxu0 %v5009_v12 }
 0x657   : > { %v1839_v22 = vpop.f32.mrb[12].mxu1 }
 0x658   : > { %v1883_v23 = vpop.f32.mrb[16].mxu0  ;;  %v4281_v24 = vpop.f32.mrb[13].mxu1 }
 0x659   : > { %v4287_v25 = vpop.f32.mrb[17].mxu0  ;;  %v1842_v26 = vpop.f32.mrb[14].mxu1 }
 0x65a   : > { %v1935_v29 = vpack.c.bf16 %v1842_v26, %v1839_v22  ;;  %v1886_v30 = vpop.f32.mrb[18].mxu0  ;;  %v4282_v0 = vpop.f32.mrb[15].mxu1  ;;  %v4664_v25 = vld [vmem:[%s6023_s10 + $0x8] sm:$0xff]  }
 0x65b   : > { %v1936_v31 = vpack.c.bf16 %v1886_v30, %v1883_v23  ;;  %v4288_v32 = vpop.f32.mrb[19].mxu0  ;;  %v4667_v26 = vld [vmem:[%s5398_s7 + $0x44] ss:$8 sps:$4 sm:$0xff]   ;;  %v4671_v30 = vld [vmem:[%s5398_s7 + $0x54] ss:$8 sps:$4 sm:$0xff]  }
 0x65c   : > { %4308 = vmatmul.mubr.msk.bf16.vlgmr.msra.gmra.mrb[20].mxu1 %vm1437_vm1, %v1935_v29  ;;  %v4668_v29 = vld [vmem:[%s6023_s10 + $0x10] sm:$0xff]   ;;  %v4675_v32 = vld [vmem:[%s5398_s7 + $0x64] ss:$8 sps:$4 sm:$0xff]  }
 0x65d   : > { %4316 = vmatmul.mubr.msk.bf16.vlgmr.msra.gmra.mrb[24].mxu0 %vm1437_vm1, %v1936_v31  ;;  %4320 = vmatpush3.bf16.msra.mxu1 %v4649_v28  ;;  %v4665_v28 = vld [vmem:[%s5398_s7 + $0x40] ss:$8 sps:$4 sm:$0xff]   ;;  %v4669_v0 = vld [vmem:[%s5398_s7 + $0x50] ss:$8 sps:$4 sm:$0xff]  }
 0x65e   : > { %4321 = vmatprep.subr.bf16.mxu1 %v5009_v12  ;;  %4323 = vmatprep.mubr.msk.bf16.mxu1 %vm5011_vm0, %v5009_v12  ;;  %v4672_v31 = vld [vmem:[%s6023_s10 + $0x18] sm:$0xff]  }
 0x65f   : > { %4343 = vmatprep.mubr.msk.bf16.mxu0 %vm5011_vm0, %v5009_v12  ;;  %4328 = vmatpush3.bf16.msra.mxu0 %v4660_v10 }
 0x660   : > { %4329 = vmatprep.subr.bf16.mxu0 %v5009_v12 }
 0x661   : > { %4322 = vmatpush3.bf16.msra.mxu1 %v4650_v33  ;;  %v4673_v33 = vld [vmem:[%s5398_s7 + $0x60] ss:$8 sps:$4 sm:$0xff]  }
 0x662   : > { %2437 = vmatprep.subr.bf16.mxu1 %v4653_v8 }
 0x663   : > { %4330 = vmatpush3.bf16.msra.mxu0 %v4664_v25 }
 0x664   : > { %4331 = vmatprep.subr.bf16.mxu0 %v5009_v12 }
 0x667   : > { %4332 = vmatpush3.bf16.msra.mxu0 %v4668_v29 }
 0x668   : > { %4333 = vmatprep.subr.bf16.mxu0 %v5009_v12 }
 0x66b   : > { %4334 = vmatpush3.bf16.msra.mxu0 %v4672_v31 }
 0x66c   : > { %4335 = vmatprep.subr.bf16.mxu0 %v5009_v12 }
 0x68c   : > { %v1927_v34 = vpop.f32.mrb[16].mxu1 }
 0x68d   : > { %v4293_v35 = vpop.f32.mrb[17].mxu1 }
 0x68e   : > { %v1930_v36 = vpop.f32.mrb[18].mxu1  ;;  %v4679_v35 = vld [vmem:[%s5398_s7 + $0x74] ss:$8 sps:$4 sm:$0xff]  }
 0x68f   : > { %v1937_v39 = vpack.c.bf16 %v1930_v36, %v1927_v34  ;;  %v4294_v37 = vpop.f32.mrb[19].mxu1  ;;  %v4676_v34 = vld [vmem:[%s6023_s10 + $0x20] sm:$0xff]   ;;  %v4677_v36 = vld [vmem:[%s5398_s7 + $0x70] ss:$8 sps:$4 sm:$0xff]  }
 0x690   : > { %4336 = vmatpush3.bf16.msra.mxu0 %v4676_v34  ;;  %v2326_v37 = vld [vmem:[%s6024_s13] sm:$0xff] }
 0x691   : > { %4324 = vmatmul.mubr.msk.bf16.vlgmr.msra.gmra.mrb[24].mxu1 %vm1437_vm1, %v1937_v39  ;;  %4337 = vmatprep.subr.bf16.mxu0 %v5009_v12  ;;  %v4680_v39 = vld [vmem:[%s6023_s10 + $0x28] sm:$0xff]  }
 0x692   : > { %2469 = vmatprep.mubr.bf16.mxu1 %v5010_v38  ;;  %2438 = vmatpush1.bf16.msra.mxu1 %v4651_v51 }
 0x693   : > { %2439 = vmatprep.subr.bf16.mxu1 %v4656_v9 }
 0x694   : > { %4338 = vmatpush3.bf16.msra.mxu0 %v4680_v39 }
 0x695   : > { %4339 = vmatprep.subr.bf16.mxu0 %v5009_v12 }
 0x696   : > { %2440 = vmatpush1.bf16.msra.mxu1 %v4654_v11 }
 0x697   : > { %2441 = vmatprep.subr.bf16.mxu1 %v4659_v13 }
 0x69a   : > { %2442 = vmatpush1.bf16.msra.mxu1 %v4657_v14 }
 0x69b   : > { %2443 = vmatprep.subr.bf16.mxu1 %v4663_v15 }
 0x69e   : > { %2444 = vmatpush1.bf16.msra.mxu1 %v4661_v16 }
 0x69f   : > { %2445 = vmatprep.subr.bf16.mxu1 %v4667_v26 }
 0x6a2   : > { %2446 = vmatpush1.bf16.msra.mxu1 %v4665_v28  ;;  %v4041_v28 = vld [vmem:[%s6029_s8] ss:$0 sm:$0xff] }
 0x6a3   : > { %2447 = vmatprep.subr.bf16.mxu1 %v4671_v30 }
 0x6a6   : > { %2448 = vmatpush1.bf16.msra.mxu1 %v4669_v0 }
 0x6a7   : > { %2449 = vmatprep.subr.bf16.mxu1 %v4675_v32 }
 0x6aa   : > { %2450 = vmatpush1.bf16.msra.mxu1 %v4673_v33 }
 0x6ab   : > { %2451 = vmatprep.subr.bf16.mxu1 %v4679_v35 }
 0x6ae   : > { %2452 = vmatpush1.bf16.msra.mxu1 %v4677_v36 }
 0x6af   : > { %4353 = vmatprep.subr.bf16.mxu1 %v5009_v12 }
 0x6b2   : > { %v1987_v40 = vpop.f32.mrb[20].mxu0 }
 0x6b3   : > { %v4301_v41 = vpop.f32.mrb[21].mxu0 }
 0x6b4   : > { %v1990_v42 = vpop.f32.mrb[22].mxu0 }
 0x6b5   : > { %v4302_v43 = vpop.f32.mrb[23].mxu0 }
 0x6b6   : > { %v4682_v43 = vld [vmem:[%s6023_s10 + $0x38] sm:$0xff]  }
 0x72f   : > { %v2043_v44 = vpop.f32.mrb[20].mxu1 }
 0x730   : > { %v2162_v45 = vadd.f32 %v2043_v44, %v1987_v40  ;;  %v2099_v46 = vpop.f32.mrb[24].mxu0  ;;  %v4309_v4 = vpop.f32.mrb[21].mxu1  ;;  %v2327_v40 = vld [vmem:[%s6024_s13 + $0x8] sm:$0xff] }
 0x731   : > { %v4317_v47 = vpop.f32.mrb[25].mxu0  ;;  %v2046_v49 = vpop.f32.mrb[22].mxu1  ;;  %v2345_v41 = vpack.c.bf16 %v2327_v40, %v2326_v37 }
 0x732   : > { %v2163_v50 = vadd.f32 %v2162_v45, %v2099_v46  ;;  %v2165_v53 = vadd.f32 %v2046_v49, %v1990_v42  ;;  %v2102_v54 = vpop.f32.mrb[26].mxu0  ;;  %v4310_v27 = vpop.f32.mrb[23].mxu1  ;;  %v4681_v42 = vld [vmem:[%s6023_s10 + $0x30] sm:$0xff]  }
 0x733   : > { %v4318_v55 = vpop.f32.mrb[27].mxu0  ;;  %2470 = vmatmul.mubr.bf16.vlgmr.msra.gmra.mrb[28].mxu1 %v2345_v41  ;;  %4340 = vmatpush3.bf16.msra.mxu0 %v4681_v42 }
 0x734   : > { %v2166_v56 = vadd.f32 %v2165_v53, %v2102_v54  ;;  %4355 = vmatprep.mubr.msk.bf16.mxu1 %vm5011_vm0, %v5009_v12  ;;  %4341 = vmatprep.subr.bf16.mxu0 %v5009_v12 }
 0x737   : > { %4342 = vmatpush3.bf16.msra.mxu0 %v4682_v43 }
 0x738   : > { %4347 = vmatprep.subr.bf16.mxu0 %v5009_v12 }
 0x764   : > { %v2155_v59 = vpop.f32.mrb[24].mxu1 }
 0x765   : > { %v2164_v60 = vadd.f32 %v2163_v50, %v2155_v59  ;;  %v4325_v61 = vpop.f32.mrb[25].mxu1  ;;  %v2178_v50 = vld [vmem:[%s6026_s22] sm:$0x3] }
 0x766   : > { %v2158_v62 = vpop.f32.mrb[26].mxu1  ;;  %v2204_v27 = vrot.slane %v2178_v50, %v5488_v52  ;;  %v2210_v59 = vrot.slane %v2178_v50, %v5498_v57 }
 0x767   : > { %v2174_v63 = vadd.f32 %v4040_v58, %v2164_v60  ;;  %v2167_v1 = vadd.f32 %v2166_v56, %v2158_v62  ;;  %v4326_v2 = vpop.f32.mrb[27].mxu1 }
 0x769   : > { %v2175_v3 = vadd.f32 %v4040_v58, %v2167_v1  ;;  %v5660_v6 = vadd.f32 %v4807_v5, %v2174_v63  ;;  %v2344_v1 = vld [vmem:[%s6028_s1] sm:$0x3] }
 0x76a   : > { %v2350_v2 = vrot.slane %v2344_v1, %v5488_v52 }
 0x76b   : > { %2179 = vadd.xlane.f32.xlu1 %v5660_v6  ;;  %v5664_v7 = vadd.f32 %v4808_v48, %v2175_v3  ;;  %v2354_v3 = vrot.slane %v2344_v1, %v5498_v57 }
 0x76d   : > { %2181 = vadd.xlane.f32.xlu0 %v5664_v7 }
 0x7f8   : > { %v2180_v17 = vpop.xlane.xlu1 %2179 }
 0x7f9   : > { %v2183_v18 = vmul.f32 0.0078125, %v2180_v17 }
 0x7fa   : > { %v2182_v19 = vpop.xlane.xlu0 %2181 }
 0x7fb   : > { %v2185_v20 = vsub.f32 %v5660_v6, %v2183_v18  ;;  %v2184_v21 = vmul.f32 0.0078125, %v2182_v19 }
 0x7fd   : > { %v2186_v22 = vsub.f32 %v5664_v7, %v2184_v21  ;;  %v2187_v23 = vmul.f32 %v2185_v20, %v2185_v20 }
 0x7ff   : > { %2189 = vadd.xlane.f32.xlu0 %v2187_v23  ;;  %v2188_v24 = vmul.f32 %v2186_v22, %v2186_v22 }
 0x803   : > { %2191 = vadd.xlane.f32.xlu0 %v2188_v24 }
 0x806   : > { %v2471_v5 = vpop.f32.mrb[28].mxu1 }
 0x807   : > { %v2472_v48 = vadd.f32 %v2471_v5, %v2350_v2  ;;  %v2473_v51 = vpop.f32.mrb[29].mxu1 }
 0x808   : > { %v5722_v8 = vadd.f32 %v2473_v51, %v2354_v3  ;;  %v2475_v9 = vpop.f32.mrb[30].mxu1 }
 0x809   : > { %v2476_v10 = vadd.f32 %v2475_v9, %v2350_v2  ;;  %v2477_v11 = vpop.f32.mrb[31].mxu1 }
 0x80a   : > { %v2478_v13 = vadd.f32 %v2477_v11, %v2354_v3 }
 0x80b   : > { %v4566_v14 = vpack.i.bf16 %v2476_v10, %v2472_v48  ;;  %v2544_v15 = vpack.c.bf16 %v2476_v10, %v2472_v48 }
 0x80c   : > { %v2836_v16 = vpack.c.bf16 %v2478_v13, %v5722_v8  ;;  %v5726_v17 = vpack.i.bf16 %v2478_v13, %v5722_v8 }
 0x80d   : > { %4567 = vrot.lane.b32.xlu1 %v4566_v14, %s5012_s0  ;;  %v2552_v18 = vsel %vm1437_vm1, %v2544_v15, 0 }
 0x819   : > { %4572 = vrot.lane.b32.xlu0 %v4566_v14, %s5013_s20 }
 0x87f   : > { %v4568_v19 = vpop.permute.xlu1 %4567 }
 0x880   : > { %v4569_v21 = vunpack.i.l.bf16 %v4568_v19 }
 0x88c   : > { %v2190_v44 = vpop.xlane.xlu0 %2189 }
 0x88d   : > { %v2193_v45 = vmul.f32 0.0078125, %v2190_v44 }
 0x88f   : > { %v2195_v46 = vadd.f32 1e-05, %v2193_v45 }
 0x890   : > { %v2192_v4 = vpop.xlane.xlu0 %2191 }
 0x891   : > { %4767 = vrsqrt.f32 %v2195_v46  ;;  %v2194_v47 = vmul.f32 0.0078125, %v2192_v4 }
 0x893   : > { %v2196_v49 = vadd.f32 1e-05, %v2194_v47 }
 0x894   : > { %v4573_v24 = vpop.permute.xlu0 %4572 }
 0x895   : > { %4769 = vrsqrt.f32 %v2196_v49  ;;  %v4575_v25 = vunpack.i.h.bf16 %v4573_v24  ;;  %v4574_v26 = vunpack.i.l.bf16 %v4573_v24 }
 0x897   : > { %v2546_v31 = vpack.c.bf16 %v4575_v25, %v4574_v26 }
 0x899   : > { %v2646_v39 = vsel %vm1437_vm1, %v2546_v31, 0 }
 0x89b   : > { %v4768_v53 = vpop.eup %4767 }
 0x89c   : > { %v2199_v54 = vmul.f32 %v4768_v53, %v2185_v20  ;;  %v4570_v20 = vunpack.i.h.bf16 %v4568_v19 }
 0x89e   : > { %v2205_v58 = vmul.f32 %v2204_v27, %v2199_v54 }
 0x89f   : > { %v4770_v55 = vpop.eup %4769 }
 0x8a0   : > { %v2200_v56 = vmul.f32 %v4770_v55, %v2186_v22  ;;  %v2211_v61 = vadd.f32 %v2210_v59, %v2205_v58  ;;  %v2545_v22 = vpack.c.bf16 %v4570_v20, %v4569_v21 }
 0x8a2   : > { %v2206_v60 = vmul.f32 %v2204_v27, %v2200_v56  ;;  %v2599_v23 = vsel %vm1437_vm1, %v2545_v22, 0 }
 0x8a3   : > { %4354 = vmatpush3.bf16.xpose.msra.mxu1 %v2599_v23 }
 0x8a4   : > { %v2212_v62 = vadd.f32 %v2210_v59, %v2206_v60  ;;  %4365 = vmatprep.subr.bf16.mxu1 %v5009_v12 }
 0x8a6   : > { %v2230_v63 = vpack.c.bf16 %v2212_v62, %v2211_v61 }
 0x8a8   : > { %4344 = vmatmul.mubr.bf16.vlgmr.msra.gmra.mrb[28].mxu0 %v2230_v63 }
 0x8a9   : > { %4349 = vmatprep.mubr.msk.bf16.mxu0 %vm5011_vm0, %v5009_v12  ;;  %4348 = vmatpush3.bf16.xpose.msra.mxu0 %v2552_v18 }
 0x8aa   : > { %4359 = vmatprep.subr.bf16.mxu0 %v5009_v12 }
 0x97b   : > { %v2319_v29 = vpop.f32.mrb[28].mxu0 }
 0x97c   : > { %v4345_v30 = vpop.f32.mrb[29].mxu0  ;;  %v2320_v32 = vadd.f32 %v4041_v28, %v2319_v29 }
 0x97d   : > { %v2322_v0 = vpop.f32.mrb[30].mxu0 }
 0x97e   : > { %v2323_v33 = vadd.f32 %v4041_v28, %v2322_v0  ;;  %v4346_v34 = vpop.f32.mrb[31].mxu0 }
 0x980   : > { %v2540_v35 = vpack.c.bf16 %v2323_v33, %v2320_v32  ;;  %v4591_v36 = vpack.i.bf16 %v2323_v33, %v2320_v32 }
 0x982   : > { %4592 = vrot.lane.b32.xlu0 %v4591_v36, %s5014_s23  ;;  %4577 = vrot.lane.b32.xlu1 %v4591_v36, %s5012_s0 }
 0x983   : > { %4350 = vmatmul.mubr.msk.bf16.vlgmr.msra.gmra.mrb[32].mxu0 %vm1437_vm1, %v2540_v35 }
 0x984   : > { %4360 = vmatpush3.bf16.xpose.msra.mxu0 %v2646_v39  ;;  %4361 = vmatprep.mubr.msk.bf16.mxu0 %vm5011_vm0, %v5009_v12 }
 0x985   : > { %4371 = vmatprep.subr.bf16.mxu0 %v5009_v12 }
 0x986   : > { %4582 = vrot.lane.b32.xlu1 %v4566_v14, %s5014_s23 }
 0x98a   : > { %4587 = vrot.lane.b32.xlu1 %v4591_v36, %s5013_s20 }
 0x9f4   : > { %v4578_v37 = vpop.permute.xlu1 %4577  ;;  %v4593_v4 = vpop.permute.xlu0 %4592 }
 0x9f5   : > { %v4580_v40 = vunpack.i.h.bf16 %v4578_v37  ;;  %v4579_v41 = vunpack.i.l.bf16 %v4578_v37  ;;  %v4595_v54 = vunpack.i.h.bf16 %v4593_v4  ;;  %v4594_v27 = vunpack.i.l.bf16 %v4593_v4 }
 0x9f7   : > { %v2541_v42 = vpack.c.bf16 %v4580_v40, %v4579_v41  ;;  %v2543_v56 = vpack.c.bf16 %v4595_v54, %v4594_v27 }
 0x9f8   : > { %v4583_v43 = vpop.permute.xlu1 %4582 }
 0x9f9   : > { %v4585_v44 = vunpack.i.h.bf16 %v4583_v43  ;;  %v4584_v45 = vunpack.i.l.bf16 %v4583_v43  ;;  %4356 = vmatmul.mubr.msk.bf16.vlgmr.msra.gmra.mrb[32].mxu1 %vm1437_vm1, %v2541_v42 }
 0x9fa   : > { %4367 = vmatprep.mubr.msk.bf16.mxu1 %vm5011_vm0, %v5009_v12 }
 0x9fb   : > { %v2547_v46 = vpack.c.bf16 %v4585_v44, %v4584_v45 }
 0x9fc   : > { %v4588_v47 = vpop.permute.xlu1 %4587 }
 0x9fd   : > { %v4590_v49 = vunpack.i.h.bf16 %v4588_v47  ;;  %v4589_v50 = vunpack.i.l.bf16 %v4588_v47  ;;  %v2693_v53 = vsel %vm1437_vm1, %v2547_v46, 0 }
 0x9fe   : > { %4366 = vmatpush3.bf16.xpose.msra.mxu1 %v2693_v53 }
 0x9ff   : > { %v2542_v55 = vpack.c.bf16 %v4590_v49, %v4589_v50  ;;  %4377 = vmatprep.subr.bf16.mxu1 %v5009_v12 }
 0xa01   : > { %4362 = vmatmul.mubr.msk.bf16.vlgmr.msra.gmra.mrb[36].mxu0 %vm1437_vm1, %v2542_v55 }
 0xa02   : > { %4372 = vmatpush3.bf16.msra.mxu0 %v2836_v16  ;;  %4373 = vmatprep.mubr.msk.bf16.mxu0 %vm5011_vm0, %v5009_v12 }
 0xa03   : > { %4383 = vmatprep.subr.bf16.mxu0 %v5009_v12 }
 0xa05   : > { %4368 = vmatmul.mubr.msk.bf16.vlgmr.msra.gmra.mrb[36].mxu1 %vm1437_vm1, %v2543_v56 }
 0xa06   : > { %4379 = vmatprep.mubr.msk.bf16.mxu1 %vm5011_vm0, %v5009_v12 }
 0xa56   : > { %v2588_v58 = vpop.f32.mrb[32].mxu0 }
 0xa57   : > { %v2736_v59 = vmul.f32 0.17677669, %v2588_v58  ;;  %v4351_v60 = vpop.f32.mrb[33].mxu0 }
 0xa58   : > { %v2591_v61 = vpop.f32.mrb[34].mxu0 }
 0xa59   : > { %v2737_v62 = vmul.f32 0.17677669, %v2591_v61  ;;  %v4352_v63 = vpop.f32.mrb[35].mxu0  ;;  %v2744_v1 = vsel %vm1653_vm3, %v2736_v59, -inf }
 0xa5a   : > { %2745 = vmax.xlane.f32.xlu1 %v2744_v1 }
 0xa5b   : > { %v2747_v2 = vsel %vm1653_vm3, %v2737_v62, -inf }
 0xa5c   : > { %2748 = vmax.xlane.f32.xlu0 %v2747_v2 }
 0xacc   : > { %v2635_v3 = vpop.f32.mrb[32].mxu1 }
 0xacd   : > { %v2738_v5 = vmul.f32 0.17677669, %v2635_v3  ;;  %v4357_v48 = vpop.f32.mrb[33].mxu1 }
 0xace   : > { %v2638_v51 = vpop.f32.mrb[34].mxu1 }
 0xacf   : > { %v2739_v8 = vmul.f32 0.17677669, %v2638_v51  ;;  %v4358_v9 = vpop.f32.mrb[35].mxu1  ;;  %v2750_v10 = vsel %vm1653_vm3, %v2738_v5, -inf }
 0xad0   : > { %2751 = vmax.xlane.f32.xlu0 %v2750_v10 }
 0xad1   : > { %v2753_v11 = vsel %vm1653_vm3, %v2739_v8, -inf }
 0xad4   : > { %2754 = vmax.xlane.f32.xlu0 %v2753_v11  ;;  %v2682_v13 = vpop.f32.mrb[36].mxu0 }
 0xad5   : > { %v2740_v14 = vmul.f32 0.17677669, %v2682_v13  ;;  %v4363_v15 = vpop.f32.mrb[37].mxu0 }
 0xad6   : > { %v2685_v16 = vpop.f32.mrb[38].mxu0 }
 0xad7   : > { %v2741_v18 = vmul.f32 0.17677669, %v2685_v16  ;;  %v4364_v19 = vpop.f32.mrb[39].mxu0  ;;  %v2756_v20 = vsel %vm1653_vm3, %v2740_v14, -inf }
 0xad8   : > { %v2729_v21 = vpop.f32.mrb[36].mxu1  ;;  %2757 = vmax.xlane.f32.xlu1 %v2756_v20 }
 0xad9   : > { %v2742_v22 = vmul.f32 0.17677669, %v2729_v21  ;;  %v4369_v23 = vpop.f32.mrb[37].mxu1  ;;  %v2759_v24 = vsel %vm1653_vm3, %v2741_v18, -inf }
 0xada   : > { %v2732_v25 = vpop.f32.mrb[38].mxu1  ;;  %2760 = vmax.xlane.f32.xlu0 %v2759_v24 }
 0xadb   : > { %v2743_v26 = vmul.f32 0.17677669, %v2732_v25  ;;  %v4370_v28 = vpop.f32.mrb[39].mxu1  ;;  %v2762_v29 = vsel %vm1653_vm3, %v2742_v22, -inf }
 0xadc   : > { %2763 = vmax.xlane.f32.xlu1 %v2762_v29 }
 0xadd   : > { %v2765_v30 = vsel %vm1653_vm3, %v2743_v26, -inf }
 0xade   : > { %2766 = vmax.xlane.f32.xlu0 %v2765_v30 }
 0xae7   : > { %v2746_v34 = vpop.xlane.xlu1 %2745 }
 0xae8   : > { %v2768_v36 = vsub.f32 %v2736_v59, %v2746_v34 }
 0xae9   : > { %v2749_v0 = vpop.xlane.xlu0 %2748 }
 0xaea   : > { %v2769_v31 = vsub.f32 %v2737_v62, %v2749_v0  ;;  %v2776_v39 = vmul.f32 1.442695, %v2768_v36 }
 0xaec   : > { %v2778_v32 = vmul.f32 1.442695, %v2769_v31 }
 0xaed   : > { %4597 = vrot.lane.b32.xlu1 %v5726_v17, %s5012_s0 }
 0xaee   : > { %4771 = vpow2.f32 %v2778_v32 }
 0xaef   : > { %4773 = vpow2.f32 %v2776_v39 }
 0xaf8   : > { %v5767_v33 = vpop.eup %4771 }
 0xaf9   : > { %v2795_v35 = vsel %vm1653_vm3, %v5767_v33, 0.0  ;;  %v4774_v37 = vpop.eup %4773 }
 0xafa   : > { %2796 = vadd.xlane.f32.xlu0 %v2795_v35  ;;  %v2792_v40 = vsel %vm1653_vm3, %v4774_v37, 0.0 }
 0xb11   : > { %2793 = vadd.xlane.f32.xlu1 %v2792_v40 }
 0xb5d   : > { %v2752_v41 = vpop.xlane.xlu0 %2751 }
 0xb5e   : > { %v2770_v42 = vsub.f32 %v2738_v5, %v2752_v41 }
 0xb60   : > { %v2780_v43 = vmul.f32 1.442695, %v2770_v42 }
 0xb61   : > { %v2755_v44 = vpop.xlane.xlu0 %2754 }
 0xb62   : > { %4775 = vpow2.f32 %v2780_v43  ;;  %v2771_v45 = vsub.f32 %v2739_v8, %v2755_v44 }
 0xb64   : > { %v2782_v46 = vmul.f32 1.442695, %v2771_v45 }
 0xb65   : > { %v2758_v4 = vpop.xlane.xlu1 %2757 }
 0xb66   : > { %4777 = vpow2.f32 %v2782_v46  ;;  %v2772_v47 = vsub.f32 %v2740_v14, %v2758_v4 }
 0xb67   : > { %v2761_v49 = vpop.xlane.xlu0 %2760 }
 0xb68   : > { %v2784_v50 = vmul.f32 1.442695, %v2772_v47  ;;  %v2773_v53 = vsub.f32 %v2741_v18, %v2761_v49  ;;  %v4683_v47 = vld [vmem:[%s5403_s19] sm:$0xff]  }
 0xb69   : > { %v2764_v54 = vpop.xlane.xlu1 %2763 }
 0xb6a   : > { %4779 = vpow2.f32 %v2784_v50  ;;  %v2786_v27 = vmul.f32 1.442695, %v2773_v53  ;;  %v2774_v55 = vsub.f32 %v2742_v22, %v2764_v54 }
 0xb6b   : > { %v2767_v56 = vpop.xlane.xlu0 %2766 }
 0xb6c   : > { %v4776_v58 = vpop.eup %4775  ;;  %4781 = vpow2.f32 %v2786_v27  ;;  %v2788_v59 = vmul.f32 1.442695, %v2774_v55  ;;  %v2775_v60 = vsub.f32 %v2743_v26, %v2767_v56  ;;  %v4684_v27 = vld [vmem:[%s5403_s19 + $0x8] sm:$0xff]   ;;  %v4685_v55 = vld [vmem:[%s5403_s19 + $0x10] sm:$0xff]  }
 0xb6d   : > { %v4598_v61 = vpop.permute.xlu1 %4597  ;;  %v2798_v62 = vsel %vm1653_vm3, %v4776_v58, 0.0 }
 0xb6e   : > { %4783 = vpow2.f32 %v2788_v59  ;;  %v2790_v63 = vmul.f32 1.442695, %v2775_v60  ;;  %v4600_v1 = vunpack.i.h.bf16 %v4598_v61  ;;  %v4599_v2 = vunpack.i.l.bf16 %v4598_v61  ;;  %2799 = vadd.xlane.f32.xlu1 %v2798_v62  ;;  %v4687_v62 = vld [vmem:[%s5403_s19 + $0x20] sm:$0xff]  }
 0xb70   : > { %v4778_v3 = vpop.eup %4777  ;;  %4785 = vpow2.f32 %v2790_v63  ;;  %v2837_v5 = vpack.c.bf16 %v4600_v1, %v4599_v2  ;;  %v4688_v2 = vld [vmem:[%s5403_s19 + $0x28] sm:$0xff]  }
 0xb71   : > { %v2801_v48 = vsel %vm1653_vm3, %v4778_v3, 0.0 }
 0xb72   : > { %4378 = vmatpush3.bf16.msra.mxu1 %v2837_v5  ;;  %2802 = vadd.xlane.f32.xlu0 %v2801_v48 }
 0xb73   : > { %4389 = vmatprep.subr.bf16.mxu1 %v5009_v12 }
 0xb74   : > { %v4780_v51 = vpop.eup %4779 }
 0xb75   : > { %v2804_v8 = vsel %vm1653_vm3, %v4780_v51, 0.0 }
 0xb76   : > { %v4782_v9 = vpop.eup %4781  ;;  %2805 = vadd.xlane.f32.xlu1 %v2804_v8 }
 0xb77   : > { %v2807_v10 = vsel %vm1653_vm3, %v4782_v9, 0.0 }
 0xb78   : > { %v4784_v11 = vpop.eup %4783  ;;  %2808 = vadd.xlane.f32.xlu0 %v2807_v10 }
 0xb79   : > { %v2810_v13 = vsel %vm1653_vm3, %v4784_v11, 0.0 }
 0xb7a   : > { %v4786_v14 = vpop.eup %4785  ;;  %2811 = vadd.xlane.f32.xlu1 %v2810_v13 }
 0xb7b   : > { %v2813_v15 = vsel %vm1653_vm3, %v4786_v14, 0.0 }
 0xb7c   : > { %2814 = vadd.xlane.f32.xlu0 %v2813_v15 }
 0xb87   : > { %v2797_v16 = vpop.xlane.xlu0 %2796 }
 0xb88   : > { %4787 = vrcp.f32 %v2797_v16 }
 0xb8b   : > { %4607 = vrot.lane.b32.xlu1 %v5726_v17, %s5014_s23 }
 0xb92   : > { %4602 = vrot.lane.b32.xlu0 %v5726_v17, %s5013_s20  ;;  %v4788_v19 = vpop.eup %4787 }
 0xb93   : > { %v2825_v21 = vmul.f32 %v4788_v19, %v5767_v33 }
 0xb9e   : > { %v2794_v18 = vpop.xlane.xlu1 %2793 }
 0xb9f   : > { %4789 = vrcp.f32 %v2794_v18 }
 0xba9   : > { %v4790_v20 = vpop.eup %4789 }
 0xbaa   : > { %v2824_v22 = vmul.f32 %v4790_v20, %v4774_v37 }
 0xbac   : > { %v2832_v23 = vpack.c.bf16 %v2825_v21, %v2824_v22 }
 0xbae   : > { %4374 = vmatmul.mubr.msk.bf16.vlgmr.msra.gmra.mrb[40].mxu0 %vm1653_vm3, %v2832_v23 }
 0xbaf   : > { %4385 = vmatprep.mubr.msk.bf16.mxu0 %vm5011_vm0, %v5009_v12 }
 0xbfb   : > { %v2800_v24 = vpop.xlane.xlu1 %2799 }
 0xbfc   : > { %4791 = vrcp.f32 %v2800_v24 }
 0xbff   : > { %v2803_v25 = vpop.xlane.xlu0 %2802 }
 0xc00   : > { %4793 = vrcp.f32 %v2803_v25 }
 0xc03   : > { %v2806_v17 = vpop.xlane.xlu1 %2805 }
 0xc04   : > { %4795 = vrcp.f32 %v2806_v17 }
 0xc05   : > { %v2809_v26 = vpop.xlane.xlu0 %2808 }
 0xc06   : > { %4797 = vrcp.f32 %v2809_v26  ;;  %v4792_v29 = vpop.eup %4791 }
 0xc07   : > { %v2812_v28 = vpop.xlane.xlu1 %2811  ;;  %v2826_v31 = vmul.f32 %v4792_v29, %v4776_v58  ;;  %v4686_v58 = vld [vmem:[%s5403_s19 + $0x18] sm:$0xff]  }
 0xc08   : > { %4799 = vrcp.f32 %v2812_v28 }
 0xc09   : > { %v2815_v30 = vpop.xlane.xlu0 %2814 }
 0xc0a   : > { %v4794_v0 = vpop.eup %4793  ;;  %4801 = vrcp.f32 %v2815_v30 }
 0xc0b   : > { %v2827_v32 = vmul.f32 %v4794_v0, %v4778_v3  ;;  %v4608_v33 = vpop.permute.xlu1 %4607 }
 0xc0c   : > { %v4610_v34 = vunpack.i.h.bf16 %v4608_v33  ;;  %v4609_v35 = vunpack.i.l.bf16 %v4608_v33 }
 0xc0d   : > { %v4603_v36 = vpop.permute.xlu0 %4602  ;;  %v2833_v39 = vpack.c.bf16 %v2827_v32, %v2826_v31 }
 0xc0e   : > { %v4796_v37 = vpop.eup %4795  ;;  %v2839_v40 = vpack.c.bf16 %v4610_v34, %v4609_v35  ;;  %v4605_v41 = vunpack.i.h.bf16 %v4603_v36  ;;  %v4604_v42 = vunpack.i.l.bf16 %v4603_v36 }
 0xc0f   : > { %4380 = vmatmul.mubr.msk.bf16.vlgmr.msra.gmra.mrb[40].mxu1 %vm1653_vm3, %v2833_v39  ;;  %v2828_v45 = vmul.f32 %v4796_v37, %v4780_v51  ;;  %v4689_v51 = vld [vmem:[%s5403_s19 + $0x30] sm:$0xff]  }
 0xc10   : > { %v4798_v43 = vpop.eup %4797  ;;  %v2838_v44 = vpack.c.bf16 %v4605_v41, %v4604_v42  ;;  %4390 = vmatpush3.bf16.msra.mxu1 %v2839_v40  ;;  %4391 = vmatprep.mubr.msk.bf16.mxu1 %vm5011_vm0, %v5009_v12 }
 0xc11   : > { %v2829_v46 = vmul.f32 %v4798_v43, %v4782_v9  ;;  %4403 = vmatprep.subr.bf16.mxu1 %v5009_v12 }
 0xc12   : > { %v4800_v4 = vpop.eup %4799  ;;  %4384 = vmatpush3.bf16.msra.mxu0 %v2838_v44 }
 0xc13   : > { %v2834_v49 = vpack.c.bf16 %v2829_v46, %v2828_v45  ;;  %4395 = vmatprep.subr.bf16.mxu0 %v5009_v12  ;;  %v2830_v53 = vmul.f32 %v4800_v4, %v4784_v11  ;;  %v4690_v11 = vld [vmem:[%s5403_s19 + $0x38] sm:$0xff]   ;;  %s6030_s19 = scalar_lea.vmem [#allocation6], %s5327_s18 }
 0xc14   : > { %v4802_v50 = vpop.eup %4801  ;;  %v4086_v36 = vld [vmem:[%s6030_s19] ss:$0 sm:$0xff] }
 0xc15   : > { %v2831_v54 = vmul.f32 %v4802_v50, %v4786_v14  ;;  %4386 = vmatmul.mubr.msk.bf16.vlgmr.msra.gmra.mrb[44].mxu0 %vm1653_vm3, %v2834_v49  ;;  %v4693_v49 = vld [vmem:[%s5412_s12 + $0x4] ss:$8 sps:$4 sm:$0xff]   ;;  %v4696_v50 = vld [vmem:[%s5412_s12 + $0x14] ss:$8 sps:$4 sm:$0xff]  }
 0xc16   : > { %4396 = vmatpush3.bf16.msra.mxu0 %v4683_v47  ;;  %4399 = vmatprep.mubr.msk.bf16.mxu0 %vm5011_vm0, %v5009_v12  ;;  %v4691_v47 = vld [vmem:[%s5412_s12] ss:$8 sps:$4 sm:$0xff]  }
 0xc17   : > { %v2835_v56 = vpack.c.bf16 %v2831_v54, %v2830_v53  ;;  %4397 = vmatprep.subr.bf16.mxu0 %v5009_v12  ;;  %v4694_v53 = vld [vmem:[%s5412_s12 + $0x10] ss:$8 sps:$4 sm:$0xff]  }
 0xc19   : > { %4392 = vmatmul.mubr.msk.bf16.vlgmr.msra.gmra.mrb[44].mxu1 %vm1653_vm3, %v2835_v56 }
 0xc1a   : > { %4398 = vmatpush3.bf16.msra.mxu0 %v4684_v27  ;;  %4404 = vmatpush3.bf16.msra.mxu1 %v4685_v55 }
 0xc1b   : > { %4405 = vmatprep.subr.bf16.mxu1 %v5009_v12  ;;  %4411 = vmatprep.subr.bf16.mxu0 %v5009_v12 }
 0xc1c   : > { %4407 = vmatprep.mubr.msk.bf16.mxu1 %vm5011_vm0, %v5009_v12 }
 0xc1e   : > { %4406 = vmatpush3.bf16.msra.mxu1 %v4686_v58 }
 0xc1f   : > { %4419 = vmatprep.subr.bf16.mxu1 %v5009_v12 }
 0xc81   : > { %v2877_v59 = vpop.f32.mrb[40].mxu0 }
 0xc82   : > { %v4375_v60 = vpop.f32.mrb[41].mxu0 }
 0xc83   : > { %v2880_v61 = vpop.f32.mrb[42].mxu0  ;;  %v4699_v60 = vld [vmem:[%s5412_s12 + $0x24] ss:$8 sps:$4 sm:$0xff]  }
 0xc84   : > { %v3033_v63 = vpack.c.bf16 %v2880_v61, %v2877_v59  ;;  %v4376_v1 = vpop.f32.mrb[43].mxu0  ;;  %v4697_v61 = vld [vmem:[%s5412_s12 + $0x20] ss:$8 sps:$4 sm:$0xff]  }
 0xc85   : > { %v4705_v1 = vld [vmem:[%s5412_s12 + $0x44] ss:$8 sps:$4 sm:$0xff]  }
 0xc86   : > { %4400 = vmatmul.mubr.msk.bf16.vlgmr.msra.gmra.mrb[48].mxu0 %vm1437_vm1, %v3033_v63  ;;  %v4700_v63 = vld [vmem:[%s5412_s12 + $0x30] ss:$8 sps:$4 sm:$0xff]  }
 0xc87   : > { %4412 = vmatpush3.bf16.msra.mxu0 %v4687_v62  ;;  %4415 = vmatprep.mubr.msk.bf16.mxu0 %vm5011_vm0, %v5009_v12  ;;  %v4702_v62 = vld [vmem:[%s5412_s12 + $0x34] ss:$8 sps:$4 sm:$0xff]  }
 0xc88   : > { %4413 = vmatprep.subr.bf16.mxu0 %v5009_v12 }
 0xc8b   : > { %4414 = vmatpush3.bf16.msra.mxu0 %v4688_v2  ;;  %v4703_v2 = vld [vmem:[%s5412_s12 + $0x40] ss:$8 sps:$4 sm:$0xff]  }
 0xc8c   : > { %3454 = vmatprep.subr.bf16.mxu0 %v4693_v49 }
 0xce2   : > { %v2921_v3 = vpop.f32.mrb[40].mxu1 }
 0xce3   : > { %v4381_v5 = vpop.f32.mrb[41].mxu1 }
 0xce4   : > { %v2924_v48 = vpop.f32.mrb[42].mxu1  ;;  %v4706_v5 = vld [vmem:[%s5412_s12 + $0x50] ss:$8 sps:$4 sm:$0xff]  }
 0xce5   : > { %v3034_v8 = vpack.c.bf16 %v2924_v48, %v2921_v3  ;;  %v4382_v9 = vpop.f32.mrb[43].mxu1  ;;  %v4708_v3 = vld [vmem:[%s5412_s12 + $0x54] ss:$8 sps:$4 sm:$0xff]   ;;  %v4709_v48 = vld [vmem:[%s5412_s12 + $0x60] ss:$8 sps:$4 sm:$0xff]  }
 0xce6   : > { %v4712_v9 = vld [vmem:[%s5412_s12 + $0x70] ss:$8 sps:$4 sm:$0xff]  }
 0xce7   : > { %4408 = vmatmul.mubr.msk.bf16.vlgmr.msra.gmra.mrb[48].mxu1 %vm1437_vm1, %v3034_v8  ;;  %v4714_v8 = vld [vmem:[%s5412_s12 + $0x74] ss:$8 sps:$4 sm:$0xff]  }
 0xce8   : > { %v2965_v10 = vpop.f32.mrb[44].mxu0  ;;  %4420 = vmatpush3.bf16.msra.mxu1 %v4689_v51  ;;  %4423 = vmatprep.mubr.msk.bf16.mxu1 %vm5011_vm0, %v5009_v12  ;;  %v4711_v51 = vld [vmem:[%s5412_s12 + $0x64] ss:$8 sps:$4 sm:$0xff]  }
 0xce9   : > { %v4387_v13 = vpop.f32.mrb[45].mxu0  ;;  %4421 = vmatprep.subr.bf16.mxu1 %v5009_v12 }
 0xcea   : > { %v2968_v14 = vpop.f32.mrb[46].mxu0  ;;  %v4717_v13 = vld [vmem:[%s5421_s30 + $0x48] sm:$0xff]  }
 0xceb   : > { %v3035_v15 = vpack.c.bf16 %v2968_v14, %v2965_v10  ;;  %v4388_v16 = vpop.f32.mrb[47].mxu0  ;;  %v4715_v10 = vld [vmem:[%s5421_s30 + $0x40] sm:$0xff]   ;;  %v4718_v14 = vld [vmem:[%s5421_s30 + $0x8] sm:$0xff]  }
 0xcec   : > { %v3009_v18 = vpop.f32.mrb[44].mxu1  ;;  %4422 = vmatpush3.bf16.msra.mxu1 %v4690_v11  ;;  %v4716_v11 = vld [vmem:[%s5421_s30] sm:$0xff]   ;;  %v4720_v16 = vld [vmem:[%s5421_s30 + $0x10] sm:$0xff]  }
 0xced   : > { %v4393_v19 = vpop.f32.mrb[45].mxu1  ;;  %4416 = vmatmul.mubr.msk.bf16.vlgmr.msra.gmra.mrb[52].mxu0 %vm1437_vm1, %v3035_v15  ;;  %4205 = vmatprep.subr.bf16.mxu1 %v4715_v10  ;;  %v4719_v15 = vld [vmem:[%s5421_s30 + $0x50] sm:$0xff]  }
 0xcee   : > { %v3012_v20 = vpop.f32.mrb[46].mxu1  ;;  %3486 = vmatprep.mubr.bf16.mxu0 %v5010_v38  ;;  %3455 = vmatpush1.bf16.msra.mxu0 %v4691_v47  ;;  %v4722_v19 = vld [vmem:[%s5421_s30 + $0x18] sm:$0xff]  }
 0xcef   : > { %v3036_v21 = vpack.c.bf16 %v3012_v20, %v3009_v18  ;;  %v4394_v22 = vpop.f32.mrb[47].mxu1  ;;  %3456 = vmatprep.subr.bf16.mxu0 %v4696_v50  ;;  %v4721_v18 = vld [vmem:[%s5421_s30 + $0x58] sm:$0xff]   ;;  %v4723_v20 = vld [vmem:[%s5421_s30 + $0x60] sm:$0xff]  }
 0xcf0   : > { %v4725_v22 = vld [vmem:[%s5421_s30 + $0x68] sm:$0xff]  }
 0xcf1   : > { %4424 = vmatmul.mubr.msk.bf16.vlgmr.msra.gmra.mrb[52].mxu1 %vm1437_vm1, %v3036_v21  ;;  %v4724_v21 = vld [vmem:[%s5421_s30 + $0x20] sm:$0xff]  }
 0xcf2   : > { %3457 = vmatpush1.bf16.msra.mxu0 %v4694_v53  ;;  %4206 = vmatpush3.bf16.msra.mxu1 %v4716_v11 }
 0xcf3   : > { %3458 = vmatprep.subr.bf16.mxu0 %v4699_v60  ;;  %4207 = vmatprep.subr.bf16.mxu1 %v4717_v13 }
 0xcf6   : > { %3459 = vmatpush1.bf16.msra.mxu0 %v4697_v61  ;;  %4208 = vmatpush3.bf16.msra.mxu1 %v4718_v14 }
 0xcf7   : > { %3460 = vmatprep.subr.bf16.mxu0 %v4702_v62  ;;  %4209 = vmatprep.subr.bf16.mxu1 %v4719_v15 }
 0xcfa   : > { %3461 = vmatpush1.bf16.msra.mxu0 %v4700_v63  ;;  %4210 = vmatpush3.bf16.msra.mxu1 %v4720_v16 }
 0xcfb   : > { %3462 = vmatprep.subr.bf16.mxu0 %v4705_v1  ;;  %4211 = vmatprep.subr.bf16.mxu1 %v4721_v18 }
 0xcfe   : > { %3463 = vmatpush1.bf16.msra.mxu0 %v4703_v2  ;;  %4212 = vmatpush3.bf16.msra.mxu1 %v4722_v19 }
 0xcff   : > { %3464 = vmatprep.subr.bf16.mxu0 %v4708_v3  ;;  %4213 = vmatprep.subr.bf16.mxu1 %v4723_v20 }
 0xd02   : > { %3465 = vmatpush1.bf16.msra.mxu0 %v4706_v5  ;;  %4214 = vmatpush3.bf16.msra.mxu1 %v4724_v21 }
 0xd03   : > { %3466 = vmatprep.subr.bf16.mxu0 %v4711_v51  ;;  %4215 = vmatprep.subr.bf16.mxu1 %v4725_v22 }
 0xd06   : > { %3467 = vmatpush1.bf16.msra.mxu0 %v4709_v48 }
 0xd07   : > { %3468 = vmatprep.subr.bf16.mxu0 %v4714_v8 }
 0xd0a   : > { %3469 = vmatpush1.bf16.msra.mxu0 %v4712_v9 }
 0xd59   : > { %v3086_v23 = vpop.f32.mrb[48].mxu0 }
 0xd5a   : > { %v4401_v24 = vpop.f32.mrb[49].mxu0 }
 0xd5b   : > { %v3089_v25 = vpop.f32.mrb[50].mxu0 }
 0xd5c   : > { %v4402_v12 = vpop.f32.mrb[51].mxu0 }
 0xdba   : > { %v3142_v17 = vpop.f32.mrb[48].mxu1 }
 0xdbb   : > { %v3261_v26 = vadd.f32 %v3142_v17, %v3086_v23  ;;  %v4409_v28 = vpop.f32.mrb[49].mxu1 }
 0xdbc   : > { %v3145_v29 = vpop.f32.mrb[50].mxu1  ;;  %v3277_v28 = vld [vmem:[%s1017_s2] sm:$0x3] }
 0xdbd   : > { %v3264_v30 = vadd.f32 %v3145_v29, %v3089_v25  ;;  %v4410_v0 = vpop.f32.mrb[51].mxu1  ;;  %v3353_v29 = vrot.slane %v3277_v28, %v5488_v52 }
 0xdc0   : > { %v3198_v31 = vpop.f32.mrb[52].mxu0 }
 0xdc1   : > { %v3262_v32 = vadd.f32 %v3261_v26, %v3198_v31  ;;  %v4417_v33 = vpop.f32.mrb[53].mxu0 }
 0xdc2   : > { %v3201_v34 = vpop.f32.mrb[54].mxu0 }
 0xdc3   : > { %v3265_v38 = vadd.f32 %v3264_v30, %v3201_v34  ;;  %v4418_v35 = vpop.f32.mrb[55].mxu0  ;;  %v3359_v34 = vrot.slane %v3277_v28, %v5498_v57 }
 0xdc4   : > { %v3254_v39 = vpop.f32.mrb[52].mxu1 }
 0xdc5   : > { %v3263_v37 = vadd.f32 %v3262_v32, %v3254_v39  ;;  %v4425_v40 = vpop.f32.mrb[53].mxu1 }
 0xdc6   : > { %v3257_v41 = vpop.f32.mrb[54].mxu1  ;;  %v4727_v40 = vld [vmem:[%s5421_s30 + $0x70] sm:$0xff]  }
 0xdc7   : > { %v3273_v42 = vadd.f32 %v4086_v36, %v3263_v37  ;;  %v3266_v43 = vadd.f32 %v3265_v38, %v3257_v41  ;;  %v4426_v44 = vpop.f32.mrb[55].mxu1  ;;  %v4726_v37 = vld [vmem:[%s5421_s30 + $0x28] sm:$0xff]   ;;  %v4728_v41 = vld [vmem:[%s5421_s30 + $0x30] sm:$0xff]  }
 0xdc8   : > { %4216 = vmatpush3.bf16.msra.mxu1 %v4726_v37  ;;  %v3294_v44 = vld [vmem:[%s1026_s5] sm:$0x3] }
 0xdc9   : > { %v3274_v45 = vadd.f32 %v4086_v36, %v3266_v43  ;;  %v5824_v46 = vadd.f32 %v3273_v42, %v5660_v6  ;;  %4217 = vmatprep.subr.bf16.mxu1 %v4727_v40  ;;  %v4729_v42 = vld [vmem:[%s5421_s30 + $0x78] sm:$0xff]   ;;  %v3371_v47 = vrot.slane %v3294_v44, %v5498_v57  ;;  %v4103_v57 = vld [vmem:[%s6033_s3] ss:$0 sm:$0xff] }
 0xdca   : > { %v4730_v43 = vld [vmem:[%s5421_s30 + $0x38] sm:$0xff]  }
 0xdcb   : > { %3328 = vadd.xlane.f32.xlu1 %v5824_v46  ;;  %v5828_v4 = vadd.f32 %v3274_v45, %v5664_v7  ;;  %v3367_v45 = vrot.slane %v3294_v44, %v5488_v52 }
 0xdcc   : > { %4218 = vmatpush3.bf16.msra.mxu1 %v4728_v41 }
 0xdcd   : > { %3330 = vadd.xlane.f32.xlu0 %v5828_v4  ;;  %4219 = vmatprep.subr.bf16.mxu1 %v4729_v42 }
 0xdd0   : > { %4220 = vmatpush3.bf16.msra.mxu1 %v4730_v43 }
 0xe58   : > { %v3329_v6 = vpop.xlane.xlu1 %3328 }
 0xe59   : > { %v3332_v54 = vmul.f32 0.0078125, %v3329_v6 }
 0xe5a   : > { %v3331_v27 = vpop.xlane.xlu0 %3330 }
 0xe5b   : > { %v5836_v7 = vsub.f32 %v5824_v46, %v3332_v54  ;;  %v3333_v55 = vmul.f32 0.0078125, %v3331_v27 }
 0xe5d   : > { %v5839_v56 = vsub.f32 %v5828_v4, %v3333_v55  ;;  %v3336_v58 = vmul.f32 %v5836_v7, %v5836_v7 }
 0xe5f   : > { %3338 = vadd.xlane.f32.xlu0 %v3336_v58  ;;  %v3337_v59 = vmul.f32 %v5839_v56, %v5839_v56 }
 0xe61   : > { %3340 = vadd.xlane.f32.xlu1 %v3337_v59 }
 0xeec   : > { %v3339_v23 = vpop.xlane.xlu0 %3338 }
 0xeed   : > { %v3342_v24 = vmul.f32 0.0078125, %v3339_v23 }
 0xeee   : > { %v3341_v25 = vpop.xlane.xlu1 %3340 }
 0xeef   : > { %v3344_v12 = vadd.f32 1e-05, %v3342_v24  ;;  %v3343_v17 = vmul.f32 0.0078125, %v3341_v25 }
 0xef1   : > { %4803 = vrsqrt.f32 %v3344_v12  ;;  %v3345_v26 = vadd.f32 1e-05, %v3343_v17 }
 0xef3   : > { %4805 = vrsqrt.f32 %v3345_v26 }
 0xefb   : > { %v4804_v30 = vpop.eup %4803 }
 0xefc   : > { %v3348_v0 = vmul.f32 %v4804_v30, %v5836_v7 }
 0xefd   : > { %v4806_v31 = vpop.eup %4805 }
 0xefe   : > { %v3349_v32 = vmul.f32 %v4806_v31, %v5839_v56  ;;  %v3354_v33 = vmul.f32 %v3353_v29, %v3348_v0 }
 0xf00   : > { %v3355_v38 = vmul.f32 %v3353_v29, %v3349_v32  ;;  %v3360_v35 = vadd.f32 %v3359_v34, %v3354_v33 }
 0xf02   : > { %v3361_v36 = vadd.f32 %v3359_v34, %v3355_v38 }
 0xf04   : > { %v3362_v39 = vpack.c.bf16 %v3361_v36, %v3360_v35 }
 0xf06   : > { %3487 = vmatmul.mubr.bf16.vlgmr.msra.gmra.mrb[56].mxu0 %v3362_v39 }
 0xfd9   : > { %v3488_v49 = vpop.f32.mrb[56].mxu0 }
 0xfda   : > { %v3489_v50 = vadd.f32 %v3488_v49, %v3367_v45  ;;  %v3490_v53 = vpop.f32.mrb[57].mxu0 }
 0xfdb   : > { %v3491_v6 = vadd.f32 %v3490_v53, %v3371_v47  ;;  %v3492_v54 = vpop.f32.mrb[58].mxu0 }
 0xfdc   : > { %v3493_v27 = vadd.f32 %v3492_v54, %v3367_v45  ;;  %v3494_v7 = vpop.f32.mrb[59].mxu0  ;;  %v3497_v56 = vmax.f32 %v3489_v50, 0.0 }
 0xfdd   : > { %v3495_v55 = vadd.f32 %v3494_v7, %v3371_v47  ;;  %v3498_v59 = vmax.f32 %v3491_v6, 0.0 }
 0xfde   : > { %v3499_v58 = vmax.f32 %v3493_v27, 0.0 }
 0xfdf   : > { %v3500_v60 = vmax.f32 %v3495_v55, 0.0 }
 0xfe0   : > { %v3501_v61 = vpack.c.bf16 %v3499_v58, %v3497_v56 }
 0xfe1   : > { %v3502_v62 = vpack.c.bf16 %v3500_v60, %v3498_v59 }
 0xfe3   : > { %3637 = vmatprep.mubr.bf16.mxu1 %v3502_v62 }
 0xfe4   : > { %3638 = vmatmul.mubr.bf16.vlgmr.msra.gmra.mrb[56].mxu1 %v3501_v61 }
0x10b7   : > { %v4221_v52 = vpop.f32.mrb[56].mxu1 }
0x10b8   : > { %v4222_v63 = vpop.f32.mrb[57].mxu1 }
0x10b9   : > { %v4223_v1 = vadd.f32 %v4222_v63, %v4221_v52  ;;  %v4224_v2 = vpop.f32.mrb[58].mxu1 }
0x10ba   : > { %v4225_v3 = vpop.f32.mrb[59].mxu1 }
0x10bb   : > { %v3640_v5 = vadd.f32 %v4223_v1, %v4103_v57  ;;  %v4226_v48 = vadd.f32 %v4225_v3, %v4224_v2 }
0x10bd   : > { %v3646_v51 = vadd.f32 %v3640_v5, %v5824_v46  ;;  %v3643_v8 = vadd.f32 %v4226_v48, %v4103_v57 }
0x10bf   : > { %3648 = vst [vmem:[%s5426_s15] sm:$0xff] %v3646_v51  ;;  %v3647_v9 = vadd.f32 %v3643_v8, %v5828_v4 }
0x10c1   : > { %3649 = vst [vmem:[%s5426_s15 + $0x8] sm:$0xff] %v3647_v9 }
0x10c2 PF: > { %s6034_s30 = sld [smem:[#allocation16_spill]]  ;;  %s6035_s1 = sld [smem:[#allocation12_spill]] }
0x10c3   : > { %s6036_s22 = sld [smem:[#allocation13_spill]]  ;;  %s6037_s23 = sld [smem:[#allocation19_spill]] }
0x10c4   : > { %s6038_s24 = sld [smem:[#allocation14_spill]]  ;;  %s6039_s2 = sld [smem:[#allocation15_spill]] }
0x10c5   : > { %s6040_s25 = sld [smem:[#allocation17_spill]]  ;;  %s6041_s3 = sld [smem:[#allocation18_spill]] }
0x10c8   : > { %s39_s26 = sadd.s32 1, %s6034_s30  }
0x10c9   : > { %p36_p7 = scmp.ge.s32.totalorder %s39_s26, 6  }
0x10cb   :  { %38 = sbr.rel (!%p36_p7) target bundleno = 31 (0x1f), region = 226 }
0x10d2   :  { %3671 = vsyncpa [#allocation3], 1 }
0x10d3   :  { %3673 = vsyncpa [#allocation3 + $0x1], 1 }
0x10d4   :  { %3674 = vsyncpa [#allocation5], 1 }
0x10d5   :  { %3676 = vsyncpa [#allocation5 + $0x1], 1 }
0x10d6   :  { %3677 = vsyncpa [#allocation8], 1 }
0x10d7   :  { %3679 = vsyncpa [#allocation8 + $0x1], 1 }

</bundles_post_ra>
